<compile_context>
chip_gen: v7x
topology: tpu7x:2x2x1
jax: 0.10.0
libtpu: 0.0.40
codegen_flags: <defaults>
</compile_context>

<pallas_src>
import functools

import jax
import jax.numpy as jnp
from jax.experimental import pallas as pl
from jax.experimental.pallas import tpu as pltpu

LEAKY_SLOPE = 0.01  # F.leaky_relu default negative_slope
BN_EPS = 1e-5


# --------------------------------------------------------------------------
# Fused kernel
# --------------------------------------------------------------------------
def _fused_block_kernel(x_ref, wconv_ref, ss_ref, skip_w_ref, skip_b_ref,
                        sel_ref, o_ref, pad_ref, *, H, W, C):
    """Whole ResNet block for one image, lane-dense (H, W*C) activations.

    x_ref:      (1, H, W*C)        input image (channels zero-padded to C)
    wconv_ref:  (10, 3, W*C, W*C)  banded 3x3 conv weights, bf16
    ss_ref:     (10, 2, W*C)       per-layer folded (scale, shift), lane-tiled
    skip_w_ref: (W*C, W*C)         block-diagonal 1x1 skip weight, bf16
    skip_b_ref: (1, W*C)           skip bias, lane-tiled
    sel_ref:    (2, W*C, (W//2)*C) exact 0/1 selection matrices for W-pooling
    o_ref:      (1, H//2, (W//2)*C)
    pad_ref:    (H+2, W*C)         persistent padded-activation scratch
    """
    WC = W * C

    # Keep the two halo rows of the persistent scratch zero. The interior rows
    # are fully rewritten by every layer, so re-zeroing only 2 rows per image
    # is enough (and is safe even when the batch axis is split across cores).
    zrow = jnp.zeros((1, WC), jnp.float32)
    pad_ref[0:1, :] = zrow
    pad_ref[H + 1:H + 2, :] = zrow

    x0 = x_ref[0]                                              # (H, W*C) f32

    # 1x1 skip conv as a single block-diagonal matmul (bias pre-tiled).
    residual = jnp.dot(x0.astype(jnp.bfloat16), skip_w_ref[...],
                       preferred_element_type=jnp.float32) + skip_b_ref[...]

    act = x0
    for layer in range(10):
        pad_ref[1:H + 1, :] = act                              # interior rows
        y = None
        for dy in range(3):
            rows = pad_ref[dy:dy + H, :].astype(jnp.bfloat16)  # (H, W*C)
            t = jnp.dot(rows, wconv_ref[layer, dy],
                        preferred_element_type=jnp.float32)
            y = t if y is None else y + t
        # folded (conv bias + eval-mode BatchNorm) affine, lane-tiled.
        y = y * ss_ref[layer, 0:1, :] + ss_ref[layer, 1:2, :]
        if layer < 9:                                          # conv10/bn4: no act
            y = jnp.where(y >= 0, y, LEAKY_SLOPE * y)
        act = y

    z = act + residual
    z = jnp.where(z >= 0, z, LEAKY_SLOPE * z)

    # 2x2 stride-2 max pool, staying lane-dense:
    #   W direction: exact 0/1 selection matmuls gather even / odd w-groups.
    #   H direction: sublane reshape + max.
    ze = jnp.dot(z, sel_ref[0], preferred_element_type=jnp.float32)
    zo = jnp.dot(z, sel_ref[1], preferred_element_type=jnp.float32)
    zw = jnp.maximum(ze, zo)                                   # (H, (W//2)*C)
    zw = zw.reshape(H // 2, 2, (W // 2) * C)
    p = jnp.max(zw, axis=1)                                    # (H//2, (W//2)*C)
    o_ref[...] = p.reshape(1, H // 2, (W // 2) * C).astype(o_ref.dtype)


def fused_block_call(x_lane, bands, ss, skip_band, skip_b, sel, *, H, W, C):
    N = x_lane.shape[0]
    WC = W * C
    OWC = (W // 2) * C
    kernel = functools.partial(_fused_block_kernel, H=H, W=W, C=C)
    return pl.pallas_call(
        kernel,
        out_shape=jax.ShapeDtypeStruct((N, H // 2, OWC), jnp.float32),
        grid=(N,),
        in_specs=[
            pl.BlockSpec((1, H, WC), lambda n: (n, 0, 0)),
            pl.BlockSpec(bands.shape, lambda n: (0, 0, 0, 0)),
            pl.BlockSpec(ss.shape, lambda n: (0, 0, 0)),
            pl.BlockSpec(skip_band.shape, lambda n: (0, 0)),
            pl.BlockSpec(skip_b.shape, lambda n: (0, 0)),
            pl.BlockSpec(sel.shape, lambda n: (0, 0, 0)),
        ],
        out_specs=pl.BlockSpec((1, H // 2, OWC), lambda n: (n, 0, 0)),
        scratch_shapes=[pltpu.VMEM((H + 2, WC), jnp.float32)],
        compiler_params=pltpu.CompilerParams(
            dimension_semantics=("parallel",)),
    )(x_lane, bands, ss, skip_band, skip_b, sel)


# --------------------------------------------------------------------------
# Host-side one-time weight preparation
# --------------------------------------------------------------------------
def _band3x3(w_hwio, W):
    """(3, 3, Ci, Co) HWIO conv weight -> (3, W*Ci, W*Co) banded matrices.

    B_dy[w_in*Ci + ci, w_out*Co + co] = w[dy, w_in - w_out + 1, ci, co]
    whenever |w_in - w_out| <= 1; width zero-padding is implicit (no entry).
    """
    _, _, Ci, Co = w_hwio.shape
    rows = []
    for dy in range(3):
        b = jnp.zeros((W * Ci, W * Co), jnp.float32)
        for dx in range(3):
            band = jnp.eye(W, W, k=1 - dx, dtype=jnp.float32)  # w_in = w_out+dx-1
            b = b + jnp.kron(band, w_hwio[dy, dx].astype(jnp.float32))
        rows.append(b)
    return jnp.stack(rows)


def _fold_layer_affine(bias, bn=None):
    """y = conv*scale + shift, with conv bias and eval-mode BN folded in."""
    if bn is None:
        scale = jnp.ones_like(bias)
        shift = bias
    else:
        scale = bn["gamma"] / jnp.sqrt(bn["var"] + BN_EPS)
        shift = bn["beta"] - bn["mean"] * scale + bias * scale
    return scale, shift


def pack_params(params, W):
    C = params["c1_w"].shape[-1]          # C_out
    Cin = params["c1_w"].shape[-2]
    assert Cin <= C, "kernel assumes C_in <= C_out (input channels are padded)"

    # conv1's input channels zero-padded to C so every layer shares the same
    # lane-dense (w, c) layout.
    w1 = jnp.pad(params["c1_w"], ((0, 0), (0, 0), (0, C - Cin), (0, 0)))
    conv_ws = [w1] + [params[f"c{i}_w"] for i in range(2, 11)]
    bands = jnp.stack([_band3x3(w, W) for w in conv_ws]).astype(jnp.bfloat16)

    bn_of_layer = {0: "bn1", 3: "bn2", 6: "bn3", 9: "bn4"}
    ss = []
    for layer in range(10):
        bias = params[f"c{layer + 1}_b"]
        bn = params[bn_of_layer[layer]] if layer in bn_of_layer else None
        scale, shift = _fold_layer_affine(bias, bn)
        ss.append(jnp.stack([jnp.tile(scale, W), jnp.tile(shift, W)]))
    ss = jnp.stack(ss).astype(jnp.float32)                       # (10, 2, W*C)

    skip_w = jnp.pad(params["skip_w"], ((0, C - Cin), (0, 0)))   # (C, C)
    skip_band = jnp.kron(jnp.eye(W, dtype=jnp.float32),
                         skip_w.astype(jnp.float32)).astype(jnp.bfloat16)
    skip_b = jnp.tile(params["skip_b"], W).reshape(1, W * C).astype(jnp.float32)

    half = W // 2
    even = (jnp.arange(W)[:, None] == 2 * jnp.arange(half)[None, :]
            ).astype(jnp.float32)
    odd = (jnp.arange(W)[:, None] == 2 * jnp.arange(half)[None, :] + 1
           ).astype(jnp.float32)
    eye_c = jnp.eye(C, dtype=jnp.float32)
    sel = jnp.stack([jnp.kron(even, eye_c), jnp.kron(odd, eye_c)])

    return bands, ss, skip_band, skip_b, sel


# --------------------------------------------------------------------------
# Forward pass (mirrors Block_CNN_ResNet.forward, reverse=False)
# --------------------------------------------------------------------------
def block_cnn_resnet_forward(params, x_nchw):
    N, Cin, H, W = x_nchw.shape
    C = params["c1_w"].shape[-1]
    bands, ss, skip_band, skip_b, sel = pack_params(params, W)

    x = jnp.transpose(x_nchw, (0, 2, 3, 1)).astype(jnp.float32)   # NCHW -> NHWC
    x = jnp.pad(x, ((0, 0), (0, 0), (0, 0), (0, C - Cin)))        # pad channels
    x = x.reshape(N, H, W * C)                                    # lane-dense

    y = fused_block_call(x, bands, ss, skip_band, skip_b, sel, H=H, W=W, C=C)
    y = y.reshape(N, H // 2, W // 2, C)
    return jnp.transpose(y, (0, 3, 1, 2))                         # NHWC -> NCHW


# --------------------------------------------------------------------------
# Pure-JAX reference (eval-mode BN), used only as a numerical sanity check.
# --------------------------------------------------------------------------
def reference_forward(params, x_nchw):
    dn = ("NCHW", "HWIO", "NCHW")

    def conv3(x, w, b):
        y = jax.lax.conv_general_dilated(x, w, (1, 1), "SAME",
                                         dimension_numbers=dn)
        return y + b.reshape(1, -1, 1, 1)

    def bn(x, p):
        scale = p["gamma"] / jnp.sqrt(p["var"] + BN_EPS)
        shift = p["beta"] - p["mean"] * scale
        return x * scale.reshape(1, -1, 1, 1) + shift.reshape(1, -1, 1, 1)

    def lrelu(x):
        return jnp.where(x >= 0, x, LEAKY_SLOPE * x)

    res = x_nchw
    X = lrelu(bn(conv3(x_nchw, params["c1_w"], params["c1_b"]), params["bn1"]))
    X = lrelu(conv3(X, params["c2_w"], params["c2_b"]))
    X = lrelu(conv3(X, params["c3_w"], params["c3_b"]))
    X = lrelu(bn(conv3(X, params["c4_w"], params["c4_b"]), params["bn2"]))
    X = lrelu(conv3(X, params["c5_w"], params["c5_b"]))
    X = lrelu(conv3(X, params["c6_w"], params["c6_b"]))
    X = lrelu(bn(conv3(X, params["c7_w"], params["c7_b"]), params["bn3"]))
    X = lrelu(conv3(X, params["c8_w"], params["c8_b"]))
    X = lrelu(conv3(X, params["c9_w"], params["c9_b"]))
    X = bn(conv3(X, params["c10_w"], params["c10_b"]), params["bn4"])

    Cin, Cout = params["skip_w"].shape
    skip = jax.lax.conv_general_dilated(
        res, params["skip_w"].reshape(1, 1, Cin, Cout), (1, 1), "SAME",
        dimension_numbers=dn) + params["skip_b"].reshape(1, -1, 1, 1)

    X = lrelu(X + skip)
    n, c, h, w = X.shape
    return X.reshape(n, c, h // 2, 2, w // 2, 2).max(axis=(3, 5))


# --------------------------------------------------------------------------
# Parameters (deterministic synthetic init, shapes per Block_CNN_ResNet.__init__)
# --------------------------------------------------------------------------
def init_params(key, C_in, C_out):
    keys = jax.random.split(key, 40)
    it = iter(keys)
    p = {}

    def conv3(cin, cout):
        kw, kb = next(it), next(it)
        w = 0.1 * jax.random.normal(kw, (3, 3, cin, cout), jnp.float32)  # HWIO
        b = 0.05 * jax.random.normal(kb, (cout,), jnp.float32)
        return w, b

    p["c1_w"], p["c1_b"] = conv3(C_in, C_out)
    for i in range(2, 11):
        p[f"c{i}_w"], p[f"c{i}_b"] = conv3(C_out, C_out)

    kw, kb = next(it), next(it)
    p["skip_w"] = 0.1 * jax.random.normal(kw, (C_in, C_out), jnp.float32)
    p["skip_b"] = 0.05 * jax.random.normal(kb, (C_out,), jnp.float32)

    for j in range(1, 5):
        kg, kb2, km, kv = next(it), next(it), next(it), next(it)
        p[f"bn{j}"] = {
            "gamma": 1.0 + 0.1 * jax.random.normal(kg, (C_out,), jnp.float32),
            "beta": 0.1 * jax.random.normal(kb2, (C_out,), jnp.float32),
            "mean": 0.1 * jax.random.normal(km, (C_out,), jnp.float32),
            "var": 1.0 + 0.1 * jax.random.uniform(kv, (C_out,), jnp.float32),
        }
    return p


# --------------------------------------------------------------------------
# Main
# --------------------------------------------------------------------------
if __name__ == "__main__":
    N, C_in, C_out, H, W = 2, 4, 8, 16, 16
    key = jax.random.PRNGKey(0)
    pkey, xkey = jax.random.split(key)

    params = init_params(pkey, C_in, C_out)
    x = jax.random.normal(xkey, (N, C_in, H, W), jnp.float32)

    y = block_cnn_resnet_forward(params, x)
    jax.block_until_ready(y)
    assert y.shape == (N, C_out, H // 2, W // 2), y.shape

    # Loose tolerance: kernel matmuls use bf16 operands (f32 accumulation).
    y_ref = reference_forward(params, x)
    assert jnp.allclose(y, y_ref, rtol=0.1, atol=0.1), float(
        jnp.max(jnp.abs(y - y_ref)))

    print("KERNEL_OK")
</pallas_src>

<mosaic_0001>
module attributes {stable_mosaic.version = 11 : i64} {
  func.func @_fused_block_kernel(%arg0: i32, %arg1: memref<1x16x128xf32, #tpu.memory_space<vmem>>, %arg2: memref<10x3x128x128xbf16, #tpu.memory_space<vmem>>, %arg3: memref<10x2x128xf32, #tpu.memory_space<vmem>>, %arg4: memref<128x128xbf16, #tpu.memory_space<vmem>>, %arg5: memref<1x128xf32, #tpu.memory_space<vmem>>, %arg6: memref<2x128x64xf32, #tpu.memory_space<vmem>>, %arg7: memref<1x8x64xf32, #tpu.memory_space<vmem>>, %arg8: memref<18x128xf32, #tpu.memory_space<vmem>>) attributes {dimension_semantics = [#tpu.dimension_semantics<parallel>], iteration_bounds = array<i64: 2>, scalar_prefetch = 0 : i64, scratch_operands = 1 : i64, tpu.core_type = #tpu.core_type<tc>, window_params = [{transform_indices = @transform_0, window_bounds = array<i64: 1, 16, 128>}, {pipeline_mode = #tpu.pipeline_mode<synchronous>, transform_indices = @transform_1, window_bounds = array<i64: 10, 3, 128, 128>}, {pipeline_mode = #tpu.pipeline_mode<synchronous>, transform_indices = @transform_2, window_bounds = array<i64: 10, 2, 128>}, {pipeline_mode = #tpu.pipeline_mode<synchronous>, transform_indices = @transform_3, window_bounds = array<i64: 128, 128>}, {pipeline_mode = #tpu.pipeline_mode<synchronous>, transform_indices = @transform_4, window_bounds = array<i64: 1, 128>}, {pipeline_mode = #tpu.pipeline_mode<synchronous>, transform_indices = @transform_5, window_bounds = array<i64: 2, 128, 64>}, {transform_indices = @transform_6, window_bounds = array<i64: 1, 8, 64>}]} {
    %cst = arith.constant 0.000000e+00 : f32
    %0 = vector.broadcast %cst : f32 to vector<1x128xf32>
    %c0 = arith.constant 0 : index
    %c0_0 = arith.constant 0 : index
    %1 = vector.load %arg8[%c0, %c0_0] : memref<18x128xf32, #tpu.memory_space<vmem>>, vector<1x128xf32>
    tpu.vector_store %arg8[%c0, %c0_0], %0 {strides = array<i32>} : memref<18x128xf32, #tpu.memory_space<vmem>>, vector<1x128xf32>,
    %c17 = arith.constant 17 : index
    %c0_1 = arith.constant 0 : index
    %2 = vector.load %arg8[%c17, %c0_1] : memref<18x128xf32, #tpu.memory_space<vmem>>, vector<1x128xf32>
    tpu.vector_store %arg8[%c17, %c0_1], %0 {strides = array<i32>} : memref<18x128xf32, #tpu.memory_space<vmem>>, vector<1x128xf32>,
    %c0_2 = arith.constant 0 : index
    %c0_3 = arith.constant 0 : index
    %c0_4 = arith.constant 0 : index
    %3 = vector.load %arg1[%c0_2, %c0_3, %c0_4] : memref<1x16x128xf32, #tpu.memory_space<vmem>>, vector<1x16x128xf32>
    %4 = vector.shape_cast %3 : vector<1x16x128xf32> to vector<16x128xf32>
    %5 = arith.truncf %4 : vector<16x128xf32> to vector<16x128xbf16>
    %c0_5 = arith.constant 0 : index
    %c0_6 = arith.constant 0 : index
    %6 = vector.load %arg4[%c0_5, %c0_6] : memref<128x128xbf16, #tpu.memory_space<vmem>>, vector<128x128xbf16>
    %cst_7 = arith.constant dense<0.000000e+00> : vector<16x128xf32>
    %7 = tpu.matmul %5, %6, %cst_7 {dimension_numbers = #tpu.dot_dimension_numbers<[1], [0], [0], [1], [0, 0, 1, 1], [], []>} : vector<16x128xbf16>, vector<128x128xbf16>, vector<16x128xf32> -> vector<16x128xf32>
    %c0_8 = arith.constant 0 : index
    %c0_9 = arith.constant 0 : index
    %8 = vector.load %arg5[%c0_8, %c0_9] : memref<1x128xf32, #tpu.memory_space<vmem>>, vector<1x128xf32>
    %9 = vector.broadcast %8 : vector<1x128xf32> to vector<16x128xf32>
    %10 = arith.addf %7, %9 : vector<16x128xf32>
    %c1 = arith.constant 1 : index
    %c0_10 = arith.constant 0 : index
    %11 = vector.load %arg8[%c1, %c0_10] : memref<18x128xf32, #tpu.memory_space<vmem>>, vector<16x128xf32>
    tpu.vector_store %arg8[%c1, %c0_10], %4 {strides = array<i32>} : memref<18x128xf32, #tpu.memory_space<vmem>>, vector<16x128xf32>,
    %c0_11 = arith.constant 0 : index
    %c0_12 = arith.constant 0 : index
    %12 = vector.load %arg8[%c0_11, %c0_12] : memref<18x128xf32, #tpu.memory_space<vmem>>, vector<16x128xf32>
    %13 = arith.truncf %12 : vector<16x128xf32> to vector<16x128xbf16>
    %c0_13 = arith.constant 0 : index
    %c0_14 = arith.constant 0 : index
    %c0_15 = arith.constant 0 : index
    %c0_16 = arith.constant 0 : index
    %14 = vector.load %arg2[%c0_13, %c0_14, %c0_15, %c0_16] : memref<10x3x128x128xbf16, #tpu.memory_space<vmem>>, vector<1x1x128x128xbf16>
    %15 = vector.shape_cast %14 : vector<1x1x128x128xbf16> to vector<128x128xbf16>
    %cst_17 = arith.constant dense<0.000000e+00> : vector<16x128xf32>
    %16 = tpu.matmul %13, %15, %cst_17 {dimension_numbers = #tpu.dot_dimension_numbers<[1], [0], [0], [1], [0, 0, 1, 1], [], []>} : vector<16x128xbf16>, vector<128x128xbf16>, vector<16x128xf32> -> vector<16x128xf32>
    %c1_18 = arith.constant 1 : index
    %c0_19 = arith.constant 0 : index
    %17 = vector.load %arg8[%c1_18, %c0_19] : memref<18x128xf32, #tpu.memory_space<vmem>>, vector<16x128xf32>
    %18 = arith.truncf %17 : vector<16x128xf32> to vector<16x128xbf16>
    %c0_20 = arith.constant 0 : index
    %c1_21 = arith.constant 1 : index
    %c0_22 = arith.constant 0 : index
    %c0_23 = arith.constant 0 : index
    %19 = vector.load %arg2[%c0_20, %c1_21, %c0_22, %c0_23] : memref<10x3x128x128xbf16, #tpu.memory_space<vmem>>, vector<1x1x128x128xbf16>
    %20 = vector.shape_cast %19 : vector<1x1x128x128xbf16> to vector<128x128xbf16>
    %cst_24 = arith.constant dense<0.000000e+00> : vector<16x128xf32>
    %21 = tpu.matmul %18, %20, %cst_24 {dimension_numbers = #tpu.dot_dimension_numbers<[1], [0], [0], [1], [0, 0, 1, 1], [], []>} : vector<16x128xbf16>, vector<128x128xbf16>, vector<16x128xf32> -> vector<16x128xf32>
    %22 = arith.addf %16, %21 : vector<16x128xf32>
    %c2 = arith.constant 2 : index
    %c0_25 = arith.constant 0 : index
    %23 = vector.load %arg8[%c2, %c0_25] : memref<18x128xf32, #tpu.memory_space<vmem>>, vector<16x128xf32>
    %24 = arith.truncf %23 : vector<16x128xf32> to vector<16x128xbf16>
    %c0_26 = arith.constant 0 : index
    %c2_27 = arith.constant 2 : index
    %c0_28 = arith.constant 0 : index
    %c0_29 = arith.constant 0 : index
    %25 = vector.load %arg2[%c0_26, %c2_27, %c0_28, %c0_29] : memref<10x3x128x128xbf16, #tpu.memory_space<vmem>>, vector<1x1x128x128xbf16>
    %26 = vector.shape_cast %25 : vector<1x1x128x128xbf16> to vector<128x128xbf16>
    %cst_30 = arith.constant dense<0.000000e+00> : vector<16x128xf32>
    %27 = tpu.matmul %24, %26, %cst_30 {dimension_numbers = #tpu.dot_dimension_numbers<[1], [0], [0], [1], [0, 0, 1, 1], [], []>} : vector<16x128xbf16>, vector<128x128xbf16>, vector<16x128xf32> -> vector<16x128xf32>
    %28 = arith.addf %22, %27 : vector<16x128xf32>
    %c0_31 = arith.constant 0 : index
    %c0_32 = arith.constant 0 : index
    %c0_33 = arith.constant 0 : index
    %29 = vector.load %arg3[%c0_31, %c0_32, %c0_33] : memref<10x2x128xf32, #tpu.memory_space<vmem>>, vector<1x1x128xf32>
    %30 = vector.shape_cast %29 : vector<1x1x128xf32> to vector<1x128xf32>
    %31 = vector.broadcast %30 : vector<1x128xf32> to vector<16x128xf32>
    %32 = arith.mulf %28, %31 : vector<16x128xf32>
    %c0_34 = arith.constant 0 : index
    %c1_35 = arith.constant 1 : index
    %c0_36 = arith.constant 0 : index
    %33 = vector.load %arg3[%c0_34, %c1_35, %c0_36] : memref<10x2x128xf32, #tpu.memory_space<vmem>>, vector<1x1x128xf32>
    %34 = vector.shape_cast %33 : vector<1x1x128xf32> to vector<1x128xf32>
    %35 = vector.broadcast %34 : vector<1x128xf32> to vector<16x128xf32>
    %36 = arith.addf %32, %35 : vector<16x128xf32>
    %cst_37 = arith.constant 0.000000e+00 : f32
    %37 = vector.broadcast %cst_37 : f32 to vector<16x128xf32>
    %38 = arith.cmpf oge, %36, %37 : vector<16x128xf32>
    %cst_38 = arith.constant 0.00999999977 : f32
    %39 = vector.broadcast %cst_38 : f32 to vector<16x128xf32>
    %40 = arith.mulf %39, %36 : vector<16x128xf32>
    %41 = arith.select %38, %36, %40 : vector<16x128xi1>, vector<16x128xf32>
    %c1_39 = arith.constant 1 : index
    %c0_40 = arith.constant 0 : index
    %42 = vector.load %arg8[%c1_39, %c0_40] : memref<18x128xf32, #tpu.memory_space<vmem>>, vector<16x128xf32>
    tpu.vector_store %arg8[%c1_39, %c0_40], %41 {strides = array<i32>} : memref<18x128xf32, #tpu.memory_space<vmem>>, vector<16x128xf32>,
    %c0_41 = arith.constant 0 : index
    %c0_42 = arith.constant 0 : index
    %43 = vector.load %arg8[%c0_41, %c0_42] : memref<18x128xf32, #tpu.memory_space<vmem>>, vector<16x128xf32>
    %44 = arith.truncf %43 : vector<16x128xf32> to vector<16x128xbf16>
    %c1_43 = arith.constant 1 : index
    %c0_44 = arith.constant 0 : index
    %c0_45 = arith.constant 0 : index
    %c0_46 = arith.constant 0 : index
    %45 = vector.load %arg2[%c1_43, %c0_44, %c0_45, %c0_46] : memref<10x3x128x128xbf16, #tpu.memory_space<vmem>>, vector<1x1x128x128xbf16>
    %46 = vector.shape_cast %45 : vector<1x1x128x128xbf16> to vector<128x128xbf16>
    %cst_47 = arith.constant dense<0.000000e+00> : vector<16x128xf32>
    %47 = tpu.matmul %44, %46, %cst_47 {dimension_numbers = #tpu.dot_dimension_numbers<[1], [0], [0], [1], [0, 0, 1, 1], [], []>} : vector<16x128xbf16>, vector<128x128xbf16>, vector<16x128xf32> -> vector<16x128xf32>
    %c1_48 = arith.constant 1 : index
    %c0_49 = arith.constant 0 : index
    %48 = vector.load %arg8[%c1_48, %c0_49] : memref<18x128xf32, #tpu.memory_space<vmem>>, vector<16x128xf32>
    %49 = arith.truncf %48 : vector<16x128xf32> to vector<16x128xbf16>
    %c1_50 = arith.constant 1 : index
    %c1_51 = arith.constant 1 : index
    %c0_52 = arith.constant 0 : index
    %c0_53 = arith.constant 0 : index
    %50 = vector.load %arg2[%c1_50, %c1_51, %c0_52, %c0_53] : memref<10x3x128x128xbf16, #tpu.memory_space<vmem>>, vector<1x1x128x128xbf16>
    %51 = vector.shape_cast %50 : vector<1x1x128x128xbf16> to vector<128x128xbf16>
    %cst_54 = arith.constant dense<0.000000e+00> : vector<16x128xf32>
    %52 = tpu.matmul %49, %51, %cst_54 {dimension_numbers = #tpu.dot_dimension_numbers<[1], [0], [0], [1], [0, 0, 1, 1], [], []>} : vector<16x128xbf16>, vector<128x128xbf16>, vector<16x128xf32> -> vector<16x128xf32>
    %53 = arith.addf %47, %52 : vector<16x128xf32>
    %c2_55 = arith.constant 2 : index
    %c0_56 = arith.constant 0 : index
    %54 = vector.load %arg8[%c2_55, %c0_56] : memref<18x128xf32, #tpu.memory_space<vmem>>, vector<16x128xf32>
    %55 = arith.truncf %54 : vector<16x128xf32> to vector<16x128xbf16>
    %c1_57 = arith.constant 1 : index
    %c2_58 = arith.constant 2 : index
    %c0_59 = arith.constant 0 : index
    %c0_60 = arith.constant 0 : index
    %56 = vector.load %arg2[%c1_57, %c2_58, %c0_59, %c0_60] : memref<10x3x128x128xbf16, #tpu.memory_space<vmem>>, vector<1x1x128x128xbf16>
    %57 = vector.shape_cast %56 : vector<1x1x128x128xbf16> to vector<128x128xbf16>
    %cst_61 = arith.constant dense<0.000000e+00> : vector<16x128xf32>
    %58 = tpu.matmul %55, %57, %cst_61 {dimension_numbers = #tpu.dot_dimension_numbers<[1], [0], [0], [1], [0, 0, 1, 1], [], []>} : vector<16x128xbf16>, vector<128x128xbf16>, vector<16x128xf32> -> vector<16x128xf32>
    %59 = arith.addf %53, %58 : vector<16x128xf32>
    %c1_62 = arith.constant 1 : index
    %c0_63 = arith.constant 0 : index
    %c0_64 = arith.constant 0 : index
    %60 = vector.load %arg3[%c1_62, %c0_63, %c0_64] : memref<10x2x128xf32, #tpu.memory_space<vmem>>, vector<1x1x128xf32>
    %61 = vector.shape_cast %60 : vector<1x1x128xf32> to vector<1x128xf32>
    %62 = vector.broadcast %61 : vector<1x128xf32> to vector<16x128xf32>
    %63 = arith.mulf %59, %62 : vector<16x128xf32>
    %c1_65 = arith.constant 1 : index
    %c1_66 = arith.constant 1 : index
    %c0_67 = arith.constant 0 : index
    %64 = vector.load %arg3[%c1_65, %c1_66, %c0_67] : memref<10x2x128xf32, #tpu.memory_space<vmem>>, vector<1x1x128xf32>
    %65 = vector.shape_cast %64 : vector<1x1x128xf32> to vector<1x128xf32>
    %66 = vector.broadcast %65 : vector<1x128xf32> to vector<16x128xf32>
    %67 = arith.addf %63, %66 : vector<16x128xf32>
    %cst_68 = arith.constant 0.000000e+00 : f32
    %68 = vector.broadcast %cst_68 : f32 to vector<16x128xf32>
    %69 = arith.cmpf oge, %67, %68 : vector<16x128xf32>
    %cst_69 = arith.constant 0.00999999977 : f32
    %70 = vector.broadcast %cst_69 : f32 to vector<16x128xf32>
    %71 = arith.mulf %70, %67 : vector<16x128xf32>
    %72 = arith.select %69, %67, %71 : vector<16x128xi1>, vector<16x128xf32>
    %c1_70 = arith.constant 1 : index
    %c0_71 = arith.constant 0 : index
    %73 = vector.load %arg8[%c1_70, %c0_71] : memref<18x128xf32, #tpu.memory_space<vmem>>, vector<16x128xf32>
    tpu.vector_store %arg8[%c1_70, %c0_71], %72 {strides = array<i32>} : memref<18x128xf32, #tpu.memory_space<vmem>>, vector<16x128xf32>,
    %c0_72 = arith.constant 0 : index
    %c0_73 = arith.constant 0 : index
    %74 = vector.load %arg8[%c0_72, %c0_73] : memref<18x128xf32, #tpu.memory_space<vmem>>, vector<16x128xf32>
    %75 = arith.truncf %74 : vector<16x128xf32> to vector<16x128xbf16>
    %c2_74 = arith.constant 2 : index
    %c0_75 = arith.constant 0 : index
    %c0_76 = arith.constant 0 : index
    %c0_77 = arith.constant 0 : index
    %76 = vector.load %arg2[%c2_74, %c0_75, %c0_76, %c0_77] : memref<10x3x128x128xbf16, #tpu.memory_space<vmem>>, vector<1x1x128x128xbf16>
    %77 = vector.shape_cast %76 : vector<1x1x128x128xbf16> to vector<128x128xbf16>
    %cst_78 = arith.constant dense<0.000000e+00> : vector<16x128xf32>
    %78 = tpu.matmul %75, %77, %cst_78 {dimension_numbers = #tpu.dot_dimension_numbers<[1], [0], [0], [1], [0, 0, 1, 1], [], []>} : vector<16x128xbf16>, vector<128x128xbf16>, vector<16x128xf32> -> vector<16x128xf32>
    %c1_79 = arith.constant 1 : index
    %c0_80 = arith.constant 0 : index
    %79 = vector.load %arg8[%c1_79, %c0_80] : memref<18x128xf32, #tpu.memory_space<vmem>>, vector<16x128xf32>
    %80 = arith.truncf %79 : vector<16x128xf32> to vector<16x128xbf16>
    %c2_81 = arith.constant 2 : index
    %c1_82 = arith.constant 1 : index
    %c0_83 = arith.constant 0 : index
    %c0_84 = arith.constant 0 : index
    %81 = vector.load %arg2[%c2_81, %c1_82, %c0_83, %c0_84] : memref<10x3x128x128xbf16, #tpu.memory_space<vmem>>, vector<1x1x128x128xbf16>
    %82 = vector.shape_cast %81 : vector<1x1x128x128xbf16> to vector<128x128xbf16>
    %cst_85 = arith.constant dense<0.000000e+00> : vector<16x128xf32>
    %83 = tpu.matmul %80, %82, %cst_85 {dimension_numbers = #tpu.dot_dimension_numbers<[1], [0], [0], [1], [0, 0, 1, 1], [], []>} : vector<16x128xbf16>, vector<128x128xbf16>, vector<16x128xf32> -> vector<16x128xf32>
    %84 = arith.addf %78, %83 : vector<16x128xf32>
    %c2_86 = arith.constant 2 : index
    %c0_87 = arith.constant 0 : index
    %85 = vector.load %arg8[%c2_86, %c0_87] : memref<18x128xf32, #tpu.memory_space<vmem>>, vector<16x128xf32>
    %86 = arith.truncf %85 : vector<16x128xf32> to vector<16x128xbf16>
    %c2_88 = arith.constant 2 : index
    %c2_89 = arith.constant 2 : index
    %c0_90 = arith.constant 0 : index
    %c0_91 = arith.constant 0 : index
    %87 = vector.load %arg2[%c2_88, %c2_89, %c0_90, %c0_91] : memref<10x3x128x128xbf16, #tpu.memory_space<vmem>>, vector<1x1x128x128xbf16>
    %88 = vector.shape_cast %87 : vector<1x1x128x128xbf16> to vector<128x128xbf16>
    %cst_92 = arith.constant dense<0.000000e+00> : vector<16x128xf32>
    %89 = tpu.matmul %86, %88, %cst_92 {dimension_numbers = #tpu.dot_dimension_numbers<[1], [0], [0], [1], [0, 0, 1, 1], [], []>} : vector<16x128xbf16>, vector<128x128xbf16>, vector<16x128xf32> -> vector<16x128xf32>
    %90 = arith.addf %84, %89 : vector<16x128xf32>
    %c2_93 = arith.constant 2 : index
    %c0_94 = arith.constant 0 : index
    %c0_95 = arith.constant 0 : index
    %91 = vector.load %arg3[%c2_93, %c0_94, %c0_95] : memref<10x2x128xf32, #tpu.memory_space<vmem>>, vector<1x1x128xf32>
    %92 = vector.shape_cast %91 : vector<1x1x128xf32> to vector<1x128xf32>
    %93 = vector.broadcast %92 : vector<1x128xf32> to vector<16x128xf32>
    %94 = arith.mulf %90, %93 : vector<16x128xf32>
    %c2_96 = arith.constant 2 : index
    %c1_97 = arith.constant 1 : index
    %c0_98 = arith.constant 0 : index
    %95 = vector.load %arg3[%c2_96, %c1_97, %c0_98] : memref<10x2x128xf32, #tpu.memory_space<vmem>>, vector<1x1x128xf32>
    %96 = vector.shape_cast %95 : vector<1x1x128xf32> to vector<1x128xf32>
    %97 = vector.broadcast %96 : vector<1x128xf32> to vector<16x128xf32>
    %98 = arith.addf %94, %97 : vector<16x128xf32>
    %cst_99 = arith.constant 0.000000e+00 : f32
    %99 = vector.broadcast %cst_99 : f32 to vector<16x128xf32>
    %100 = arith.cmpf oge, %98, %99 : vector<16x128xf32>
    %cst_100 = arith.constant 0.00999999977 : f32
    %101 = vector.broadcast %cst_100 : f32 to vector<16x128xf32>
    %102 = arith.mulf %101, %98 : vector<16x128xf32>
    %103 = arith.select %100, %98, %102 : vector<16x128xi1>, vector<16x128xf32>
    %c1_101 = arith.constant 1 : index
    %c0_102 = arith.constant 0 : index
    %104 = vector.load %arg8[%c1_101, %c0_102] : memref<18x128xf32, #tpu.memory_space<vmem>>, vector<16x128xf32>
    tpu.vector_store %arg8[%c1_101, %c0_102], %103 {strides = array<i32>} : memref<18x128xf32, #tpu.memory_space<vmem>>, vector<16x128xf32>,
    %c0_103 = arith.constant 0 : index
    %c0_104 = arith.constant 0 : index
    %105 = vector.load %arg8[%c0_103, %c0_104] : memref<18x128xf32, #tpu.memory_space<vmem>>, vector<16x128xf32>
    %106 = arith.truncf %105 : vector<16x128xf32> to vector<16x128xbf16>
    %c3 = arith.constant 3 : index
    %c0_105 = arith.constant 0 : index
    %c0_106 = arith.constant 0 : index
    %c0_107 = arith.constant 0 : index
    %107 = vector.load %arg2[%c3, %c0_105, %c0_106, %c0_107] : memref<10x3x128x128xbf16, #tpu.memory_space<vmem>>, vector<1x1x128x128xbf16>
    %108 = vector.shape_cast %107 : vector<1x1x128x128xbf16> to vector<128x128xbf16>
    %cst_108 = arith.constant dense<0.000000e+00> : vector<16x128xf32>
    %109 = tpu.matmul %106, %108, %cst_108 {dimension_numbers = #tpu.dot_dimension_numbers<[1], [0], [0], [1], [0, 0, 1, 1], [], []>} : vector<16x128xbf16>, vector<128x128xbf16>, vector<16x128xf32> -> vector<16x128xf32>
    %c1_109 = arith.constant 1 : index
    %c0_110 = arith.constant 0 : index
    %110 = vector.load %arg8[%c1_109, %c0_110] : memref<18x128xf32, #tpu.memory_space<vmem>>, vector<16x128xf32>
    %111 = arith.truncf %110 : vector<16x128xf32> to vector<16x128xbf16>
    %c3_111 = arith.constant 3 : index
    %c1_112 = arith.constant 1 : index
    %c0_113 = arith.constant 0 : index
    %c0_114 = arith.constant 0 : index
    %112 = vector.load %arg2[%c3_111, %c1_112, %c0_113, %c0_114] : memref<10x3x128x128xbf16, #tpu.memory_space<vmem>>, vector<1x1x128x128xbf16>
    %113 = vector.shape_cast %112 : vector<1x1x128x128xbf16> to vector<128x128xbf16>
    %cst_115 = arith.constant dense<0.000000e+00> : vector<16x128xf32>
    %114 = tpu.matmul %111, %113, %cst_115 {dimension_numbers = #tpu.dot_dimension_numbers<[1], [0], [0], [1], [0, 0, 1, 1], [], []>} : vector<16x128xbf16>, vector<128x128xbf16>, vector<16x128xf32> -> vector<16x128xf32>
    %115 = arith.addf %109, %114 : vector<16x128xf32>
    %c2_116 = arith.constant 2 : index
    %c0_117 = arith.constant 0 : index
    %116 = vector.load %arg8[%c2_116, %c0_117] : memref<18x128xf32, #tpu.memory_space<vmem>>, vector<16x128xf32>
    %117 = arith.truncf %116 : vector<16x128xf32> to vector<16x128xbf16>
    %c3_118 = arith.constant 3 : index
    %c2_119 = arith.constant 2 : index
    %c0_120 = arith.constant 0 : index
    %c0_121 = arith.constant 0 : index
    %118 = vector.load %arg2[%c3_118, %c2_119, %c0_120, %c0_121] : memref<10x3x128x128xbf16, #tpu.memory_space<vmem>>, vector<1x1x128x128xbf16>
    %119 = vector.shape_cast %118 : vector<1x1x128x128xbf16> to vector<128x128xbf16>
    %cst_122 = arith.constant dense<0.000000e+00> : vector<16x128xf32>
    %120 = tpu.matmul %117, %119, %cst_122 {dimension_numbers = #tpu.dot_dimension_numbers<[1], [0], [0], [1], [0, 0, 1, 1], [], []>} : vector<16x128xbf16>, vector<128x128xbf16>, vector<16x128xf32> -> vector<16x128xf32>
    %121 = arith.addf %115, %120 : vector<16x128xf32>
    %c3_123 = arith.constant 3 : index
    %c0_124 = arith.constant 0 : index
    %c0_125 = arith.constant 0 : index
    %122 = vector.load %arg3[%c3_123, %c0_124, %c0_125] : memref<10x2x128xf32, #tpu.memory_space<vmem>>, vector<1x1x128xf32>
    %123 = vector.shape_cast %122 : vector<1x1x128xf32> to vector<1x128xf32>
    %124 = vector.broadcast %123 : vector<1x128xf32> to vector<16x128xf32>
    %125 = arith.mulf %121, %124 : vector<16x128xf32>
    %c3_126 = arith.constant 3 : index
    %c1_127 = arith.constant 1 : index
    %c0_128 = arith.constant 0 : index
    %126 = vector.load %arg3[%c3_126, %c1_127, %c0_128] : memref<10x2x128xf32, #tpu.memory_space<vmem>>, vector<1x1x128xf32>
    %127 = vector.shape_cast %126 : vector<1x1x128xf32> to vector<1x128xf32>
    %128 = vector.broadcast %127 : vector<1x128xf32> to vector<16x128xf32>
    %129 = arith.addf %125, %128 : vector<16x128xf32>
    %cst_129 = arith.constant 0.000000e+00 : f32
    %130 = vector.broadcast %cst_129 : f32 to vector<16x128xf32>
    %131 = arith.cmpf oge, %129, %130 : vector<16x128xf32>
    %cst_130 = arith.constant 0.00999999977 : f32
    %132 = vector.broadcast %cst_130 : f32 to vector<16x128xf32>
    %133 = arith.mulf %132, %129 : vector<16x128xf32>
    %134 = arith.select %131, %129, %133 : vector<16x128xi1>, vector<16x128xf32>
    %c1_131 = arith.constant 1 : index
    %c0_132 = arith.constant 0 : index
    %135 = vector.load %arg8[%c1_131, %c0_132] : memref<18x128xf32, #tpu.memory_space<vmem>>, vector<16x128xf32>
    tpu.vector_store %arg8[%c1_131, %c0_132], %134 {strides = array<i32>} : memref<18x128xf32, #tpu.memory_space<vmem>>, vector<16x128xf32>,
    %c0_133 = arith.constant 0 : index
    %c0_134 = arith.constant 0 : index
    %136 = vector.load %arg8[%c0_133, %c0_134] : memref<18x128xf32, #tpu.memory_space<vmem>>, vector<16x128xf32>
    %137 = arith.truncf %136 : vector<16x128xf32> to vector<16x128xbf16>
    %c4 = arith.constant 4 : index
    %c0_135 = arith.constant 0 : index
    %c0_136 = arith.constant 0 : index
    %c0_137 = arith.constant 0 : index
    %138 = vector.load %arg2[%c4, %c0_135, %c0_136, %c0_137] : memref<10x3x128x128xbf16, #tpu.memory_space<vmem>>, vector<1x1x128x128xbf16>
    %139 = vector.shape_cast %138 : vector<1x1x128x128xbf16> to vector<128x128xbf16>
    %cst_138 = arith.constant dense<0.000000e+00> : vector<16x128xf32>
    %140 = tpu.matmul %137, %139, %cst_138 {dimension_numbers = #tpu.dot_dimension_numbers<[1], [0], [0], [1], [0, 0, 1, 1], [], []>} : vector<16x128xbf16>, vector<128x128xbf16>, vector<16x128xf32> -> vector<16x128xf32>
    %c1_139 = arith.constant 1 : index
    %c0_140 = arith.constant 0 : index
    %141 = vector.load %arg8[%c1_139, %c0_140] : memref<18x128xf32, #tpu.memory_space<vmem>>, vector<16x128xf32>
    %142 = arith.truncf %141 : vector<16x128xf32> to vector<16x128xbf16>
    %c4_141 = arith.constant 4 : index
    %c1_142 = arith.constant 1 : index
    %c0_143 = arith.constant 0 : index
    %c0_144 = arith.constant 0 : index
    %143 = vector.load %arg2[%c4_141, %c1_142, %c0_143, %c0_144] : memref<10x3x128x128xbf16, #tpu.memory_space<vmem>>, vector<1x1x128x128xbf16>
    %144 = vector.shape_cast %143 : vector<1x1x128x128xbf16> to vector<128x128xbf16>
    %cst_145 = arith.constant dense<0.000000e+00> : vector<16x128xf32>
    %145 = tpu.matmul %142, %144, %cst_145 {dimension_numbers = #tpu.dot_dimension_numbers<[1], [0], [0], [1], [0, 0, 1, 1], [], []>} : vector<16x128xbf16>, vector<128x128xbf16>, vector<16x128xf32> -> vector<16x128xf32>
    %146 = arith.addf %140, %145 : vector<16x128xf32>
    %c2_146 = arith.constant 2 : index
    %c0_147 = arith.constant 0 : index
    %147 = vector.load %arg8[%c2_146, %c0_147] : memref<18x128xf32, #tpu.memory_space<vmem>>, vector<16x128xf32>
    %148 = arith.truncf %147 : vector<16x128xf32> to vector<16x128xbf16>
    %c4_148 = arith.constant 4 : index
    %c2_149 = arith.constant 2 : index
    %c0_150 = arith.constant 0 : index
    %c0_151 = arith.constant 0 : index
    %149 = vector.load %arg2[%c4_148, %c2_149, %c0_150, %c0_151] : memref<10x3x128x128xbf16, #tpu.memory_space<vmem>>, vector<1x1x128x128xbf16>
    %150 = vector.shape_cast %149 : vector<1x1x128x128xbf16> to vector<128x128xbf16>
    %cst_152 = arith.constant dense<0.000000e+00> : vector<16x128xf32>
    %151 = tpu.matmul %148, %150, %cst_152 {dimension_numbers = #tpu.dot_dimension_numbers<[1], [0], [0], [1], [0, 0, 1, 1], [], []>} : vector<16x128xbf16>, vector<128x128xbf16>, vector<16x128xf32> -> vector<16x128xf32>
    %152 = arith.addf %146, %151 : vector<16x128xf32>
    %c4_153 = arith.constant 4 : index
    %c0_154 = arith.constant 0 : index
    %c0_155 = arith.constant 0 : index
    %153 = vector.load %arg3[%c4_153, %c0_154, %c0_155] : memref<10x2x128xf32, #tpu.memory_space<vmem>>, vector<1x1x128xf32>
    %154 = vector.shape_cast %153 : vector<1x1x128xf32> to vector<1x128xf32>
    %155 = vector.broadcast %154 : vector<1x128xf32> to vector<16x128xf32>
    %156 = arith.mulf %152, %155 : vector<16x128xf32>
    %c4_156 = arith.constant 4 : index
    %c1_157 = arith.constant 1 : index
    %c0_158 = arith.constant 0 : index
    %157 = vector.load %arg3[%c4_156, %c1_157, %c0_158] : memref<10x2x128xf32, #tpu.memory_space<vmem>>, vector<1x1x128xf32>
    %158 = vector.shape_cast %157 : vector<1x1x128xf32> to vector<1x128xf32>
    %159 = vector.broadcast %158 : vector<1x128xf32> to vector<16x128xf32>
    %160 = arith.addf %156, %159 : vector<16x128xf32>
    %cst_159 = arith.constant 0.000000e+00 : f32
    %161 = vector.broadcast %cst_159 : f32 to vector<16x128xf32>
    %162 = arith.cmpf oge, %160, %161 : vector<16x128xf32>
    %cst_160 = arith.constant 0.00999999977 : f32
    %163 = vector.broadcast %cst_160 : f32 to vector<16x128xf32>
    %164 = arith.mulf %163, %160 : vector<16x128xf32>
    %165 = arith.select %162, %160, %164 : vector<16x128xi1>, vector<16x128xf32>
    %c1_161 = arith.constant 1 : index
    %c0_162 = arith.constant 0 : index
    %166 = vector.load %arg8[%c1_161, %c0_162] : memref<18x128xf32, #tpu.memory_space<vmem>>, vector<16x128xf32>
    tpu.vector_store %arg8[%c1_161, %c0_162], %165 {strides = array<i32>} : memref<18x128xf32, #tpu.memory_space<vmem>>, vector<16x128xf32>,
    %c0_163 = arith.constant 0 : index
    %c0_164 = arith.constant 0 : index
    %167 = vector.load %arg8[%c0_163, %c0_164] : memref<18x128xf32, #tpu.memory_space<vmem>>, vector<16x128xf32>
    %168 = arith.truncf %167 : vector<16x128xf32> to vector<16x128xbf16>
    %c5 = arith.constant 5 : index
    %c0_165 = arith.constant 0 : index
    %c0_166 = arith.constant 0 : index
    %c0_167 = arith.constant 0 : index
    %169 = vector.load %arg2[%c5, %c0_165, %c0_166, %c0_167] : memref<10x3x128x128xbf16, #tpu.memory_space<vmem>>, vector<1x1x128x128xbf16>
    %170 = vector.shape_cast %169 : vector<1x1x128x128xbf16> to vector<128x128xbf16>
    %cst_168 = arith.constant dense<0.000000e+00> : vector<16x128xf32>
    %171 = tpu.matmul %168, %170, %cst_168 {dimension_numbers = #tpu.dot_dimension_numbers<[1], [0], [0], [1], [0, 0, 1, 1], [], []>} : vector<16x128xbf16>, vector<128x128xbf16>, vector<16x128xf32> -> vector<16x128xf32>
    %c1_169 = arith.constant 1 : index
    %c0_170 = arith.constant 0 : index
    %172 = vector.load %arg8[%c1_169, %c0_170] : memref<18x128xf32, #tpu.memory_space<vmem>>, vector<16x128xf32>
    %173 = arith.truncf %172 : vector<16x128xf32> to vector<16x128xbf16>
    %c5_171 = arith.constant 5 : index
    %c1_172 = arith.constant 1 : index
    %c0_173 = arith.constant 0 : index
    %c0_174 = arith.constant 0 : index
    %174 = vector.load %arg2[%c5_171, %c1_172, %c0_173, %c0_174] : memref<10x3x128x128xbf16, #tpu.memory_space<vmem>>, vector<1x1x128x128xbf16>
    %175 = vector.shape_cast %174 : vector<1x1x128x128xbf16> to vector<128x128xbf16>
    %cst_175 = arith.constant dense<0.000000e+00> : vector<16x128xf32>
    %176 = tpu.matmul %173, %175, %cst_175 {dimension_numbers = #tpu.dot_dimension_numbers<[1], [0], [0], [1], [0, 0, 1, 1], [], []>} : vector<16x128xbf16>, vector<128x128xbf16>, vector<16x128xf32> -> vector<16x128xf32>
    %177 = arith.addf %171, %176 : vector<16x128xf32>
    %c2_176 = arith.constant 2 : index
    %c0_177 = arith.constant 0 : index
    %178 = vector.load %arg8[%c2_176, %c0_177] : memref<18x128xf32, #tpu.memory_space<vmem>>, vector<16x128xf32>
    %179 = arith.truncf %178 : vector<16x128xf32> to vector<16x128xbf16>
    %c5_178 = arith.constant 5 : index
    %c2_179 = arith.constant 2 : index
    %c0_180 = arith.constant 0 : index
    %c0_181 = arith.constant 0 : index
    %180 = vector.load %arg2[%c5_178, %c2_179, %c0_180, %c0_181] : memref<10x3x128x128xbf16, #tpu.memory_space<vmem>>, vector<1x1x128x128xbf16>
    %181 = vector.shape_cast %180 : vector<1x1x128x128xbf16> to vector<128x128xbf16>
    %cst_182 = arith.constant dense<0.000000e+00> : vector<16x128xf32>
    %182 = tpu.matmul %179, %181, %cst_182 {dimension_numbers = #tpu.dot_dimension_numbers<[1], [0], [0], [1], [0, 0, 1, 1], [], []>} : vector<16x128xbf16>, vector<128x128xbf16>, vector<16x128xf32> -> vector<16x128xf32>
    %183 = arith.addf %177, %182 : vector<16x128xf32>
    %c5_183 = arith.constant 5 : index
    %c0_184 = arith.constant 0 : index
    %c0_185 = arith.constant 0 : index
    %184 = vector.load %arg3[%c5_183, %c0_184, %c0_185] : memref<10x2x128xf32, #tpu.memory_space<vmem>>, vector<1x1x128xf32>
    %185 = vector.shape_cast %184 : vector<1x1x128xf32> to vector<1x128xf32>
    %186 = vector.broadcast %185 : vector<1x128xf32> to vector<16x128xf32>
    %187 = arith.mulf %183, %186 : vector<16x128xf32>
    %c5_186 = arith.constant 5 : index
    %c1_187 = arith.constant 1 : index
    %c0_188 = arith.constant 0 : index
    %188 = vector.load %arg3[%c5_186, %c1_187, %c0_188] : memref<10x2x128xf32, #tpu.memory_space<vmem>>, vector<1x1x128xf32>
    %189 = vector.shape_cast %188 : vector<1x1x128xf32> to vector<1x128xf32>
    %190 = vector.broadcast %189 : vector<1x128xf32> to vector<16x128xf32>
    %191 = arith.addf %187, %190 : vector<16x128xf32>
    %cst_189 = arith.constant 0.000000e+00 : f32
    %192 = vector.broadcast %cst_189 : f32 to vector<16x128xf32>
    %193 = arith.cmpf oge, %191, %192 : vector<16x128xf32>
    %cst_190 = arith.constant 0.00999999977 : f32
    %194 = vector.broadcast %cst_190 : f32 to vector<16x128xf32>
    %195 = arith.mulf %194, %191 : vector<16x128xf32>
    %196 = arith.select %193, %191, %195 : vector<16x128xi1>, vector<16x128xf32>
    %c1_191 = arith.constant 1 : index
    %c0_192 = arith.constant 0 : index
    %197 = vector.load %arg8[%c1_191, %c0_192] : memref<18x128xf32, #tpu.memory_space<vmem>>, vector<16x128xf32>
    tpu.vector_store %arg8[%c1_191, %c0_192], %196 {strides = array<i32>} : memref<18x128xf32, #tpu.memory_space<vmem>>, vector<16x128xf32>,
    %c0_193 = arith.constant 0 : index
    %c0_194 = arith.constant 0 : index
    %198 = vector.load %arg8[%c0_193, %c0_194] : memref<18x128xf32, #tpu.memory_space<vmem>>, vector<16x128xf32>
    %199 = arith.truncf %198 : vector<16x128xf32> to vector<16x128xbf16>
    %c6 = arith.constant 6 : index
    %c0_195 = arith.constant 0 : index
    %c0_196 = arith.constant 0 : index
    %c0_197 = arith.constant 0 : index
    %200 = vector.load %arg2[%c6, %c0_195, %c0_196, %c0_197] : memref<10x3x128x128xbf16, #tpu.memory_space<vmem>>, vector<1x1x128x128xbf16>
    %201 = vector.shape_cast %200 : vector<1x1x128x128xbf16> to vector<128x128xbf16>
    %cst_198 = arith.constant dense<0.000000e+00> : vector<16x128xf32>
    %202 = tpu.matmul %199, %201, %cst_198 {dimension_numbers = #tpu.dot_dimension_numbers<[1], [0], [0], [1], [0, 0, 1, 1], [], []>} : vector<16x128xbf16>, vector<128x128xbf16>, vector<16x128xf32> -> vector<16x128xf32>
    %c1_199 = arith.constant 1 : index
    %c0_200 = arith.constant 0 : index
    %203 = vector.load %arg8[%c1_199, %c0_200] : memref<18x128xf32, #tpu.memory_space<vmem>>, vector<16x128xf32>
    %204 = arith.truncf %203 : vector<16x128xf32> to vector<16x128xbf16>
    %c6_201 = arith.constant 6 : index
    %c1_202 = arith.constant 1 : index
    %c0_203 = arith.constant 0 : index
    %c0_204 = arith.constant 0 : index
    %205 = vector.load %arg2[%c6_201, %c1_202, %c0_203, %c0_204] : memref<10x3x128x128xbf16, #tpu.memory_space<vmem>>, vector<1x1x128x128xbf16>
    %206 = vector.shape_cast %205 : vector<1x1x128x128xbf16> to vector<128x128xbf16>
    %cst_205 = arith.constant dense<0.000000e+00> : vector<16x128xf32>
    %207 = tpu.matmul %204, %206, %cst_205 {dimension_numbers = #tpu.dot_dimension_numbers<[1], [0], [0], [1], [0, 0, 1, 1], [], []>} : vector<16x128xbf16>, vector<128x128xbf16>, vector<16x128xf32> -> vector<16x128xf32>
    %208 = arith.addf %202, %207 : vector<16x128xf32>
    %c2_206 = arith.constant 2 : index
    %c0_207 = arith.constant 0 : index
    %209 = vector.load %arg8[%c2_206, %c0_207] : memref<18x128xf32, #tpu.memory_space<vmem>>, vector<16x128xf32>
    %210 = arith.truncf %209 : vector<16x128xf32> to vector<16x128xbf16>
    %c6_208 = arith.constant 6 : index
    %c2_209 = arith.constant 2 : index
    %c0_210 = arith.constant 0 : index
    %c0_211 = arith.constant 0 : index
    %211 = vector.load %arg2[%c6_208, %c2_209, %c0_210, %c0_211] : memref<10x3x128x128xbf16, #tpu.memory_space<vmem>>, vector<1x1x128x128xbf16>
    %212 = vector.shape_cast %211 : vector<1x1x128x128xbf16> to vector<128x128xbf16>
    %cst_212 = arith.constant dense<0.000000e+00> : vector<16x128xf32>
    %213 = tpu.matmul %210, %212, %cst_212 {dimension_numbers = #tpu.dot_dimension_numbers<[1], [0], [0], [1], [0, 0, 1, 1], [], []>} : vector<16x128xbf16>, vector<128x128xbf16>, vector<16x128xf32> -> vector<16x128xf32>
    %214 = arith.addf %208, %213 : vector<16x128xf32>
    %c6_213 = arith.constant 6 : index
    %c0_214 = arith.constant 0 : index
    %c0_215 = arith.constant 0 : index
    %215 = vector.load %arg3[%c6_213, %c0_214, %c0_215] : memref<10x2x128xf32, #tpu.memory_space<vmem>>, vector<1x1x128xf32>
    %216 = vector.shape_cast %215 : vector<1x1x128xf32> to vector<1x128xf32>
    %217 = vector.broadcast %216 : vector<1x128xf32> to vector<16x128xf32>
    %218 = arith.mulf %214, %217 : vector<16x128xf32>
    %c6_216 = arith.constant 6 : index
    %c1_217 = arith.constant 1 : index
    %c0_218 = arith.constant 0 : index
    %219 = vector.load %arg3[%c6_216, %c1_217, %c0_218] : memref<10x2x128xf32, #tpu.memory_space<vmem>>, vector<1x1x128xf32>
    %220 = vector.shape_cast %219 : vector<1x1x128xf32> to vector<1x128xf32>
    %221 = vector.broadcast %220 : vector<1x128xf32> to vector<16x128xf32>
    %222 = arith.addf %218, %221 : vector<16x128xf32>
    %cst_219 = arith.constant 0.000000e+00 : f32
    %223 = vector.broadcast %cst_219 : f32 to vector<16x128xf32>
    %224 = arith.cmpf oge, %222, %223 : vector<16x128xf32>
    %cst_220 = arith.constant 0.00999999977 : f32
    %225 = vector.broadcast %cst_220 : f32 to vector<16x128xf32>
    %226 = arith.mulf %225, %222 : vector<16x128xf32>
    %227 = arith.select %224, %222, %226 : vector<16x128xi1>, vector<16x128xf32>
    %c1_221 = arith.constant 1 : index
    %c0_222 = arith.constant 0 : index
    %228 = vector.load %arg8[%c1_221, %c0_222] : memref<18x128xf32, #tpu.memory_space<vmem>>, vector<16x128xf32>
    tpu.vector_store %arg8[%c1_221, %c0_222], %227 {strides = array<i32>} : memref<18x128xf32, #tpu.memory_space<vmem>>, vector<16x128xf32>,
    %c0_223 = arith.constant 0 : index
    %c0_224 = arith.constant 0 : index
    %229 = vector.load %arg8[%c0_223, %c0_224] : memref<18x128xf32, #tpu.memory_space<vmem>>, vector<16x128xf32>
    %230 = arith.truncf %229 : vector<16x128xf32> to vector<16x128xbf16>
    %c7 = arith.constant 7 : index
    %c0_225 = arith.constant 0 : index
    %c0_226 = arith.constant 0 : index
    %c0_227 = arith.constant 0 : index
    %231 = vector.load %arg2[%c7, %c0_225, %c0_226, %c0_227] : memref<10x3x128x128xbf16, #tpu.memory_space<vmem>>, vector<1x1x128x128xbf16>
    %232 = vector.shape_cast %231 : vector<1x1x128x128xbf16> to vector<128x128xbf16>
    %cst_228 = arith.constant dense<0.000000e+00> : vector<16x128xf32>
    %233 = tpu.matmul %230, %232, %cst_228 {dimension_numbers = #tpu.dot_dimension_numbers<[1], [0], [0], [1], [0, 0, 1, 1], [], []>} : vector<16x128xbf16>, vector<128x128xbf16>, vector<16x128xf32> -> vector<16x128xf32>
    %c1_229 = arith.constant 1 : index
    %c0_230 = arith.constant 0 : index
    %234 = vector.load %arg8[%c1_229, %c0_230] : memref<18x128xf32, #tpu.memory_space<vmem>>, vector<16x128xf32>
    %235 = arith.truncf %234 : vector<16x128xf32> to vector<16x128xbf16>
    %c7_231 = arith.constant 7 : index
    %c1_232 = arith.constant 1 : index
    %c0_233 = arith.constant 0 : index
    %c0_234 = arith.constant 0 : index
    %236 = vector.load %arg2[%c7_231, %c1_232, %c0_233, %c0_234] : memref<10x3x128x128xbf16, #tpu.memory_space<vmem>>, vector<1x1x128x128xbf16>
    %237 = vector.shape_cast %236 : vector<1x1x128x128xbf16> to vector<128x128xbf16>
    %cst_235 = arith.constant dense<0.000000e+00> : vector<16x128xf32>
    %238 = tpu.matmul %235, %237, %cst_235 {dimension_numbers = #tpu.dot_dimension_numbers<[1], [0], [0], [1], [0, 0, 1, 1], [], []>} : vector<16x128xbf16>, vector<128x128xbf16>, vector<16x128xf32> -> vector<16x128xf32>
    %239 = arith.addf %233, %238 : vector<16x128xf32>
    %c2_236 = arith.constant 2 : index
    %c0_237 = arith.constant 0 : index
    %240 = vector.load %arg8[%c2_236, %c0_237] : memref<18x128xf32, #tpu.memory_space<vmem>>, vector<16x128xf32>
    %241 = arith.truncf %240 : vector<16x128xf32> to vector<16x128xbf16>
    %c7_238 = arith.constant 7 : index
    %c2_239 = arith.constant 2 : index
    %c0_240 = arith.constant 0 : index
    %c0_241 = arith.constant 0 : index
    %242 = vector.load %arg2[%c7_238, %c2_239, %c0_240, %c0_241] : memref<10x3x128x128xbf16, #tpu.memory_space<vmem>>, vector<1x1x128x128xbf16>
    %243 = vector.shape_cast %242 : vector<1x1x128x128xbf16> to vector<128x128xbf16>
    %cst_242 = arith.constant dense<0.000000e+00> : vector<16x128xf32>
    %244 = tpu.matmul %241, %243, %cst_242 {dimension_numbers = #tpu.dot_dimension_numbers<[1], [0], [0], [1], [0, 0, 1, 1], [], []>} : vector<16x128xbf16>, vector<128x128xbf16>, vector<16x128xf32> -> vector<16x128xf32>
    %245 = arith.addf %239, %244 : vector<16x128xf32>
    %c7_243 = arith.constant 7 : index
    %c0_244 = arith.constant 0 : index
    %c0_245 = arith.constant 0 : index
    %246 = vector.load %arg3[%c7_243, %c0_244, %c0_245] : memref<10x2x128xf32, #tpu.memory_space<vmem>>, vector<1x1x128xf32>
    %247 = vector.shape_cast %246 : vector<1x1x128xf32> to vector<1x128xf32>
    %248 = vector.broadcast %247 : vector<1x128xf32> to vector<16x128xf32>
    %249 = arith.mulf %245, %248 : vector<16x128xf32>
    %c7_246 = arith.constant 7 : index
    %c1_247 = arith.constant 1 : index
    %c0_248 = arith.constant 0 : index
    %250 = vector.load %arg3[%c7_246, %c1_247, %c0_248] : memref<10x2x128xf32, #tpu.memory_space<vmem>>, vector<1x1x128xf32>
    %251 = vector.shape_cast %250 : vector<1x1x128xf32> to vector<1x128xf32>
    %252 = vector.broadcast %251 : vector<1x128xf32> to vector<16x128xf32>
    %253 = arith.addf %249, %252 : vector<16x128xf32>
    %cst_249 = arith.constant 0.000000e+00 : f32
    %254 = vector.broadcast %cst_249 : f32 to vector<16x128xf32>
    %255 = arith.cmpf oge, %253, %254 : vector<16x128xf32>
    %cst_250 = arith.constant 0.00999999977 : f32
    %256 = vector.broadcast %cst_250 : f32 to vector<16x128xf32>
    %257 = arith.mulf %256, %253 : vector<16x128xf32>
    %258 = arith.select %255, %253, %257 : vector<16x128xi1>, vector<16x128xf32>
    %c1_251 = arith.constant 1 : index
    %c0_252 = arith.constant 0 : index
    %259 = vector.load %arg8[%c1_251, %c0_252] : memref<18x128xf32, #tpu.memory_space<vmem>>, vector<16x128xf32>
    tpu.vector_store %arg8[%c1_251, %c0_252], %258 {strides = array<i32>} : memref<18x128xf32, #tpu.memory_space<vmem>>, vector<16x128xf32>,
    %c0_253 = arith.constant 0 : index
    %c0_254 = arith.constant 0 : index
    %260 = vector.load %arg8[%c0_253, %c0_254] : memref<18x128xf32, #tpu.memory_space<vmem>>, vector<16x128xf32>
    %261 = arith.truncf %260 : vector<16x128xf32> to vector<16x128xbf16>
    %c8 = arith.constant 8 : index
    %c0_255 = arith.constant 0 : index
    %c0_256 = arith.constant 0 : index
    %c0_257 = arith.constant 0 : index
    %262 = vector.load %arg2[%c8, %c0_255, %c0_256, %c0_257] : memref<10x3x128x128xbf16, #tpu.memory_space<vmem>>, vector<1x1x128x128xbf16>
    %263 = vector.shape_cast %262 : vector<1x1x128x128xbf16> to vector<128x128xbf16>
    %cst_258 = arith.constant dense<0.000000e+00> : vector<16x128xf32>
    %264 = tpu.matmul %261, %263, %cst_258 {dimension_numbers = #tpu.dot_dimension_numbers<[1], [0], [0], [1], [0, 0, 1, 1], [], []>} : vector<16x128xbf16>, vector<128x128xbf16>, vector<16x128xf32> -> vector<16x128xf32>
    %c1_259 = arith.constant 1 : index
    %c0_260 = arith.constant 0 : index
    %265 = vector.load %arg8[%c1_259, %c0_260] : memref<18x128xf32, #tpu.memory_space<vmem>>, vector<16x128xf32>
    %266 = arith.truncf %265 : vector<16x128xf32> to vector<16x128xbf16>
    %c8_261 = arith.constant 8 : index
    %c1_262 = arith.constant 1 : index
    %c0_263 = arith.constant 0 : index
    %c0_264 = arith.constant 0 : index
    %267 = vector.load %arg2[%c8_261, %c1_262, %c0_263, %c0_264] : memref<10x3x128x128xbf16, #tpu.memory_space<vmem>>, vector<1x1x128x128xbf16>
    %268 = vector.shape_cast %267 : vector<1x1x128x128xbf16> to vector<128x128xbf16>
    %cst_265 = arith.constant dense<0.000000e+00> : vector<16x128xf32>
    %269 = tpu.matmul %266, %268, %cst_265 {dimension_numbers = #tpu.dot_dimension_numbers<[1], [0], [0], [1], [0, 0, 1, 1], [], []>} : vector<16x128xbf16>, vector<128x128xbf16>, vector<16x128xf32> -> vector<16x128xf32>
    %270 = arith.addf %264, %269 : vector<16x128xf32>
    %c2_266 = arith.constant 2 : index
    %c0_267 = arith.constant 0 : index
    %271 = vector.load %arg8[%c2_266, %c0_267] : memref<18x128xf32, #tpu.memory_space<vmem>>, vector<16x128xf32>
    %272 = arith.truncf %271 : vector<16x128xf32> to vector<16x128xbf16>
    %c8_268 = arith.constant 8 : index
    %c2_269 = arith.constant 2 : index
    %c0_270 = arith.constant 0 : index
    %c0_271 = arith.constant 0 : index
    %273 = vector.load %arg2[%c8_268, %c2_269, %c0_270, %c0_271] : memref<10x3x128x128xbf16, #tpu.memory_space<vmem>>, vector<1x1x128x128xbf16>
    %274 = vector.shape_cast %273 : vector<1x1x128x128xbf16> to vector<128x128xbf16>
    %cst_272 = arith.constant dense<0.000000e+00> : vector<16x128xf32>
    %275 = tpu.matmul %272, %274, %cst_272 {dimension_numbers = #tpu.dot_dimension_numbers<[1], [0], [0], [1], [0, 0, 1, 1], [], []>} : vector<16x128xbf16>, vector<128x128xbf16>, vector<16x128xf32> -> vector<16x128xf32>
    %276 = arith.addf %270, %275 : vector<16x128xf32>
    %c8_273 = arith.constant 8 : index
    %c0_274 = arith.constant 0 : index
    %c0_275 = arith.constant 0 : index
    %277 = vector.load %arg3[%c8_273, %c0_274, %c0_275] : memref<10x2x128xf32, #tpu.memory_space<vmem>>, vector<1x1x128xf32>
    %278 = vector.shape_cast %277 : vector<1x1x128xf32> to vector<1x128xf32>
    %279 = vector.broadcast %278 : vector<1x128xf32> to vector<16x128xf32>
    %280 = arith.mulf %276, %279 : vector<16x128xf32>
    %c8_276 = arith.constant 8 : index
    %c1_277 = arith.constant 1 : index
    %c0_278 = arith.constant 0 : index
    %281 = vector.load %arg3[%c8_276, %c1_277, %c0_278] : memref<10x2x128xf32, #tpu.memory_space<vmem>>, vector<1x1x128xf32>
    %282 = vector.shape_cast %281 : vector<1x1x128xf32> to vector<1x128xf32>
    %283 = vector.broadcast %282 : vector<1x128xf32> to vector<16x128xf32>
    %284 = arith.addf %280, %283 : vector<16x128xf32>
    %cst_279 = arith.constant 0.000000e+00 : f32
    %285 = vector.broadcast %cst_279 : f32 to vector<16x128xf32>
    %286 = arith.cmpf oge, %284, %285 : vector<16x128xf32>
    %cst_280 = arith.constant 0.00999999977 : f32
    %287 = vector.broadcast %cst_280 : f32 to vector<16x128xf32>
    %288 = arith.mulf %287, %284 : vector<16x128xf32>
    %289 = arith.select %286, %284, %288 : vector<16x128xi1>, vector<16x128xf32>
    %c1_281 = arith.constant 1 : index
    %c0_282 = arith.constant 0 : index
    %290 = vector.load %arg8[%c1_281, %c0_282] : memref<18x128xf32, #tpu.memory_space<vmem>>, vector<16x128xf32>
    tpu.vector_store %arg8[%c1_281, %c0_282], %289 {strides = array<i32>} : memref<18x128xf32, #tpu.memory_space<vmem>>, vector<16x128xf32>,
    %c0_283 = arith.constant 0 : index
    %c0_284 = arith.constant 0 : index
    %291 = vector.load %arg8[%c0_283, %c0_284] : memref<18x128xf32, #tpu.memory_space<vmem>>, vector<16x128xf32>
    %292 = arith.truncf %291 : vector<16x128xf32> to vector<16x128xbf16>
    %c9 = arith.constant 9 : index
    %c0_285 = arith.constant 0 : index
    %c0_286 = arith.constant 0 : index
    %c0_287 = arith.constant 0 : index
    %293 = vector.load %arg2[%c9, %c0_285, %c0_286, %c0_287] : memref<10x3x128x128xbf16, #tpu.memory_space<vmem>>, vector<1x1x128x128xbf16>
    %294 = vector.shape_cast %293 : vector<1x1x128x128xbf16> to vector<128x128xbf16>
    %cst_288 = arith.constant dense<0.000000e+00> : vector<16x128xf32>
    %295 = tpu.matmul %292, %294, %cst_288 {dimension_numbers = #tpu.dot_dimension_numbers<[1], [0], [0], [1], [0, 0, 1, 1], [], []>} : vector<16x128xbf16>, vector<128x128xbf16>, vector<16x128xf32> -> vector<16x128xf32>
    %c1_289 = arith.constant 1 : index
    %c0_290 = arith.constant 0 : index
    %296 = vector.load %arg8[%c1_289, %c0_290] : memref<18x128xf32, #tpu.memory_space<vmem>>, vector<16x128xf32>
    %297 = arith.truncf %296 : vector<16x128xf32> to vector<16x128xbf16>
    %c9_291 = arith.constant 9 : index
    %c1_292 = arith.constant 1 : index
    %c0_293 = arith.constant 0 : index
    %c0_294 = arith.constant 0 : index
    %298 = vector.load %arg2[%c9_291, %c1_292, %c0_293, %c0_294] : memref<10x3x128x128xbf16, #tpu.memory_space<vmem>>, vector<1x1x128x128xbf16>
    %299 = vector.shape_cast %298 : vector<1x1x128x128xbf16> to vector<128x128xbf16>
    %cst_295 = arith.constant dense<0.000000e+00> : vector<16x128xf32>
    %300 = tpu.matmul %297, %299, %cst_295 {dimension_numbers = #tpu.dot_dimension_numbers<[1], [0], [0], [1], [0, 0, 1, 1], [], []>} : vector<16x128xbf16>, vector<128x128xbf16>, vector<16x128xf32> -> vector<16x128xf32>
    %301 = arith.addf %295, %300 : vector<16x128xf32>
    %c2_296 = arith.constant 2 : index
    %c0_297 = arith.constant 0 : index
    %302 = vector.load %arg8[%c2_296, %c0_297] : memref<18x128xf32, #tpu.memory_space<vmem>>, vector<16x128xf32>
    %303 = arith.truncf %302 : vector<16x128xf32> to vector<16x128xbf16>
    %c9_298 = arith.constant 9 : index
    %c2_299 = arith.constant 2 : index
    %c0_300 = arith.constant 0 : index
    %c0_301 = arith.constant 0 : index
    %304 = vector.load %arg2[%c9_298, %c2_299, %c0_300, %c0_301] : memref<10x3x128x128xbf16, #tpu.memory_space<vmem>>, vector<1x1x128x128xbf16>
    %305 = vector.shape_cast %304 : vector<1x1x128x128xbf16> to vector<128x128xbf16>
    %cst_302 = arith.constant dense<0.000000e+00> : vector<16x128xf32>
    %306 = tpu.matmul %303, %305, %cst_302 {dimension_numbers = #tpu.dot_dimension_numbers<[1], [0], [0], [1], [0, 0, 1, 1], [], []>} : vector<16x128xbf16>, vector<128x128xbf16>, vector<16x128xf32> -> vector<16x128xf32>
    %307 = arith.addf %301, %306 : vector<16x128xf32>
    %c9_303 = arith.constant 9 : index
    %c0_304 = arith.constant 0 : index
    %c0_305 = arith.constant 0 : index
    %308 = vector.load %arg3[%c9_303, %c0_304, %c0_305] : memref<10x2x128xf32, #tpu.memory_space<vmem>>, vector<1x1x128xf32>
    %309 = vector.shape_cast %308 : vector<1x1x128xf32> to vector<1x128xf32>
    %310 = vector.broadcast %309 : vector<1x128xf32> to vector<16x128xf32>
    %311 = arith.mulf %307, %310 : vector<16x128xf32>
    %c9_306 = arith.constant 9 : index
    %c1_307 = arith.constant 1 : index
    %c0_308 = arith.constant 0 : index
    %312 = vector.load %arg3[%c9_306, %c1_307, %c0_308] : memref<10x2x128xf32, #tpu.memory_space<vmem>>, vector<1x1x128xf32>
    %313 = vector.shape_cast %312 : vector<1x1x128xf32> to vector<1x128xf32>
    %314 = vector.broadcast %313 : vector<1x128xf32> to vector<16x128xf32>
    %315 = arith.addf %311, %314 : vector<16x128xf32>
    %316 = arith.addf %315, %10 : vector<16x128xf32>
    %cst_309 = arith.constant 0.000000e+00 : f32
    %317 = vector.broadcast %cst_309 : f32 to vector<16x128xf32>
    %318 = arith.cmpf oge, %316, %317 : vector<16x128xf32>
    %cst_310 = arith.constant 0.00999999977 : f32
    %319 = vector.broadcast %cst_310 : f32 to vector<16x128xf32>
    %320 = arith.mulf %319, %316 : vector<16x128xf32>
    %321 = arith.select %318, %316, %320 : vector<16x128xi1>, vector<16x128xf32>
    %c0_311 = arith.constant 0 : index
    %c0_312 = arith.constant 0 : index
    %c0_313 = arith.constant 0 : index
    %322 = vector.load %arg6[%c0_311, %c0_312, %c0_313] : memref<2x128x64xf32, #tpu.memory_space<vmem>>, vector<1x128x64xf32>
    %323 = vector.shape_cast %322 : vector<1x128x64xf32> to vector<128x64xf32>
    %cst_314 = arith.constant dense<0.000000e+00> : vector<16x64xf32>
    %324 = tpu.matmul %321, %323, %cst_314 {dimension_numbers = #tpu.dot_dimension_numbers<[1], [0], [0], [1], [0, 0, 1, 1], [], []>} : vector<16x128xf32>, vector<128x64xf32>, vector<16x64xf32> -> vector<16x64xf32>
    %c1_315 = arith.constant 1 : index
    %c0_316 = arith.constant 0 : index
    %c0_317 = arith.constant 0 : index
    %325 = vector.load %arg6[%c1_315, %c0_316, %c0_317] : memref<2x128x64xf32, #tpu.memory_space<vmem>>, vector<1x128x64xf32>
    %326 = vector.shape_cast %325 : vector<1x128x64xf32> to vector<128x64xf32>
    %cst_318 = arith.constant dense<0.000000e+00> : vector<16x64xf32>
    %327 = tpu.matmul %321, %326, %cst_318 {dimension_numbers = #tpu.dot_dimension_numbers<[1], [0], [0], [1], [0, 0, 1, 1], [], []>} : vector<16x128xf32>, vector<128x64xf32>, vector<16x64xf32> -> vector<16x64xf32>
    %328 = arith.maximumf %324, %327 : vector<16x64xf32>
    %329 = vector.shape_cast %328 : vector<16x64xf32> to vector<8x2x64xf32>
    %cst_319 = arith.constant dense<0xFF800000> : vector<8x64xf32>
    %330 = vector.multi_reduction <maximumf>, %329, %cst_319 [1] : vector<8x2x64xf32> to vector<8x64xf32>
    %331 = vector.shape_cast %330 : vector<8x64xf32> to vector<1x8x64xf32>
    %c0_320 = arith.constant 0 : index
    %c0_321 = arith.constant 0 : index
    %c0_322 = arith.constant 0 : index
    %332 = vector.load %arg7[%c0_320, %c0_321, %c0_322] : memref<1x8x64xf32, #tpu.memory_space<vmem>>, vector<1x8x64xf32>
    tpu.vector_store %arg7[%c0_320, %c0_321, %c0_322], %331 {strides = array<i32>} : memref<1x8x64xf32, #tpu.memory_space<vmem>>, vector<1x8x64xf32>,
    return
  }
  func.func @transform_0(%arg0: i32) -> (i32, i32, i32) {
    %c0_i32 = arith.constant 0 : i32
    %c0_i32_0 = arith.constant 0 : i32
    %c0_i32_1 = arith.constant 0 : i32
    return %arg0, %c0_i32, %c0_i32_0 : i32, i32, i32
  }
  func.func @transform_1(%arg0: i32) -> (i32, i32, i32, i32) {
    %c0_i32 = arith.constant 0 : i32
    %c0_i32_0 = arith.constant 0 : i32
    %c0_i32_1 = arith.constant 0 : i32
    %c0_i32_2 = arith.constant 0 : i32
    %c0_i32_3 = arith.constant 0 : i32
    return %c0_i32, %c0_i32_0, %c0_i32_1, %c0_i32_2 : i32, i32, i32, i32
  }
  func.func @transform_2(%arg0: i32) -> (i32, i32, i32) {
    %c0_i32 = arith.constant 0 : i32
    %c0_i32_0 = arith.constant 0 : i32
    %c0_i32_1 = arith.constant 0 : i32
    %c0_i32_2 = arith.constant 0 : i32
    return %c0_i32, %c0_i32_0, %c0_i32_1 : i32, i32, i32
  }
  func.func @transform_3(%arg0: i32) -> (i32, i32) {
    %c0_i32 = arith.constant 0 : i32
    %c0_i32_0 = arith.constant 0 : i32
    %c0_i32_1 = arith.constant 0 : i32
    return %c0_i32, %c0_i32_0 : i32, i32
  }
  func.func @transform_4(%arg0: i32) -> (i32, i32) {
    %c0_i32 = arith.constant 0 : i32
    %c0_i32_0 = arith.constant 0 : i32
    %c0_i32_1 = arith.constant 0 : i32
    return %c0_i32, %c0_i32_0 : i32, i32
  }
  func.func @transform_5(%arg0: i32) -> (i32, i32, i32) {
    %c0_i32 = arith.constant 0 : i32
    %c0_i32_0 = arith.constant 0 : i32
    %c0_i32_1 = arith.constant 0 : i32
    %c0_i32_2 = arith.constant 0 : i32
    return %c0_i32, %c0_i32_0, %c0_i32_1 : i32, i32, i32
  }
  func.func @transform_6(%arg0: i32) -> (i32, i32, i32) {
    %c0_i32 = arith.constant 0 : i32
    %c0_i32_0 = arith.constant 0 : i32
    %c0_i32_1 = arith.constant 0 : i32
    return %arg0, %c0_i32, %c0_i32_0 : i32, i32, i32
  }
}

</mosaic_0001>

<bundles_post_ra>
// kernel: tpu_custom_call.1
= control target key start
LH: loop header
LB: loop body
LE: loop exit
PB: predicated region body
PF: predicated region fallthrough
CT: control target
= control target key end

     0   :  { %11 = vsyncpa [#allocation4], 0  ;;  %s6857_s0 = inlined_call_operand.vmem [shape: f32[2,16,128], index: 0, kind: input, shape index: {}]   ;;  %s6858_s1 = inlined_call_operand.hbm [shape: bf16[10,3,128,128], index: 1, kind: input, shape index: {}]   ;;  %s6859_s2 = inlined_call_operand.vmem [shape: f32[10,2,128], index: 2, kind: input, shape index: {}]   ;;  %s6860_s3 = inlined_call_operand.vmem [shape: bf16[128,128], index: 3, kind: input, shape index: {}]   ;;  %s6861_s4 = inlined_call_operand.vmem [shape: f32[1,128], index: 4, kind: input, shape index: {}]   ;;  %s6862_s5 = inlined_call_operand.vmem [shape: f32[2,128,64], index: 5, kind: input, shape index: {}]   ;;  %s6863_s6 = inlined_call_operand.hbm [shape: f32[2,8,64], index: 6, kind: output, shape index: {}]  }
   0x1   :  { %12 = vsyncpa [#allocation5], 0 }
   0x2   :  { %14 = vsyncpa [#allocation5 + $0x1], 0  ;;  %s6206_s21 = smov 0   ;;  %s6208_s22 = smov 0  }
   0x3   :  { %s6210_s23 = smov 0   ;;  %s6212_s24 = smov 0  }
   0x4 LB: > { %s6227_s25 = sadd.s32 4294967295, %s6162_s24   ;;  %s4299_s26 = sadd.s32 4294967294, %s6162_s24   ;;  %s6162_s24 = sphi %s6212_s24, %s6879_s24   ;;  %s6158_s23 = sphi %s6210_s23, %s6878_s23   ;;  %s6154_s22 = sphi %s6208_s22, %s6877_s22   ;;  %s6150_s21 = sphi %s6206_s21, %s6876_s21  }
   0x5   : > { %s6231_s27 = sadd.s32 1, %s6162_s24   ;;  %s158_s28 = sadd.s32 1, %s6158_s23 }
   0x6   : > { %s155_s29 = ssub.s32 %s6162_s24, %s6231_s27  ;;  %p168_p0 = scmp.ne.s32.totalorder %s6158_s23, %s6154_s22 }
   0x7   : > { %p156_p1 = scmp.eq.s32.totalorder %s155_s29, 0  ;;  %p169_p2 = scmp.eq.s32.totalorder %s6227_s25, 1 }
   0x8   : > { %p174_p3 = scmp.ne.s32.totalorder %s6154_s22, %s6150_s21  ;;  %p175_p4 = scmp.eq.s32.totalorder %s4299_s26, 1 }
   0x9   : > { %s6242_s30 = scalar_select %p156_p1, %s6158_s23, %s158_s28  }
   0xa   : > { %p6244_p5 = por %p169_p2, %p168_p0  ;;  %p6248_p6 = por %p175_p4, %p174_p3 }
   0xb   : > { %p4300_p7 = scmp.ge.s32.totalorder %s6162_s24, 1  ;;  %p182_p8 = scmp.lt.s32.totalorder %s6162_s24, 3 }
   0xc   : > { %s6867_s7 = scalar_select %p6244_p5, 1, 0 }
   0xd   : > { %s6868_s8 = scalar_select %p6248_p6, 1, 0 }
   0xe   : > { %p6864_p9 = scmp.eq.s32.totalorder %s6227_s25, 0  ;;  %p6255_p10 = pnand %p4300_p7, %p182_p8 }
   0xf   : > { %s6164_s10 = smov [#allocation3]   ;;  %s6068_s15 = scalar_lea.hbm %s6858_s1, 30720 }
  0x10   : > { %s6869_s9 = scalar_select %p6255_p10, 1, 0 }
  0x11   : > { %s194_s11 = sshll.u32 %s6164_s10, 4  ;;  %p5771_p11 = pneg %p6255_p10  ;;  %s195_s11 = int_to_ptr.vmem [resolvable:$true] %s194_s11 }
  0x12   : > { %p6069_p13 = scmp.ne.s32.totalorder %s6858_s1, %s6068_s15  ;;  %p6075_p3 = scmp.lt.u32.totalorder %s6068_s15, %s6858_s1 }
  0x13   : > { %p6263_p12 = pnand %p6864_p9, %p5771_p11 }
  0x15   : > { %p6070_p0 = pneg %p6263_p12 }
  0x17   : > { %p6071_p1 = pnand %p6070_p0, %p6069_p13 }
  0x19   : > { %p6072_p2 = pneg %p6071_p1 }
  0x1b   : > { %p6077_p4 = pnand %p6075_p3, %p6072_p2 }
  0x1d   : > { %6080 = shalt.err (!%p6077_p4)
}
  0x1e   : > { %s6081_s20 = scalar_lea.vmem %s195_s11, 30720  ;;  %p6089_p9 = scmp.lt.s32.totalorder %s195_s11, %s195_s11 }
  0x1f   : > { %p6082_p7 = scmp.ne.s32.totalorder %s195_s11, %s6081_s20  ;;  %p6090_p6 = scmp.lt.s32.totalorder %s6081_s20, %s6081_s20 }
  0x21   : > { %p6084_p8 = pnand %p6082_p7, %p6070_p0  ;;  %p6091_p5 = por %p6090_p6, %p6089_p9 }
  0x23   : > { %p6085_p11 = pneg %p6084_p8 }
  0x25   : > { %p6092_p10 = pnand %p6091_p5, %p6085_p11 }
  0x27   : > { %6095 = shalt.err (!%p6092_p10)
}
  0x28   : > { %s6165_s26 = smov 64   ;;  %s6166_s28 = smov 4  }
  0x29   : > { %5774 = dma.hbm_to_vmem [thread:$0]  (!%p6263_p12), %s6858_s1, 30720, %s195_s11, [#allocation4], %s6165_s26, %s6165_s26, %s6166_s28  }
  0x2a   : > { %p6871_p13 = scmp.ne.s32.totalorder %s6869_s9, 0 }
  0x2b   : > { %p6872_p1 = scmp.eq.s32.totalorder (!%p6871_p13), %s6227_s25, 0 }
  0x2c   : > { %230 = sbr.rel (%p6871_p13) target bundleno = 3210 (0xc8a), region = 44 }
  0x33   : > { %6141 = dma.done.wait (%p6872_p1), [#allocation4], 30720   ;;  %p6873_p0 = pmov %p6872_p1 }
  0x34   : > { %v6167_v0 = vmov 0.0   ;;  %vm6168_vm0 = vmmov 0   ;;  %p260_p5 = scmp.lt.s32.totalorder %s6227_s25, 1  ;;  %v5820_v1 = vld [vmem:[#allocation3 + $0x40] sm:$0xff]   ;;  %v5821_v2 = vld [vmem:[#allocation3 + $0x48] sm:$0xff]   ;;  %v5822_v3 = vld [vmem:[#allocation3 + $0x50] sm:$0xff]  }
  0x35   : > { %6143 = vsyncadd (%p6873_p0), [#allocation4], 4294936576  ;;  %4951 = vmatprep.subr.bf16.mxu1 %v6167_v0  ;;  %266 = vst [vmem:[#allocation2] sm:$0x1] %v6167_v0  ;;  %4967 = vmatprep.mubr.msk.bf16.mxu1 %vm6168_vm0, %v6167_v0  ;;  %v5823_v6 = vld [vmem:[#allocation3 + $0x58] sm:$0xff]   ;;  %v5824_v7 = vld [vmem:[#allocation3 + $0x60] sm:$0xff]  }
  0x36   : > { %267 = vst [vmem:[#allocation2 + $0x11] sm:$0x1] %v6167_v0  ;;  %4931 = vmatprep.subr.bf16.mxu0 %v6167_v0  ;;  %4947 = vmatprep.mubr.msk.bf16.mxu0 %vm6168_vm0, %v6167_v0  ;;  %s261_s9 = scalar_select %p260_p5, %s6227_s25, 1  ;;  %v5825_v8 = vld [vmem:[#allocation3 + $0x68] sm:$0xff]   ;;  %v5826_v9 = vld [vmem:[#allocation3 + $0x70] sm:$0xff]   ;;  %v5827_v10 = vld [vmem:[#allocation3 + $0x78] sm:$0xff]  }
  0x37   : > { %4952 = vmatpush3.bf16.msra.mxu1 %v5820_v1  ;;  %v5844_v11 = vld [vmem:[%s6860_s3] sm:$0xff]   ;;  %v5845_v12 = vld [vmem:[%s6860_s3 + $0x8] sm:$0xff]   ;;  %v5828_v14 = vld [vmem:[#allocation3] sm:$0xff]   ;;  %s257_s17 = sand.u32 1, %s6154_s22   ;;  %s4612_s19 = sshll.u32 %s6227_s25, 7 }
  0x38   : > { %s4615_s11 = sshll.u32 %s261_s9, 4  ;;  %4953 = vmatprep.subr.bf16.mxu1 %v6167_v0  ;;  %4932 = vmatpush3.bf16.msra.mxu0 %v5844_v11  ;;  %v5846_v15 = vld [vmem:[%s6860_s3 + $0x10] sm:$0xff]   ;;  %v5829_v16 = vld [vmem:[#allocation3 + $0x8] sm:$0xff]   ;;  %v5830_v17 = vld [vmem:[#allocation3 + $0x10] sm:$0xff]   ;;  %s6806_s18 = sshll.u32 %s257_s17, 3 }
  0x39   : > { %s264_s14 = scalar_lea.vmem %s6857_s0, %s4615_s11  ;;  %4933 = vmatprep.subr.bf16.mxu0 %v6167_v0  ;;  %v5847_v18 = vld [vmem:[%s6860_s3 + $0x18] sm:$0xff]   ;;  %v5848_v19 = vld [vmem:[%s6860_s3 + $0x20] sm:$0xff]   ;;  %v5831_v20 = vld [vmem:[#allocation3 + $0x18] sm:$0xff]   ;;  %s259_s20 = scalar_lea.vmem [#allocation6], %s6806_s18 }
  0x3a   : > { %v268_v4 = vld [vmem:[%s264_s14] sm:$0xff]  ;;  %v269_v5 = vld [vmem:[%s264_s14 + $0x8] sm:$0xff]  ;;  %v5832_v22 = vld [vmem:[#allocation3 + $0x20] sm:$0xff]   ;;  %s4228_s26 = sshll.u32 %s259_s20, 4  ;;  %s6813_s10 = scalar_lea.hbm %s6863_s6, %s4612_s19  ;;  %s6815_s26 = int_to_ptr.vmem [resolvable:$true] %s4228_s26 }
  0x3b   : > { %4954 = vmatpush3.bf16.msra.mxu1 %v5821_v2  ;;  %383 = vst [vmem:[#allocation2 + $0x1] sm:$0xff] %v268_v4  ;;  %384 = vst [vmem:[#allocation2 + $0x9] sm:$0xff] %v269_v5  ;;  %v406_v13 = vpack.c.bf16 %v269_v5, %v268_v4  ;;  %v5849_v21 = vld [vmem:[%s6860_s3 + $0x28] sm:$0xff]   ;;  %v5850_v23 = vld [vmem:[%s6860_s3 + $0x30] sm:$0xff]   ;;  %s4215_s25 = scalar_lea.sflag [#allocation5], %s257_s17  ;;  %s6096_s9 = scalar_lea.vmem %s6815_s26, 128 }
  0x3c   : > { %4955 = vmatprep.subr.bf16.mxu1 %v6167_v0  ;;  %4934 = vmatpush3.bf16.msra.mxu0 %v5845_v12  ;;  %v5833_v24 = vld [vmem:[#allocation3 + $0x28] sm:$0xff]   ;;  %v5851_v25 = vld [vmem:[%s6860_s3 + $0x38] sm:$0xff]   ;;  %v5834_v26 = vld [vmem:[#allocation3 + $0x30] sm:$0xff]   ;;  %p6097_p6 = scmp.ne.s32.totalorder %s6815_s26, %s6096_s9  ;;  %p6874_p9 = scmp.ne.s32.totalorder %s6867_s7, 0 }
  0x3d   : > { %4935 = vmatprep.subr.bf16.mxu0 %v6167_v0  ;;  %v5852_v27 = vld [vmem:[#allocation3 + $0x100] sm:$0xff]   ;;  %v5835_v29 = vld [vmem:[#allocation3 + $0x38] sm:$0xff]   ;;  %v5853_v31 = vld [vmem:[#allocation3 + $0x108] sm:$0xff]   ;;  %s6170_s11 = smov [#allocation6]  }
  0x3e   : > { %v5836_v32 = vld [vmem:[#allocation3 + $0x80] sm:$0xff]   ;;  %v5854_v34 = vld [vmem:[#allocation3 + $0x110] sm:$0xff]   ;;  %v5837_v35 = vld [vmem:[#allocation3 + $0x88] sm:$0xff]   ;;  %p6098_p10 = pnand %p6097_p6, %p6874_p9  ;;  %s6100_s12 = sshll.u32 %s6170_s11, 4  ;;  %s6101_s12 = int_to_ptr.vmem [resolvable:$false] %s6100_s12 }
  0x3f   : > { %4956 = vmatpush3.bf16.msra.mxu1 %v5822_v3  ;;  %v5838_v36 = vld [vmem:[#allocation3 + $0x90] sm:$0xff]   ;;  %v5839_v37 = vld [vmem:[#allocation3 + $0x98] sm:$0xff]   ;;  %v5840_v38 = vld [vmem:[#allocation3 + $0xa0] sm:$0xff]   ;;  %s6102_s13 = scalar_lea.vmem %s6101_s12, 256  ;;  %p6103_p2 = scmp.lt.s32.totalorder %s6815_s26, %s6101_s12 }
  0x40   : > { %4957 = vmatprep.subr.bf16.mxu1 %v6167_v0  ;;  %4936 = vmatpush3.bf16.msra.mxu0 %v5846_v15  ;;  %v5841_v39 = vld [vmem:[#allocation3 + $0xa8] sm:$0xff]   ;;  %v5842_v40 = vld [vmem:[#allocation3 + $0xb0] sm:$0xff]   ;;  %v5843_v42 = vld [vmem:[#allocation3 + $0xb8] sm:$0xff]   ;;  %p6099_p12 = pneg %p6098_p10  ;;  %p6104_p3 = scmp.lt.s32.totalorder %s6102_s13, %s6096_s9 }
  0x41   : > { %4937 = vmatprep.subr.bf16.mxu0 %v6167_v0  ;;  %v5855_v45 = vld [vmem:[#allocation3 + $0x118] sm:$0xff]   ;;  %v5856_v46 = vld [vmem:[#allocation3 + $0x120] sm:$0xff]   ;;  %v5857_v47 = vld [vmem:[#allocation3 + $0x128] sm:$0xff]  }
  0x42   : > { %v386_v28 = vld [vmem:[#allocation2 + $0x8] sm:$0xff]  ;;  %v385_v30 = vld [vmem:[#allocation2] sm:$0xff]  ;;  %v5859_v49 = vld [vmem:[#allocation3 + $0x138] sm:$0xff]   ;;  %p6105_p4 = por %p6104_p3, %p6103_p2 }
  0x43   : > { %4958 = vmatpush3.bf16.msra.mxu1 %v5823_v6  ;;  %v387_v33 = vpack.c.bf16 %v386_v28, %v385_v30  ;;  %v602_v41 = vld [vmem:[#allocation2 + $0x2] sm:$0xff]  ;;  %v603_v43 = vld [vmem:[#allocation2 + $0xa] sm:$0xff]  ;;  %v5876_v50 = vld [vmem:[#allocation3 + $0x1c0] sm:$0xff]  }
  0x44   : > { %4959 = vmatprep.subr.bf16.mxu1 %v6167_v0  ;;  %4938 = vmatpush3.bf16.msra.mxu0 %v5847_v18  ;;  %v604_v44 = vpack.c.bf16 %v603_v43, %v602_v41  ;;  %v5858_v48 = vld [vmem:[#allocation3 + $0x130] sm:$0xff]   ;;  %v5877_v51 = vld [vmem:[#allocation3 + $0x1c8] sm:$0xff]   ;;  %v5863_v12 = vld [vmem:[#allocation3 + $0xd8] sm:$0xff]   ;;  %p6106_p7 = pnand %p6105_p4, %p6099_p12 }
  0x45   : > { %4939 = vmatprep.subr.bf16.mxu0 %v6167_v0  ;;  %v5878_v52 = vld [vmem:[#allocation3 + $0x1d0] sm:$0xff]   ;;  %v4341_v57 = vld [vmem:[%s6859_s2] ss:$0 sm:$0xff]  ;;  %v4342_v59 = vld [vmem:[%s6859_s2 + $0x1] ss:$0 sm:$0xff] }
  0x46   : > { %v5862_v11 = vld [vmem:[#allocation3 + $0xd0] sm:$0xff]   ;;  %v4370_v41 = vld [vmem:[%s6859_s2 + $0x3] ss:$0 sm:$0xff] }
  0x47   : > { %4960 = vmatpush3.bf16.msra.mxu1 %v5824_v7  ;;  %v5866_v15 = vld [vmem:[#allocation3 + $0xf0] sm:$0xff]  }
  0x48   : > { %4961 = vmatprep.subr.bf16.mxu1 %v6167_v0  ;;  %4940 = vmatpush3.bf16.msra.mxu0 %v5848_v19  ;;  %v5868_v19 = vld [vmem:[#allocation3 + $0x140] sm:$0xff]  }
  0x49   : > { %4941 = vmatprep.subr.bf16.mxu0 %v6167_v0 }
  0x4b   : > { %4962 = vmatpush3.bf16.msra.mxu1 %v5825_v8  ;;  %v5860_v8 = vld [vmem:[#allocation3 + $0xc0] sm:$0xff]  }
  0x4c   : > { %4963 = vmatprep.subr.bf16.mxu1 %v6167_v0  ;;  %4942 = vmatpush3.bf16.msra.mxu0 %v5849_v21  ;;  %v5869_v21 = vld [vmem:[#allocation3 + $0x148] sm:$0xff]  }
  0x4d   : > { %4943 = vmatprep.subr.bf16.mxu0 %v6167_v0 }
  0x4f   : > { %4964 = vmatpush3.bf16.msra.mxu1 %v5826_v9 }
  0x50   : > { %4965 = vmatprep.subr.bf16.mxu1 %v6167_v0  ;;  %4944 = vmatpush3.bf16.msra.mxu0 %v5850_v23  ;;  %v5871_v23 = vld [vmem:[#allocation3 + $0x158] sm:$0xff]  }
  0x51   : > { %4945 = vmatprep.subr.bf16.mxu0 %v6167_v0 }
  0x53   : > { %4966 = vmatpush3.bf16.msra.mxu1 %v5827_v10  ;;  %v5861_v10 = vld [vmem:[#allocation3 + $0xc8] sm:$0xff]  }
  0x54   : > { %4971 = vmatprep.subr.bf16.mxu1 %v6167_v0  ;;  %4946 = vmatpush3.bf16.msra.mxu0 %v5851_v25  ;;  %v5873_v25 = vld [vmem:[#allocation3 + $0x168] sm:$0xff]  }
  0x55   : > { %5011 = vmatprep.subr.bf16.mxu0 %v6167_v0 }
  0x56   : > { %4968 = vmatmul.mubr.bf16.vlgmr.msra.gmra.mrb[0].mxu1 %v406_v13 }
  0x57   : > { %4972 = vmatpush3.bf16.msra.mxu1 %v5828_v14  ;;  %4987 = vmatprep.mubr.msk.bf16.mxu1 %vm6168_vm0, %v6167_v0  ;;  %v5865_v14 = vld [vmem:[#allocation3 + $0xe8] sm:$0xff]  }
  0x58   : > { %4973 = vmatprep.subr.bf16.mxu1 %v6167_v0  ;;  %4948 = vmatmul.mubr.bf16.vlgmr.msra.gmra.mrb[0].mxu0 %v406_v13  ;;  %v5864_v13 = vld [vmem:[#allocation3 + $0xe0] sm:$0xff]  }
  0x59   : > { %5012 = vmatpush3.bf16.msra.mxu0 %v5852_v27  ;;  %5027 = vmatprep.mubr.msk.bf16.mxu0 %vm6168_vm0, %v6167_v0  ;;  %v5875_v27 = vld [vmem:[#allocation3 + $0x178] sm:$0xff]  }
  0x5a   : > { %5013 = vmatprep.subr.bf16.mxu0 %v6167_v0 }
  0x5b   : > { %4974 = vmatpush3.bf16.msra.mxu1 %v5829_v16  ;;  %v5867_v16 = vld [vmem:[#allocation3 + $0xf8] sm:$0xff]  }
  0x5c   : > { %4975 = vmatprep.subr.bf16.mxu1 %v6167_v0 }
  0x5d   : > { %5014 = vmatpush3.bf16.msra.mxu0 %v5853_v31  ;;  %v5879_v31 = vld [vmem:[#allocation3 + $0x1d8] sm:$0xff]  }
  0x5e   : > { %5015 = vmatprep.subr.bf16.mxu0 %v6167_v0 }
  0x5f   : > { %4976 = vmatpush3.bf16.msra.mxu1 %v5830_v17 }
  0x60   : > { %4977 = vmatprep.subr.bf16.mxu1 %v6167_v0 }
  0x61   : > { %5016 = vmatpush3.bf16.msra.mxu0 %v5854_v34  ;;  %v5882_v34 = vld [vmem:[#allocation3 + $0x1f0] sm:$0xff]  }
  0x62   : > { %5017 = vmatprep.subr.bf16.mxu0 %v6167_v0 }
  0x63   : > { %4978 = vmatpush3.bf16.msra.mxu1 %v5831_v20 }
  0x64   : > { %4979 = vmatprep.subr.bf16.mxu1 %v6167_v0 }
  0x65   : > { %5018 = vmatpush3.bf16.msra.mxu0 %v5855_v45 }
  0x66   : > { %5019 = vmatprep.subr.bf16.mxu0 %v6167_v0 }
  0x67   : > { %4980 = vmatpush3.bf16.msra.mxu1 %v5832_v22  ;;  %v5870_v22 = vld [vmem:[#allocation3 + $0x150] sm:$0xff]  }
  0x68   : > { %4981 = vmatprep.subr.bf16.mxu1 %v6167_v0 }
  0x69   : > { %5020 = vmatpush3.bf16.msra.mxu0 %v5856_v46 }
  0x6a   : > { %5021 = vmatprep.subr.bf16.mxu0 %v6167_v0 }
  0x6b   : > { %4982 = vmatpush3.bf16.msra.mxu1 %v5833_v24  ;;  %v5872_v24 = vld [vmem:[#allocation3 + $0x160] sm:$0xff]  }
  0x6c   : > { %4983 = vmatprep.subr.bf16.mxu1 %v6167_v0 }
  0x6d   : > { %5022 = vmatpush3.bf16.msra.mxu0 %v5857_v47 }
  0x6e   : > { %5023 = vmatprep.subr.bf16.mxu0 %v6167_v0 }
  0x6f   : > { %4984 = vmatpush3.bf16.msra.mxu1 %v5834_v26  ;;  %v5874_v26 = vld [vmem:[#allocation3 + $0x170] sm:$0xff]  }
  0x70   : > { %4985 = vmatprep.subr.bf16.mxu1 %v6167_v0 }
  0x71   : > { %5024 = vmatpush3.bf16.msra.mxu0 %v5858_v48 }
  0x72   : > { %5025 = vmatprep.subr.bf16.mxu0 %v6167_v0 }
  0x73   : > { %4986 = vmatpush3.bf16.msra.mxu1 %v5835_v29 }
  0x74   : > { %4991 = vmatprep.subr.bf16.mxu1 %v6167_v0 }
  0x75   : > { %5026 = vmatpush3.bf16.msra.mxu0 %v5859_v49 }
  0x76   : > { %4988 = vmatmul.mubr.bf16.vlgmr.msra.gmra.mrb[0].mxu1 %v387_v33  ;;  %5031 = vmatprep.subr.bf16.mxu0 %v6167_v0  ;;  %v5881_v33 = vld [vmem:[#allocation3 + $0x1e8] sm:$0xff]  }
  0x77   : > { %4992 = vmatpush3.bf16.msra.mxu1 %v5836_v32  ;;  %5007 = vmatprep.mubr.msk.bf16.mxu1 %vm6168_vm0, %v6167_v0  ;;  %v5880_v32 = vld [vmem:[#allocation3 + $0x1e0] sm:$0xff]  }
  0x78   : > { %4993 = vmatprep.subr.bf16.mxu1 %v6167_v0 }
  0x7b   : > { %4994 = vmatpush3.bf16.msra.mxu1 %v5837_v35  ;;  %v5883_v35 = vld [vmem:[#allocation3 + $0x1f8] sm:$0xff]  }
  0x7c   : > { %4995 = vmatprep.subr.bf16.mxu1 %v6167_v0 }
  0x7f   : > { %4996 = vmatpush3.bf16.msra.mxu1 %v5838_v36  ;;  %v5900_v36 = vld [vmem:[#allocation3 + $0x280] sm:$0xff]  }
  0x80   : > { %4997 = vmatprep.subr.bf16.mxu1 %v6167_v0 }
  0x83   : > { %4998 = vmatpush3.bf16.msra.mxu1 %v5839_v37  ;;  %v5901_v37 = vld [vmem:[#allocation3 + $0x288] sm:$0xff]  }
  0x84   : > { %4999 = vmatprep.subr.bf16.mxu1 %v6167_v0 }
  0x87   : > { %5000 = vmatpush3.bf16.msra.mxu1 %v5840_v38  ;;  %v5902_v38 = vld [vmem:[#allocation3 + $0x290] sm:$0xff]  }
  0x88   : > { %5001 = vmatprep.subr.bf16.mxu1 %v6167_v0 }
  0x8b   : > { %5002 = vmatpush3.bf16.msra.mxu1 %v5841_v39  ;;  %v4368_v39 = vld [vmem:[%s6859_s2 + $0x2] ss:$0 sm:$0xff] }
  0x8c   : > { %5003 = vmatprep.subr.bf16.mxu1 %v6167_v0 }
  0x8f   : > { %5004 = vmatpush3.bf16.msra.mxu1 %v5842_v40 }
  0x90   : > { %5005 = vmatprep.subr.bf16.mxu1 %v6167_v0 }
  0x93   : > { %5006 = vmatpush3.bf16.msra.mxu1 %v5843_v42 }
  0x94   : > { %5071 = vmatprep.subr.bf16.mxu1 %v6167_v0 }
  0x96   : > { %5008 = vmatmul.mubr.bf16.vlgmr.msra.gmra.mrb[0].mxu1 %v604_v44 }
  0x97   : > { %5087 = vmatprep.mubr.msk.bf16.mxu1 %vm6168_vm0, %v6167_v0  ;;  %5072 = vmatpush3.bf16.msra.mxu1 %v5876_v50 }
  0x98   : > { %5073 = vmatprep.subr.bf16.mxu1 %v6167_v0 }
  0x9b   : > { %5074 = vmatpush3.bf16.msra.mxu1 %v5877_v51 }
  0x9c   : > { %5075 = vmatprep.subr.bf16.mxu1 %v6167_v0 }
  0x9f   : > { %5076 = vmatpush3.bf16.msra.mxu1 %v5878_v52 }
  0xa0   : > { %5077 = vmatprep.subr.bf16.mxu1 %v6167_v0 }
  0xa3   : > { %5078 = vmatpush3.bf16.msra.mxu1 %v5879_v31 }
  0xa4   : > { %5079 = vmatprep.subr.bf16.mxu1 %v6167_v0 }
  0xa7   : > { %5080 = vmatpush3.bf16.msra.mxu1 %v5880_v32 }
  0xa8   : > { %5081 = vmatprep.subr.bf16.mxu1 %v6167_v0 }
  0xab   : > { %5082 = vmatpush3.bf16.msra.mxu1 %v5881_v33 }
  0xac   : > { %5083 = vmatprep.subr.bf16.mxu1 %v6167_v0 }
  0xaf   : > { %5084 = vmatpush3.bf16.msra.mxu1 %v5882_v34 }
  0xb0   : > { %5085 = vmatprep.subr.bf16.mxu1 %v6167_v0 }
  0xb3   : > { %5086 = vmatpush3.bf16.msra.mxu1 %v5883_v35 }
  0xb4   : > { %5091 = vmatprep.subr.bf16.mxu1 %v6167_v0 }
 0x12b   : > { %v6377_v53 = vpop.f32.mrb[0].mxu0 }
 0x12c   : > { %v4949_v54 = vpop.f32.mrb[1].mxu0 }
 0x12d   : > { %v6379_v55 = vpop.f32.mrb[2].mxu0  ;;  %v5884_v54 = vld [vmem:[#allocation3 + $0x180] sm:$0xff]  }
 0x12e   : > { %v4950_v56 = vpop.f32.mrb[3].mxu0 }
 0x169   : > { %v704_v58 = vpop.f32.mrb[0].mxu1 }
 0x16a   : > { %v718_v60 = vmul.f32 %v4341_v57, %v704_v58  ;;  %v5009_v61 = vpop.f32.mrb[1].mxu1  ;;  %v5886_v58 = vld [vmem:[#allocation3 + $0x190] sm:$0xff]  }
 0x16b   : > { %v707_v62 = vpop.f32.mrb[2].mxu1  ;;  %v5889_v61 = vld [vmem:[#allocation3 + $0x1a8] sm:$0xff]  }
 0x16c   : > { %v725_v63 = vadd.f32 %v4342_v59, %v718_v60  ;;  %v719_v1 = vmul.f32 %v4341_v57, %v707_v62  ;;  %v5010_v2 = vpop.f32.mrb[3].mxu1  ;;  %v5885_v57 = vld [vmem:[#allocation3 + $0x188] sm:$0xff]   ;;  %v5888_v60 = vld [vmem:[#allocation3 + $0x1a0] sm:$0xff]   ;;  %v5890_v62 = vld [vmem:[#allocation3 + $0x1b0] sm:$0xff]  }
 0x16e   : > { %vm727_vm1 = vcmp.ge.f32.partialorder %v725_v63, 0.0  ;;  %v729_v3 = vmul.f32 0.01, %v725_v63  ;;  %v726_v4 = vadd.f32 %v4342_v59, %v719_v1  ;;  %v5887_v59 = vld [vmem:[#allocation3 + $0x198] sm:$0xff]  }
 0x170   : > { %v731_v5 = vsel %vm727_vm1, %v725_v63, %v729_v3  ;;  %vm728_vm2 = vcmp.ge.f32.partialorder %v726_v4, 0.0  ;;  %v730_v6 = vmul.f32 0.01, %v726_v4  ;;  %v5891_v63 = vld [vmem:[#allocation3 + $0x1b8] sm:$0xff]   ;;  %v5892_v3 = vld [vmem:[#allocation3 + $0x200] sm:$0xff]  }
 0x171   : > { %733 = vst [vmem:[#allocation2 + $0x1] sm:$0xff] %v731_v5 }
 0x172   : > { %v732_v7 = vsel %vm728_vm2, %v726_v4, %v730_v6  ;;  %v5894_v6 = vld [vmem:[#allocation3 + $0x210] sm:$0xff]  }
 0x173   : > { %734 = vst [vmem:[#allocation2 + $0x9] sm:$0xff] %v732_v7  ;;  %v757_v9 = vpack.c.bf16 %v732_v7, %v731_v5  ;;  %v5893_v5 = vld [vmem:[#allocation3 + $0x208] sm:$0xff]   ;;  %v5895_v7 = vld [vmem:[#allocation3 + $0x218] sm:$0xff]  }
 0x175   : > { %5028 = vmatmul.mubr.bf16.vlgmr.msra.gmra.mrb[4].mxu0 %v757_v9  ;;  %v5897_v9 = vld [vmem:[#allocation3 + $0x228] sm:$0xff]  }
 0x176   : > { %5032 = vmatpush3.bf16.msra.mxu0 %v5860_v8  ;;  %5047 = vmatprep.mubr.msk.bf16.mxu0 %vm6168_vm0, %v6167_v0  ;;  %v5896_v8 = vld [vmem:[#allocation3 + $0x220] sm:$0xff]  }
 0x177   : > { %5033 = vmatprep.subr.bf16.mxu0 %v6167_v0 }
 0x178   : > { %v735_v18 = vld [vmem:[#allocation2] sm:$0xff] }
 0x17a   : > { %5034 = vmatpush3.bf16.msra.mxu0 %v5861_v10  ;;  %v736_v17 = vld [vmem:[#allocation2 + $0x8] sm:$0xff] }
 0x17b   : > { %5035 = vmatprep.subr.bf16.mxu0 %v6167_v0  ;;  %v737_v20 = vpack.c.bf16 %v736_v17, %v735_v18  ;;  %v953_v28 = vld [vmem:[#allocation2 + $0x2] sm:$0xff]  ;;  %v954_v29 = vld [vmem:[#allocation2 + $0xa] sm:$0xff] }
 0x17c   : > { %v955_v30 = vpack.c.bf16 %v954_v29, %v953_v28  ;;  %v5898_v10 = vld [vmem:[#allocation3 + $0x230] sm:$0xff]   ;;  %v5905_v17 = vld [vmem:[#allocation3 + $0x2a8] sm:$0xff]  }
 0x17d   : > { %v5906_v18 = vld [vmem:[#allocation3 + $0x2b0] sm:$0xff]  }
 0x17e   : > { %5036 = vmatpush3.bf16.msra.mxu0 %v5862_v11  ;;  %v5899_v11 = vld [vmem:[#allocation3 + $0x238] sm:$0xff]  }
 0x17f   : > { %5037 = vmatprep.subr.bf16.mxu0 %v6167_v0 }
 0x182   : > { %5038 = vmatpush3.bf16.msra.mxu0 %v5863_v12 }
 0x183   : > { %5039 = vmatprep.subr.bf16.mxu0 %v6167_v0 }
 0x186   : > { %5040 = vmatpush3.bf16.msra.mxu0 %v5864_v13 }
 0x187   : > { %5041 = vmatprep.subr.bf16.mxu0 %v6167_v0 }
 0x18a   : > { %5042 = vmatpush3.bf16.msra.mxu0 %v5865_v14 }
 0x18b   : > { %5043 = vmatprep.subr.bf16.mxu0 %v6167_v0 }
 0x18e   : > { %5044 = vmatpush3.bf16.msra.mxu0 %v5866_v15  ;;  %v5903_v15 = vld [vmem:[#allocation3 + $0x298] sm:$0xff]  }
 0x18f   : > { %5045 = vmatprep.subr.bf16.mxu0 %v6167_v0 }
 0x192   : > { %5046 = vmatpush3.bf16.msra.mxu0 %v5867_v16  ;;  %v5904_v16 = vld [vmem:[#allocation3 + $0x2a0] sm:$0xff]  }
 0x193   : > { %5051 = vmatprep.subr.bf16.mxu0 %v6167_v0 }
 0x195   : > { %5048 = vmatmul.mubr.bf16.vlgmr.msra.gmra.mrb[4].mxu0 %v737_v20  ;;  %v5924_v20 = vld [vmem:[#allocation3 + $0x340] sm:$0xff]  }
 0x196   : > { %5052 = vmatpush3.bf16.msra.mxu0 %v5868_v19  ;;  %5067 = vmatprep.mubr.msk.bf16.mxu0 %vm6168_vm0, %v6167_v0  ;;  %v5907_v19 = vld [vmem:[#allocation3 + $0x2b8] sm:$0xff]  }
 0x197   : > { %5053 = vmatprep.subr.bf16.mxu0 %v6167_v0 }
 0x19a   : > { %5054 = vmatpush3.bf16.msra.mxu0 %v5869_v21  ;;  %v5925_v21 = vld [vmem:[#allocation3 + $0x348] sm:$0xff]  }
 0x19b   : > { %5055 = vmatprep.subr.bf16.mxu0 %v6167_v0 }
 0x19e   : > { %5056 = vmatpush3.bf16.msra.mxu0 %v5870_v22  ;;  %v5926_v22 = vld [vmem:[#allocation3 + $0x350] sm:$0xff]  }
 0x19f   : > { %5057 = vmatprep.subr.bf16.mxu0 %v6167_v0 }
 0x1a2   : > { %5058 = vmatpush3.bf16.msra.mxu0 %v5871_v23  ;;  %v4396_v23 = vld [vmem:[%s6859_s2 + $0x4] ss:$0 sm:$0xff] }
 0x1a3   : > { %5059 = vmatprep.subr.bf16.mxu0 %v6167_v0 }
 0x1a6   : > { %5060 = vmatpush3.bf16.msra.mxu0 %v5872_v24 }
 0x1a7   : > { %5061 = vmatprep.subr.bf16.mxu0 %v6167_v0 }
 0x1aa   : > { %5062 = vmatpush3.bf16.msra.mxu0 %v5873_v25  ;;  %v4398_v25 = vld [vmem:[%s6859_s2 + $0x5] ss:$0 sm:$0xff] }
 0x1ab   : > { %5063 = vmatprep.subr.bf16.mxu0 %v6167_v0 }
 0x1ae   : > { %5064 = vmatpush3.bf16.msra.mxu0 %v5874_v26 }
 0x1af   : > { %5065 = vmatprep.subr.bf16.mxu0 %v6167_v0 }
 0x1b2   : > { %5066 = vmatpush3.bf16.msra.mxu0 %v5875_v27 }
 0x1b3   : > { %5131 = vmatprep.subr.bf16.mxu0 %v6167_v0 }
 0x1b5   : > { %5068 = vmatmul.mubr.bf16.vlgmr.msra.gmra.mrb[4].mxu0 %v955_v30 }
 0x1b6   : > { %5147 = vmatprep.mubr.msk.bf16.mxu0 %vm6168_vm0, %v6167_v0  ;;  %5132 = vmatpush3.bf16.msra.mxu0 %v5900_v36 }
 0x1b7   : > { %5133 = vmatprep.subr.bf16.mxu0 %v6167_v0 }
 0x1ba   : > { %5134 = vmatpush3.bf16.msra.mxu0 %v5901_v37  ;;  %v5908_v37 = vld [vmem:[#allocation3 + $0x240] sm:$0xff]  }
 0x1bb   : > { %5135 = vmatprep.subr.bf16.mxu0 %v6167_v0 }
 0x1be   : > { %5136 = vmatpush3.bf16.msra.mxu0 %v5902_v38 }
 0x1bf   : > { %5137 = vmatprep.subr.bf16.mxu0 %v6167_v0 }
 0x1c2   : > { %5138 = vmatpush3.bf16.msra.mxu0 %v5903_v15 }
 0x1c3   : > { %5139 = vmatprep.subr.bf16.mxu0 %v6167_v0 }
 0x1c6   : > { %5140 = vmatpush3.bf16.msra.mxu0 %v5904_v16 }
 0x1c7   : > { %5141 = vmatprep.subr.bf16.mxu0 %v6167_v0 }
 0x1ca   : > { %5142 = vmatpush3.bf16.msra.mxu0 %v5905_v17 }
 0x1cb   : > { %5143 = vmatprep.subr.bf16.mxu0 %v6167_v0 }
 0x1ce   : > { %5144 = vmatpush3.bf16.msra.mxu0 %v5906_v18 }
 0x1cf   : > { %5145 = vmatprep.subr.bf16.mxu0 %v6167_v0 }
 0x1d2   : > { %5146 = vmatpush3.bf16.msra.mxu0 %v5907_v19 }
 0x1d3   : > { %5151 = vmatprep.subr.bf16.mxu0 %v6167_v0 }
 0x288   : > { %v1055_v40 = vpop.f32.mrb[4].mxu0 }
 0x289   : > { %v1070_v42 = vmul.f32 %v4368_v39, %v1055_v40  ;;  %v5069_v43 = vpop.f32.mrb[5].mxu0  ;;  %v5910_v40 = vld [vmem:[#allocation3 + $0x250] sm:$0xff]  }
 0x28a   : > { %v1058_v44 = vpop.f32.mrb[6].mxu0  ;;  %v5913_v43 = vld [vmem:[#allocation3 + $0x268] sm:$0xff]  }
 0x28b   : > { %v1077_v45 = vadd.f32 %v4370_v41, %v1070_v42  ;;  %v1071_v46 = vmul.f32 %v4368_v39, %v1058_v44  ;;  %v5070_v47 = vpop.f32.mrb[7].mxu0  ;;  %v5909_v39 = vld [vmem:[#allocation3 + $0x248] sm:$0xff]   ;;  %v5912_v42 = vld [vmem:[#allocation3 + $0x260] sm:$0xff]   ;;  %v5914_v44 = vld [vmem:[#allocation3 + $0x270] sm:$0xff]  }
 0x28d   : > { %vm1079_vm3 = vcmp.ge.f32.partialorder %v1077_v45, 0.0  ;;  %v1081_v48 = vmul.f32 0.01, %v1077_v45  ;;  %v1078_v49 = vadd.f32 %v4370_v41, %v1071_v46  ;;  %v5911_v41 = vld [vmem:[#allocation3 + $0x258] sm:$0xff]  }
 0x28f   : > { %v1083_v50 = vsel %vm1079_vm3, %v1077_v45, %v1081_v48  ;;  %vm1080_vm4 = vcmp.ge.f32.partialorder %v1078_v49, 0.0  ;;  %v1082_v51 = vmul.f32 0.01, %v1078_v49  ;;  %v5915_v45 = vld [vmem:[#allocation3 + $0x278] sm:$0xff]   ;;  %v5916_v48 = vld [vmem:[#allocation3 + $0x2c0] sm:$0xff]  }
 0x290   : > { %1085 = vst [vmem:[#allocation2 + $0x1] sm:$0xff] %v1083_v50 }
 0x291   : > { %v1084_v52 = vsel %vm1080_vm4, %v1078_v49, %v1082_v51  ;;  %v5918_v51 = vld [vmem:[#allocation3 + $0x2d0] sm:$0xff]  }
 0x292   : > { %1086 = vst [vmem:[#allocation2 + $0x9] sm:$0xff] %v1084_v52  ;;  %v1109_v56 = vpack.c.bf16 %v1084_v52, %v1083_v50  ;;  %v5917_v50 = vld [vmem:[#allocation3 + $0x2c8] sm:$0xff]   ;;  %v5919_v52 = vld [vmem:[#allocation3 + $0x2d8] sm:$0xff]  }
 0x294   : > { %5088 = vmatmul.mubr.bf16.vlgmr.msra.gmra.mrb[4].mxu1 %v1109_v56  ;;  %v5921_v56 = vld [vmem:[#allocation3 + $0x2e8] sm:$0xff]  }
 0x295   : > { %5092 = vmatpush3.bf16.msra.mxu1 %v5884_v54  ;;  %5107 = vmatprep.mubr.msk.bf16.mxu1 %vm6168_vm0, %v6167_v0  ;;  %v5920_v54 = vld [vmem:[#allocation3 + $0x2e0] sm:$0xff]  }
 0x296   : > { %5093 = vmatprep.subr.bf16.mxu1 %v6167_v0 }
 0x297   : > { %v1087_v2 = vld [vmem:[#allocation2] sm:$0xff] }
 0x299   : > { %5094 = vmatpush3.bf16.msra.mxu1 %v5885_v57  ;;  %v1088_v1 = vld [vmem:[#allocation2 + $0x8] sm:$0xff] }
 0x29a   : > { %5095 = vmatprep.subr.bf16.mxu1 %v6167_v0  ;;  %v1089_v4 = vpack.c.bf16 %v1088_v1, %v1087_v2  ;;  %v1305_v12 = vld [vmem:[#allocation2 + $0x2] sm:$0xff]  ;;  %v1306_v13 = vld [vmem:[#allocation2 + $0xa] sm:$0xff] }
 0x29b   : > { %v1307_v14 = vpack.c.bf16 %v1306_v13, %v1305_v12  ;;  %v5922_v57 = vld [vmem:[#allocation3 + $0x2f0] sm:$0xff]   ;;  %v5929_v1 = vld [vmem:[#allocation3 + $0x368] sm:$0xff]  }
 0x29c   : > { %v5930_v2 = vld [vmem:[#allocation3 + $0x370] sm:$0xff]  }
 0x29d   : > { %5096 = vmatpush3.bf16.msra.mxu1 %v5886_v58  ;;  %v5923_v58 = vld [vmem:[#allocation3 + $0x2f8] sm:$0xff]  }
 0x29e   : > { %5097 = vmatprep.subr.bf16.mxu1 %v6167_v0 }
 0x2a1   : > { %5098 = vmatpush3.bf16.msra.mxu1 %v5887_v59 }
 0x2a2   : > { %5099 = vmatprep.subr.bf16.mxu1 %v6167_v0 }
 0x2a5   : > { %5100 = vmatpush3.bf16.msra.mxu1 %v5888_v60 }
 0x2a6   : > { %5101 = vmatprep.subr.bf16.mxu1 %v6167_v0 }
 0x2a9   : > { %5102 = vmatpush3.bf16.msra.mxu1 %v5889_v61 }
 0x2aa   : > { %5103 = vmatprep.subr.bf16.mxu1 %v6167_v0 }
 0x2ad   : > { %5104 = vmatpush3.bf16.msra.mxu1 %v5890_v62  ;;  %v5927_v62 = vld [vmem:[#allocation3 + $0x358] sm:$0xff]  }
 0x2ae   : > { %5105 = vmatprep.subr.bf16.mxu1 %v6167_v0 }
 0x2b1   : > { %5106 = vmatpush3.bf16.msra.mxu1 %v5891_v63  ;;  %v5928_v63 = vld [vmem:[#allocation3 + $0x360] sm:$0xff]  }
 0x2b2   : > { %5111 = vmatprep.subr.bf16.mxu1 %v6167_v0 }
 0x2b4   : > { %5108 = vmatmul.mubr.bf16.vlgmr.msra.gmra.mrb[4].mxu1 %v1089_v4  ;;  %v5948_v4 = vld [vmem:[#allocation3 + $0x400] sm:$0xff]  }
 0x2b5   : > { %5112 = vmatpush3.bf16.msra.mxu1 %v5892_v3  ;;  %5127 = vmatprep.mubr.msk.bf16.mxu1 %vm6168_vm0, %v6167_v0  ;;  %v5931_v3 = vld [vmem:[#allocation3 + $0x378] sm:$0xff]  }
 0x2b6   : > { %5113 = vmatprep.subr.bf16.mxu1 %v6167_v0 }
 0x2b9   : > { %5114 = vmatpush3.bf16.msra.mxu1 %v5893_v5  ;;  %v5949_v5 = vld [vmem:[#allocation3 + $0x408] sm:$0xff]  }
 0x2ba   : > { %5115 = vmatprep.subr.bf16.mxu1 %v6167_v0 }
 0x2bd   : > { %5116 = vmatpush3.bf16.msra.mxu1 %v5894_v6  ;;  %v5950_v6 = vld [vmem:[#allocation3 + $0x410] sm:$0xff]  }
 0x2be   : > { %5117 = vmatprep.subr.bf16.mxu1 %v6167_v0 }
 0x2c1   : > { %5118 = vmatpush3.bf16.msra.mxu1 %v5895_v7  ;;  %v4424_v7 = vld [vmem:[%s6859_s2 + $0x6] ss:$0 sm:$0xff] }
 0x2c2   : > { %5119 = vmatprep.subr.bf16.mxu1 %v6167_v0 }
 0x2c5   : > { %5120 = vmatpush3.bf16.msra.mxu1 %v5896_v8 }
 0x2c6   : > { %5121 = vmatprep.subr.bf16.mxu1 %v6167_v0 }
 0x2c9   : > { %5122 = vmatpush3.bf16.msra.mxu1 %v5897_v9  ;;  %v4426_v9 = vld [vmem:[%s6859_s2 + $0x7] ss:$0 sm:$0xff] }
 0x2ca   : > { %5123 = vmatprep.subr.bf16.mxu1 %v6167_v0 }
 0x2cd   : > { %5124 = vmatpush3.bf16.msra.mxu1 %v5898_v10 }
 0x2ce   : > { %5125 = vmatprep.subr.bf16.mxu1 %v6167_v0 }
 0x2d1   : > { %5126 = vmatpush3.bf16.msra.mxu1 %v5899_v11 }
 0x2d2   : > { %5191 = vmatprep.subr.bf16.mxu1 %v6167_v0 }
 0x2d4   : > { %5128 = vmatmul.mubr.bf16.vlgmr.msra.gmra.mrb[4].mxu1 %v1307_v14 }
 0x2d5   : > { %5207 = vmatprep.mubr.msk.bf16.mxu1 %vm6168_vm0, %v6167_v0  ;;  %5192 = vmatpush3.bf16.msra.mxu1 %v5924_v20 }
 0x2d6   : > { %5193 = vmatprep.subr.bf16.mxu1 %v6167_v0 }
 0x2d9   : > { %5194 = vmatpush3.bf16.msra.mxu1 %v5925_v21  ;;  %v5932_v21 = vld [vmem:[#allocation3 + $0x300] sm:$0xff]  }
 0x2da   : > { %5195 = vmatprep.subr.bf16.mxu1 %v6167_v0 }
 0x2dd   : > { %5196 = vmatpush3.bf16.msra.mxu1 %v5926_v22 }
 0x2de   : > { %5197 = vmatprep.subr.bf16.mxu1 %v6167_v0 }
 0x2e1   : > { %5198 = vmatpush3.bf16.msra.mxu1 %v5927_v62 }
 0x2e2   : > { %5199 = vmatprep.subr.bf16.mxu1 %v6167_v0 }
 0x2e5   : > { %5200 = vmatpush3.bf16.msra.mxu1 %v5928_v63 }
 0x2e6   : > { %5201 = vmatprep.subr.bf16.mxu1 %v6167_v0 }
 0x2e9   : > { %5202 = vmatpush3.bf16.msra.mxu1 %v5929_v1 }
 0x2ea   : > { %5203 = vmatprep.subr.bf16.mxu1 %v6167_v0 }
 0x2ed   : > { %5204 = vmatpush3.bf16.msra.mxu1 %v5930_v2 }
 0x2ee   : > { %5205 = vmatprep.subr.bf16.mxu1 %v6167_v0 }
 0x2f1   : > { %5206 = vmatpush3.bf16.msra.mxu1 %v5931_v3 }
 0x2f2   : > { %5211 = vmatprep.subr.bf16.mxu1 %v6167_v0 }
 0x3a7   : > { %v1407_v24 = vpop.f32.mrb[4].mxu1 }
 0x3a8   : > { %v1422_v26 = vmul.f32 %v4396_v23, %v1407_v24  ;;  %v5129_v27 = vpop.f32.mrb[5].mxu1  ;;  %v5934_v24 = vld [vmem:[#allocation3 + $0x310] sm:$0xff]  }
 0x3a9   : > { %v1410_v28 = vpop.f32.mrb[6].mxu1  ;;  %v5937_v27 = vld [vmem:[#allocation3 + $0x328] sm:$0xff]  }
 0x3aa   : > { %v1429_v29 = vadd.f32 %v4398_v25, %v1422_v26  ;;  %v1423_v30 = vmul.f32 %v4396_v23, %v1410_v28  ;;  %v5130_v31 = vpop.f32.mrb[7].mxu1  ;;  %v5933_v23 = vld [vmem:[#allocation3 + $0x308] sm:$0xff]   ;;  %v5936_v26 = vld [vmem:[#allocation3 + $0x320] sm:$0xff]   ;;  %v5938_v28 = vld [vmem:[#allocation3 + $0x330] sm:$0xff]  }
 0x3ac   : > { %vm1431_vm5 = vcmp.ge.f32.partialorder %v1429_v29, 0.0  ;;  %v1433_v32 = vmul.f32 0.01, %v1429_v29  ;;  %v1430_v33 = vadd.f32 %v4398_v25, %v1423_v30  ;;  %v5935_v25 = vld [vmem:[#allocation3 + $0x318] sm:$0xff]  }
 0x3ae   : > { %v1435_v34 = vsel %vm1431_vm5, %v1429_v29, %v1433_v32  ;;  %vm1432_vm6 = vcmp.ge.f32.partialorder %v1430_v33, 0.0  ;;  %v1434_v35 = vmul.f32 0.01, %v1430_v33  ;;  %v5939_v29 = vld [vmem:[#allocation3 + $0x338] sm:$0xff]   ;;  %v5940_v32 = vld [vmem:[#allocation3 + $0x380] sm:$0xff]   ;;  %vm4132_vm5 = vcmask 517120  }
 0x3af   : > { %1437 = vst [vmem:[#allocation2 + $0x1] sm:$0xff] %v1435_v34 }
 0x3b0   : > { %v1436_v36 = vsel %vm1432_vm6, %v1430_v33, %v1434_v35  ;;  %v5942_v35 = vld [vmem:[#allocation3 + $0x390] sm:$0xff]   ;;  %vm4197_vm6 = vcmask 1041409  }
 0x3b1   : > { %1438 = vst [vmem:[#allocation2 + $0x9] sm:$0xff] %v1436_v36  ;;  %v1461_v38 = vpack.c.bf16 %v1436_v36, %v1435_v34  ;;  %v5941_v34 = vld [vmem:[#allocation3 + $0x388] sm:$0xff]   ;;  %v5943_v36 = vld [vmem:[#allocation3 + $0x398] sm:$0xff]  }
 0x3b3   : > { %5148 = vmatmul.mubr.bf16.vlgmr.msra.gmra.mrb[8].mxu0 %v1461_v38  ;;  %v5945_v38 = vld [vmem:[#allocation3 + $0x3a8] sm:$0xff]  }
 0x3b4   : > { %5152 = vmatpush3.bf16.msra.mxu0 %v5908_v37  ;;  %5167 = vmatprep.mubr.msk.bf16.mxu0 %vm6168_vm0, %v6167_v0  ;;  %v5944_v37 = vld [vmem:[#allocation3 + $0x3a0] sm:$0xff]  }
 0x3b5   : > { %5153 = vmatprep.subr.bf16.mxu0 %v6167_v0 }
 0x3b6   : > { %v1439_v47 = vld [vmem:[#allocation2] sm:$0xff] }
 0x3b8   : > { %5154 = vmatpush3.bf16.msra.mxu0 %v5909_v39  ;;  %v1440_v46 = vld [vmem:[#allocation2 + $0x8] sm:$0xff] }
 0x3b9   : > { %5155 = vmatprep.subr.bf16.mxu0 %v6167_v0  ;;  %v1441_v49 = vpack.c.bf16 %v1440_v46, %v1439_v47  ;;  %v1657_v59 = vld [vmem:[#allocation2 + $0x2] sm:$0xff]  ;;  %v1658_v60 = vld [vmem:[#allocation2 + $0xa] sm:$0xff] }
 0x3ba   : > { %v1659_v61 = vpack.c.bf16 %v1658_v60, %v1657_v59  ;;  %v5946_v39 = vld [vmem:[#allocation3 + $0x3b0] sm:$0xff]   ;;  %v5953_v46 = vld [vmem:[#allocation3 + $0x428] sm:$0xff]  }
 0x3bb   : > { %v5954_v47 = vld [vmem:[#allocation3 + $0x430] sm:$0xff]  }
 0x3bc   : > { %5156 = vmatpush3.bf16.msra.mxu0 %v5910_v40  ;;  %v5947_v40 = vld [vmem:[#allocation3 + $0x3b8] sm:$0xff]  }
 0x3bd   : > { %5157 = vmatprep.subr.bf16.mxu0 %v6167_v0 }
 0x3c0   : > { %5158 = vmatpush3.bf16.msra.mxu0 %v5911_v41 }
 0x3c1   : > { %5159 = vmatprep.subr.bf16.mxu0 %v6167_v0 }
 0x3c4   : > { %5160 = vmatpush3.bf16.msra.mxu0 %v5912_v42 }
 0x3c5   : > { %5161 = vmatprep.subr.bf16.mxu0 %v6167_v0 }
 0x3c8   : > { %5162 = vmatpush3.bf16.msra.mxu0 %v5913_v43 }
 0x3c9   : > { %5163 = vmatprep.subr.bf16.mxu0 %v6167_v0 }
 0x3cc   : > { %5164 = vmatpush3.bf16.msra.mxu0 %v5914_v44  ;;  %v5951_v44 = vld [vmem:[#allocation3 + $0x418] sm:$0xff]  }
 0x3cd   : > { %5165 = vmatprep.subr.bf16.mxu0 %v6167_v0 }
 0x3d0   : > { %5166 = vmatpush3.bf16.msra.mxu0 %v5915_v45  ;;  %v5952_v45 = vld [vmem:[#allocation3 + $0x420] sm:$0xff]  }
 0x3d1   : > { %5171 = vmatprep.subr.bf16.mxu0 %v6167_v0 }
 0x3d3   : > { %5168 = vmatmul.mubr.bf16.vlgmr.msra.gmra.mrb[8].mxu0 %v1441_v49  ;;  %v5972_v49 = vld [vmem:[#allocation3 + $0x4c0] sm:$0xff]  }
 0x3d4   : > { %5172 = vmatpush3.bf16.msra.mxu0 %v5916_v48  ;;  %5187 = vmatprep.mubr.msk.bf16.mxu0 %vm6168_vm0, %v6167_v0  ;;  %v5955_v48 = vld [vmem:[#allocation3 + $0x438] sm:$0xff]  }
 0x3d5   : > { %5173 = vmatprep.subr.bf16.mxu0 %v6167_v0 }
 0x3d8   : > { %5174 = vmatpush3.bf16.msra.mxu0 %v5917_v50  ;;  %v5973_v50 = vld [vmem:[#allocation3 + $0x4c8] sm:$0xff]  }
 0x3d9   : > { %5175 = vmatprep.subr.bf16.mxu0 %v6167_v0 }
 0x3dc   : > { %5176 = vmatpush3.bf16.msra.mxu0 %v5918_v51  ;;  %v5974_v51 = vld [vmem:[#allocation3 + $0x4d0] sm:$0xff]  }
 0x3dd   : > { %5177 = vmatprep.subr.bf16.mxu0 %v6167_v0 }
 0x3e0   : > { %5178 = vmatpush3.bf16.msra.mxu0 %v5919_v52  ;;  %v4452_v52 = vld [vmem:[%s6859_s2 + $0x8] ss:$0 sm:$0xff] }
 0x3e1   : > { %5179 = vmatprep.subr.bf16.mxu0 %v6167_v0 }
 0x3e4   : > { %5180 = vmatpush3.bf16.msra.mxu0 %v5920_v54 }
 0x3e5   : > { %5181 = vmatprep.subr.bf16.mxu0 %v6167_v0 }
 0x3e8   : > { %5182 = vmatpush3.bf16.msra.mxu0 %v5921_v56  ;;  %v4454_v56 = vld [vmem:[%s6859_s2 + $0x9] ss:$0 sm:$0xff] }
 0x3e9   : > { %5183 = vmatprep.subr.bf16.mxu0 %v6167_v0 }
 0x3ec   : > { %5184 = vmatpush3.bf16.msra.mxu0 %v5922_v57 }
 0x3ed   : > { %5185 = vmatprep.subr.bf16.mxu0 %v6167_v0 }
 0x3f0   : > { %5186 = vmatpush3.bf16.msra.mxu0 %v5923_v58 }
 0x3f1   : > { %5251 = vmatprep.subr.bf16.mxu0 %v6167_v0 }
 0x3f3   : > { %5188 = vmatmul.mubr.bf16.vlgmr.msra.gmra.mrb[8].mxu0 %v1659_v61 }
 0x3f4   : > { %5267 = vmatprep.mubr.msk.bf16.mxu0 %vm6168_vm0, %v6167_v0  ;;  %5252 = vmatpush3.bf16.msra.mxu0 %v5948_v4 }
 0x3f5   : > { %5253 = vmatprep.subr.bf16.mxu0 %v6167_v0 }
 0x3f8   : > { %5254 = vmatpush3.bf16.msra.mxu0 %v5949_v5  ;;  %v5956_v5 = vld [vmem:[#allocation3 + $0x3c0] sm:$0xff]  }
 0x3f9   : > { %5255 = vmatprep.subr.bf16.mxu0 %v6167_v0 }
 0x3fc   : > { %5256 = vmatpush3.bf16.msra.mxu0 %v5950_v6 }
 0x3fd   : > { %5257 = vmatprep.subr.bf16.mxu0 %v6167_v0 }
 0x400   : > { %5258 = vmatpush3.bf16.msra.mxu0 %v5951_v44 }
 0x401   : > { %5259 = vmatprep.subr.bf16.mxu0 %v6167_v0 }
 0x404   : > { %5260 = vmatpush3.bf16.msra.mxu0 %v5952_v45 }
 0x405   : > { %5261 = vmatprep.subr.bf16.mxu0 %v6167_v0 }
 0x408   : > { %5262 = vmatpush3.bf16.msra.mxu0 %v5953_v46 }
 0x409   : > { %5263 = vmatprep.subr.bf16.mxu0 %v6167_v0 }
 0x40c   : > { %5264 = vmatpush3.bf16.msra.mxu0 %v5954_v47 }
 0x40d   : > { %5265 = vmatprep.subr.bf16.mxu0 %v6167_v0 }
 0x410   : > { %5266 = vmatpush3.bf16.msra.mxu0 %v5955_v48 }
 0x411   : > { %5271 = vmatprep.subr.bf16.mxu0 %v6167_v0 }
 0x4c6   : > { %v1759_v8 = vpop.f32.mrb[8].mxu0 }
 0x4c7   : > { %v1774_v10 = vmul.f32 %v4424_v7, %v1759_v8  ;;  %v5189_v11 = vpop.f32.mrb[9].mxu0  ;;  %v5958_v8 = vld [vmem:[#allocation3 + $0x3d0] sm:$0xff]  }
 0x4c8   : > { %v1762_v12 = vpop.f32.mrb[10].mxu0  ;;  %v5961_v11 = vld [vmem:[#allocation3 + $0x3e8] sm:$0xff]  }
 0x4c9   : > { %v1781_v13 = vadd.f32 %v4426_v9, %v1774_v10  ;;  %v1775_v14 = vmul.f32 %v4424_v7, %v1762_v12  ;;  %v5190_v15 = vpop.f32.mrb[11].mxu0  ;;  %v5957_v7 = vld [vmem:[#allocation3 + $0x3c8] sm:$0xff]   ;;  %v5960_v10 = vld [vmem:[#allocation3 + $0x3e0] sm:$0xff]   ;;  %v5962_v12 = vld [vmem:[#allocation3 + $0x3f0] sm:$0xff]  }
 0x4cb   : > { %vm1783_vm7 = vcmp.ge.f32.partialorder %v1781_v13, 0.0  ;;  %v1785_v16 = vmul.f32 0.01, %v1781_v13  ;;  %v1782_v17 = vadd.f32 %v4426_v9, %v1775_v14  ;;  %v5959_v9 = vld [vmem:[#allocation3 + $0x3d8] sm:$0xff]  }
 0x4cd   : > { %v1787_v18 = vsel %vm1783_vm7, %v1781_v13, %v1785_v16  ;;  %vm1784_vm8 = vcmp.ge.f32.partialorder %v1782_v17, 0.0  ;;  %v1786_v19 = vmul.f32 0.01, %v1782_v17  ;;  %v5963_v13 = vld [vmem:[#allocation3 + $0x3f8] sm:$0xff]   ;;  %v5964_v16 = vld [vmem:[#allocation3 + $0x440] sm:$0xff]   ;;  %vm4199_vm7 = vcmask 1042434  }
 0x4ce   : > { %1789 = vst [vmem:[#allocation2 + $0x1] sm:$0xff] %v1787_v18 }
 0x4cf   : > { %v1788_v20 = vsel %vm1784_vm8, %v1782_v17, %v1786_v19  ;;  %v5966_v19 = vld [vmem:[#allocation3 + $0x450] sm:$0xff]   ;;  %vm4201_vm8 = vcmask 1043459  }
 0x4d0   : > { %1790 = vst [vmem:[#allocation2 + $0x9] sm:$0xff] %v1788_v20  ;;  %v1813_v22 = vpack.c.bf16 %v1788_v20, %v1787_v18  ;;  %v5965_v18 = vld [vmem:[#allocation3 + $0x448] sm:$0xff]   ;;  %v5967_v20 = vld [vmem:[#allocation3 + $0x458] sm:$0xff]  }
 0x4d2   : > { %5208 = vmatmul.mubr.bf16.vlgmr.msra.gmra.mrb[8].mxu1 %v1813_v22  ;;  %v5969_v22 = vld [vmem:[#allocation3 + $0x468] sm:$0xff]  }
 0x4d3   : > { %5212 = vmatpush3.bf16.msra.mxu1 %v5932_v21  ;;  %5227 = vmatprep.mubr.msk.bf16.mxu1 %vm6168_vm0, %v6167_v0  ;;  %v5968_v21 = vld [vmem:[#allocation3 + $0x460] sm:$0xff]  }
 0x4d4   : > { %5213 = vmatprep.subr.bf16.mxu1 %v6167_v0 }
 0x4d5   : > { %v1791_v31 = vld [vmem:[#allocation2] sm:$0xff] }
 0x4d7   : > { %5214 = vmatpush3.bf16.msra.mxu1 %v5933_v23  ;;  %v1792_v30 = vld [vmem:[#allocation2 + $0x8] sm:$0xff] }
 0x4d8   : > { %5215 = vmatprep.subr.bf16.mxu1 %v6167_v0  ;;  %v1793_v33 = vpack.c.bf16 %v1792_v30, %v1791_v31  ;;  %v2009_v41 = vld [vmem:[#allocation2 + $0x2] sm:$0xff]  ;;  %v2010_v42 = vld [vmem:[#allocation2 + $0xa] sm:$0xff] }
 0x4d9   : > { %v2011_v43 = vpack.c.bf16 %v2010_v42, %v2009_v41  ;;  %v5970_v23 = vld [vmem:[#allocation3 + $0x470] sm:$0xff]   ;;  %v5977_v30 = vld [vmem:[#allocation3 + $0x4e8] sm:$0xff]  }
 0x4da   : > { %v5978_v31 = vld [vmem:[#allocation3 + $0x4f0] sm:$0xff]  }
 0x4db   : > { %5216 = vmatpush3.bf16.msra.mxu1 %v5934_v24  ;;  %v5971_v24 = vld [vmem:[#allocation3 + $0x478] sm:$0xff]  }
 0x4dc   : > { %5217 = vmatprep.subr.bf16.mxu1 %v6167_v0 }
 0x4df   : > { %5218 = vmatpush3.bf16.msra.mxu1 %v5935_v25 }
 0x4e0   : > { %5219 = vmatprep.subr.bf16.mxu1 %v6167_v0 }
 0x4e3   : > { %5220 = vmatpush3.bf16.msra.mxu1 %v5936_v26 }
 0x4e4   : > { %5221 = vmatprep.subr.bf16.mxu1 %v6167_v0 }
 0x4e7   : > { %5222 = vmatpush3.bf16.msra.mxu1 %v5937_v27 }
 0x4e8   : > { %5223 = vmatprep.subr.bf16.mxu1 %v6167_v0 }
 0x4eb   : > { %5224 = vmatpush3.bf16.msra.mxu1 %v5938_v28  ;;  %v5975_v28 = vld [vmem:[#allocation3 + $0x4d8] sm:$0xff]  }
 0x4ec   : > { %5225 = vmatprep.subr.bf16.mxu1 %v6167_v0 }
 0x4ef   : > { %5226 = vmatpush3.bf16.msra.mxu1 %v5939_v29  ;;  %v5976_v29 = vld [vmem:[#allocation3 + $0x4e0] sm:$0xff]  }
 0x4f0   : > { %5231 = vmatprep.subr.bf16.mxu1 %v6167_v0 }
 0x4f2   : > { %5228 = vmatmul.mubr.bf16.vlgmr.msra.gmra.mrb[8].mxu1 %v1793_v33  ;;  %v5996_v33 = vld [vmem:[#allocation3 + $0x580] sm:$0xff]  }
 0x4f3   : > { %5232 = vmatpush3.bf16.msra.mxu1 %v5940_v32  ;;  %5247 = vmatprep.mubr.msk.bf16.mxu1 %vm6168_vm0, %v6167_v0  ;;  %v5979_v32 = vld [vmem:[#allocation3 + $0x4f8] sm:$0xff]  }
 0x4f4   : > { %5233 = vmatprep.subr.bf16.mxu1 %v6167_v0 }
 0x4f7   : > { %5234 = vmatpush3.bf16.msra.mxu1 %v5941_v34  ;;  %v5997_v34 = vld [vmem:[#allocation3 + $0x588] sm:$0xff]  }
 0x4f8   : > { %5235 = vmatprep.subr.bf16.mxu1 %v6167_v0 }
 0x4fb   : > { %5236 = vmatpush3.bf16.msra.mxu1 %v5942_v35  ;;  %v5998_v35 = vld [vmem:[#allocation3 + $0x590] sm:$0xff]  }
 0x4fc   : > { %5237 = vmatprep.subr.bf16.mxu1 %v6167_v0 }
 0x4ff   : > { %5238 = vmatpush3.bf16.msra.mxu1 %v5943_v36  ;;  %v4480_v36 = vld [vmem:[%s6859_s2 + $0xa] ss:$0 sm:$0xff] }
 0x500   : > { %5239 = vmatprep.subr.bf16.mxu1 %v6167_v0 }
 0x503   : > { %5240 = vmatpush3.bf16.msra.mxu1 %v5944_v37 }
 0x504   : > { %5241 = vmatprep.subr.bf16.mxu1 %v6167_v0 }
 0x507   : > { %5242 = vmatpush3.bf16.msra.mxu1 %v5945_v38  ;;  %v4482_v38 = vld [vmem:[%s6859_s2 + $0xb] ss:$0 sm:$0xff] }
 0x508   : > { %5243 = vmatprep.subr.bf16.mxu1 %v6167_v0 }
 0x50b   : > { %5244 = vmatpush3.bf16.msra.mxu1 %v5946_v39 }
 0x50c   : > { %5245 = vmatprep.subr.bf16.mxu1 %v6167_v0 }
 0x50f   : > { %5246 = vmatpush3.bf16.msra.mxu1 %v5947_v40 }
 0x510   : > { %5311 = vmatprep.subr.bf16.mxu1 %v6167_v0 }
 0x512   : > { %5248 = vmatmul.mubr.bf16.vlgmr.msra.gmra.mrb[8].mxu1 %v2011_v43 }
 0x513   : > { %5327 = vmatprep.mubr.msk.bf16.mxu1 %vm6168_vm0, %v6167_v0  ;;  %5312 = vmatpush3.bf16.msra.mxu1 %v5972_v49 }
 0x514   : > { %5313 = vmatprep.subr.bf16.mxu1 %v6167_v0 }
 0x517   : > { %5314 = vmatpush3.bf16.msra.mxu1 %v5973_v50  ;;  %v5980_v50 = vld [vmem:[#allocation3 + $0x480] sm:$0xff]  }
 0x518   : > { %5315 = vmatprep.subr.bf16.mxu1 %v6167_v0 }
 0x51b   : > { %5316 = vmatpush3.bf16.msra.mxu1 %v5974_v51 }
 0x51c   : > { %5317 = vmatprep.subr.bf16.mxu1 %v6167_v0 }
 0x51f   : > { %5318 = vmatpush3.bf16.msra.mxu1 %v5975_v28 }
 0x520   : > { %5319 = vmatprep.subr.bf16.mxu1 %v6167_v0 }
 0x523   : > { %5320 = vmatpush3.bf16.msra.mxu1 %v5976_v29 }
 0x524   : > { %5321 = vmatprep.subr.bf16.mxu1 %v6167_v0 }
 0x527   : > { %5322 = vmatpush3.bf16.msra.mxu1 %v5977_v30 }
 0x528   : > { %5323 = vmatprep.subr.bf16.mxu1 %v6167_v0 }
 0x52b   : > { %5324 = vmatpush3.bf16.msra.mxu1 %v5978_v31 }
 0x52c   : > { %5325 = vmatprep.subr.bf16.mxu1 %v6167_v0 }
 0x52f   : > { %5326 = vmatpush3.bf16.msra.mxu1 %v5979_v32 }
 0x530   : > { %5331 = vmatprep.subr.bf16.mxu1 %v6167_v0 }
 0x5e5   : > { %v2111_v54 = vpop.f32.mrb[8].mxu1 }
 0x5e6   : > { %v2126_v57 = vmul.f32 %v4452_v52, %v2111_v54  ;;  %v5249_v58 = vpop.f32.mrb[9].mxu1  ;;  %v5982_v54 = vld [vmem:[#allocation3 + $0x490] sm:$0xff]  }
 0x5e7   : > { %v2114_v59 = vpop.f32.mrb[10].mxu1  ;;  %v5985_v58 = vld [vmem:[#allocation3 + $0x4a8] sm:$0xff]  }
 0x5e8   : > { %v2133_v60 = vadd.f32 %v4454_v56, %v2126_v57  ;;  %v2127_v61 = vmul.f32 %v4452_v52, %v2114_v59  ;;  %v5250_v62 = vpop.f32.mrb[11].mxu1  ;;  %v5981_v52 = vld [vmem:[#allocation3 + $0x488] sm:$0xff]   ;;  %v5984_v57 = vld [vmem:[#allocation3 + $0x4a0] sm:$0xff]   ;;  %v5986_v59 = vld [vmem:[#allocation3 + $0x4b0] sm:$0xff]  }
 0x5ea   : > { %vm2135_vm9 = vcmp.ge.f32.partialorder %v2133_v60, 0.0  ;;  %v2137_v63 = vmul.f32 0.01, %v2133_v60  ;;  %v2134_v1 = vadd.f32 %v4454_v56, %v2127_v61  ;;  %v5983_v56 = vld [vmem:[#allocation3 + $0x498] sm:$0xff]  }
 0x5ec   : > { %v2139_v2 = vsel %vm2135_vm9, %v2133_v60, %v2137_v63  ;;  %vm2136_vm10 = vcmp.ge.f32.partialorder %v2134_v1, 0.0  ;;  %v2138_v3 = vmul.f32 0.01, %v2134_v1  ;;  %v5987_v60 = vld [vmem:[#allocation3 + $0x4b8] sm:$0xff]   ;;  %v5988_v63 = vld [vmem:[#allocation3 + $0x500] sm:$0xff]   ;;  %vm4203_vm9 = vcmask 1044484  }
 0x5ed   : > { %2141 = vst [vmem:[#allocation2 + $0x1] sm:$0xff] %v2139_v2 }
 0x5ee   : > { %v2140_v4 = vsel %vm2136_vm10, %v2134_v1, %v2138_v3  ;;  %v5990_v3 = vld [vmem:[#allocation3 + $0x510] sm:$0xff]   ;;  %vm4205_vm10 = vcmask 1045509  }
 0x5ef   : > { %2142 = vst [vmem:[#allocation2 + $0x9] sm:$0xff] %v2140_v4  ;;  %v2165_v6 = vpack.c.bf16 %v2140_v4, %v2139_v2  ;;  %v5989_v2 = vld [vmem:[#allocation3 + $0x508] sm:$0xff]   ;;  %v5991_v4 = vld [vmem:[#allocation3 + $0x518] sm:$0xff]  }
 0x5f1   : > { %5268 = vmatmul.mubr.bf16.vlgmr.msra.gmra.mrb[12].mxu0 %v2165_v6  ;;  %v5993_v6 = vld [vmem:[#allocation3 + $0x528] sm:$0xff]  }
 0x5f2   : > { %5272 = vmatpush3.bf16.msra.mxu0 %v5956_v5  ;;  %5287 = vmatprep.mubr.msk.bf16.mxu0 %vm6168_vm0, %v6167_v0  ;;  %v5992_v5 = vld [vmem:[#allocation3 + $0x520] sm:$0xff]  }
 0x5f3   : > { %5273 = vmatprep.subr.bf16.mxu0 %v6167_v0 }
 0x5f4   : > { %v2143_v15 = vld [vmem:[#allocation2] sm:$0xff] }
 0x5f6   : > { %5274 = vmatpush3.bf16.msra.mxu0 %v5957_v7  ;;  %v2144_v14 = vld [vmem:[#allocation2 + $0x8] sm:$0xff] }
 0x5f7   : > { %5275 = vmatprep.subr.bf16.mxu0 %v6167_v0  ;;  %v2145_v17 = vpack.c.bf16 %v2144_v14, %v2143_v15  ;;  %v2361_v25 = vld [vmem:[#allocation2 + $0x2] sm:$0xff]  ;;  %v2362_v26 = vld [vmem:[#allocation2 + $0xa] sm:$0xff] }
 0x5f8   : > { %v2363_v27 = vpack.c.bf16 %v2362_v26, %v2361_v25  ;;  %v5994_v7 = vld [vmem:[#allocation3 + $0x530] sm:$0xff]   ;;  %v6001_v14 = vld [vmem:[#allocation3 + $0x5a8] sm:$0xff]  }
 0x5f9   : > { %v6002_v15 = vld [vmem:[#allocation3 + $0x5b0] sm:$0xff]  }
 0x5fa   : > { %5276 = vmatpush3.bf16.msra.mxu0 %v5958_v8  ;;  %v5995_v8 = vld [vmem:[#allocation3 + $0x538] sm:$0xff]  }
 0x5fb   : > { %5277 = vmatprep.subr.bf16.mxu0 %v6167_v0 }
 0x5fe   : > { %5278 = vmatpush3.bf16.msra.mxu0 %v5959_v9 }
 0x5ff   : > { %5279 = vmatprep.subr.bf16.mxu0 %v6167_v0 }
 0x602   : > { %5280 = vmatpush3.bf16.msra.mxu0 %v5960_v10 }
 0x603   : > { %5281 = vmatprep.subr.bf16.mxu0 %v6167_v0 }
 0x606   : > { %5282 = vmatpush3.bf16.msra.mxu0 %v5961_v11 }
 0x607   : > { %5283 = vmatprep.subr.bf16.mxu0 %v6167_v0 }
 0x60a   : > { %5284 = vmatpush3.bf16.msra.mxu0 %v5962_v12  ;;  %v5999_v12 = vld [vmem:[#allocation3 + $0x598] sm:$0xff]  }
 0x60b   : > { %5285 = vmatprep.subr.bf16.mxu0 %v6167_v0 }
 0x60e   : > { %5286 = vmatpush3.bf16.msra.mxu0 %v5963_v13  ;;  %v6000_v13 = vld [vmem:[#allocation3 + $0x5a0] sm:$0xff]  }
 0x60f   : > { %5291 = vmatprep.subr.bf16.mxu0 %v6167_v0 }
 0x611   : > { %5288 = vmatmul.mubr.bf16.vlgmr.msra.gmra.mrb[12].mxu0 %v2145_v17  ;;  %v6020_v17 = vld [vmem:[#allocation3 + $0x640] sm:$0xff]  }
 0x612   : > { %5292 = vmatpush3.bf16.msra.mxu0 %v5964_v16  ;;  %5307 = vmatprep.mubr.msk.bf16.mxu0 %vm6168_vm0, %v6167_v0  ;;  %v6003_v16 = vld [vmem:[#allocation3 + $0x5b8] sm:$0xff]  }
 0x613   : > { %5293 = vmatprep.subr.bf16.mxu0 %v6167_v0 }
 0x616   : > { %5294 = vmatpush3.bf16.msra.mxu0 %v5965_v18  ;;  %v6021_v18 = vld [vmem:[#allocation3 + $0x648] sm:$0xff]  }
 0x617   : > { %5295 = vmatprep.subr.bf16.mxu0 %v6167_v0 }
 0x61a   : > { %5296 = vmatpush3.bf16.msra.mxu0 %v5966_v19  ;;  %v6022_v19 = vld [vmem:[#allocation3 + $0x650] sm:$0xff]  }
 0x61b   : > { %5297 = vmatprep.subr.bf16.mxu0 %v6167_v0 }
 0x61e   : > { %5298 = vmatpush3.bf16.msra.mxu0 %v5967_v20  ;;  %v4508_v20 = vld [vmem:[%s6859_s2 + $0xc] ss:$0 sm:$0xff] }
 0x61f   : > { %5299 = vmatprep.subr.bf16.mxu0 %v6167_v0 }
 0x622   : > { %5300 = vmatpush3.bf16.msra.mxu0 %v5968_v21 }
 0x623   : > { %5301 = vmatprep.subr.bf16.mxu0 %v6167_v0 }
 0x626   : > { %5302 = vmatpush3.bf16.msra.mxu0 %v5969_v22  ;;  %v4510_v22 = vld [vmem:[%s6859_s2 + $0xd] ss:$0 sm:$0xff] }
 0x627   : > { %5303 = vmatprep.subr.bf16.mxu0 %v6167_v0 }
 0x62a   : > { %5304 = vmatpush3.bf16.msra.mxu0 %v5970_v23 }
 0x62b   : > { %5305 = vmatprep.subr.bf16.mxu0 %v6167_v0 }
 0x62e   : > { %5306 = vmatpush3.bf16.msra.mxu0 %v5971_v24 }
 0x62f   : > { %5371 = vmatprep.subr.bf16.mxu0 %v6167_v0 }
 0x631   : > { %5308 = vmatmul.mubr.bf16.vlgmr.msra.gmra.mrb[12].mxu0 %v2363_v27 }
 0x632   : > { %5387 = vmatprep.mubr.msk.bf16.mxu0 %vm6168_vm0, %v6167_v0  ;;  %5372 = vmatpush3.bf16.msra.mxu0 %v5996_v33 }
 0x633   : > { %5373 = vmatprep.subr.bf16.mxu0 %v6167_v0 }
 0x636   : > { %5374 = vmatpush3.bf16.msra.mxu0 %v5997_v34  ;;  %v6004_v34 = vld [vmem:[#allocation3 + $0x540] sm:$0xff]  }
 0x637   : > { %5375 = vmatprep.subr.bf16.mxu0 %v6167_v0 }
 0x63a   : > { %5376 = vmatpush3.bf16.msra.mxu0 %v5998_v35 }
 0x63b   : > { %5377 = vmatprep.subr.bf16.mxu0 %v6167_v0 }
 0x63e   : > { %5378 = vmatpush3.bf16.msra.mxu0 %v5999_v12 }
 0x63f   : > { %5379 = vmatprep.subr.bf16.mxu0 %v6167_v0 }
 0x642   : > { %5380 = vmatpush3.bf16.msra.mxu0 %v6000_v13 }
 0x643   : > { %5381 = vmatprep.subr.bf16.mxu0 %v6167_v0 }
 0x646   : > { %5382 = vmatpush3.bf16.msra.mxu0 %v6001_v14 }
 0x647   : > { %5383 = vmatprep.subr.bf16.mxu0 %v6167_v0 }
 0x64a   : > { %5384 = vmatpush3.bf16.msra.mxu0 %v6002_v15 }
 0x64b   : > { %5385 = vmatprep.subr.bf16.mxu0 %v6167_v0 }
 0x64e   : > { %5386 = vmatpush3.bf16.msra.mxu0 %v6003_v16 }
 0x64f   : > { %5391 = vmatprep.subr.bf16.mxu0 %v6167_v0 }
 0x704   : > { %v2463_v37 = vpop.f32.mrb[12].mxu0 }
 0x705   : > { %v2478_v39 = vmul.f32 %v4480_v36, %v2463_v37  ;;  %v5309_v40 = vpop.f32.mrb[13].mxu0  ;;  %v6006_v37 = vld [vmem:[#allocation3 + $0x550] sm:$0xff]  }
 0x706   : > { %v2466_v41 = vpop.f32.mrb[14].mxu0  ;;  %v6009_v40 = vld [vmem:[#allocation3 + $0x568] sm:$0xff]  }
 0x707   : > { %v2485_v42 = vadd.f32 %v4482_v38, %v2478_v39  ;;  %v2479_v43 = vmul.f32 %v4480_v36, %v2466_v41  ;;  %v5310_v44 = vpop.f32.mrb[15].mxu0  ;;  %v6005_v36 = vld [vmem:[#allocation3 + $0x548] sm:$0xff]   ;;  %v6008_v39 = vld [vmem:[#allocation3 + $0x560] sm:$0xff]   ;;  %v6010_v41 = vld [vmem:[#allocation3 + $0x570] sm:$0xff]  }
 0x709   : > { %vm2487_vm11 = vcmp.ge.f32.partialorder %v2485_v42, 0.0  ;;  %v2489_v45 = vmul.f32 0.01, %v2485_v42  ;;  %v2486_v46 = vadd.f32 %v4482_v38, %v2479_v43  ;;  %v6007_v38 = vld [vmem:[#allocation3 + $0x558] sm:$0xff]  }
 0x70b   : > { %v2491_v47 = vsel %vm2487_vm11, %v2485_v42, %v2489_v45  ;;  %vm2488_vm12 = vcmp.ge.f32.partialorder %v2486_v46, 0.0  ;;  %v2490_v48 = vmul.f32 0.01, %v2486_v46  ;;  %v6011_v42 = vld [vmem:[#allocation3 + $0x578] sm:$0xff]   ;;  %v6012_v45 = vld [vmem:[#allocation3 + $0x5c0] sm:$0xff]   ;;  %vm4207_vm11 = vcmask 1046534  }
 0x70c   : > { %2493 = vst [vmem:[#allocation2 + $0x1] sm:$0xff] %v2491_v47 }
 0x70d   : > { %v2492_v49 = vsel %vm2488_vm12, %v2486_v46, %v2490_v48  ;;  %v6014_v48 = vld [vmem:[#allocation3 + $0x5d0] sm:$0xff]   ;;  %vm4209_vm12 = vcmask 1047559  }
 0x70e   : > { %2494 = vst [vmem:[#allocation2 + $0x9] sm:$0xff] %v2492_v49  ;;  %v2517_v51 = vpack.c.bf16 %v2492_v49, %v2491_v47  ;;  %v6013_v47 = vld [vmem:[#allocation3 + $0x5c8] sm:$0xff]   ;;  %v6015_v49 = vld [vmem:[#allocation3 + $0x5d8] sm:$0xff]  }
 0x710   : > { %5328 = vmatmul.mubr.bf16.vlgmr.msra.gmra.mrb[12].mxu1 %v2517_v51  ;;  %v6017_v51 = vld [vmem:[#allocation3 + $0x5e8] sm:$0xff]  }
 0x711   : > { %5332 = vmatpush3.bf16.msra.mxu1 %v5980_v50  ;;  %5347 = vmatprep.mubr.msk.bf16.mxu1 %vm6168_vm0, %v6167_v0  ;;  %v6016_v50 = vld [vmem:[#allocation3 + $0x5e0] sm:$0xff]  }
 0x712   : > { %5333 = vmatprep.subr.bf16.mxu1 %v6167_v0 }
 0x713   : > { %v2495_v62 = vld [vmem:[#allocation2] sm:$0xff] }
 0x715   : > { %5334 = vmatpush3.bf16.msra.mxu1 %v5981_v52  ;;  %v2496_v61 = vld [vmem:[#allocation2 + $0x8] sm:$0xff] }
 0x716   : > { %5335 = vmatprep.subr.bf16.mxu1 %v6167_v0  ;;  %v2497_v1 = vpack.c.bf16 %v2496_v61, %v2495_v62  ;;  %v2713_v9 = vld [vmem:[#allocation2 + $0x2] sm:$0xff]  ;;  %v2714_v10 = vld [vmem:[#allocation2 + $0xa] sm:$0xff] }
 0x717   : > { %v2715_v11 = vpack.c.bf16 %v2714_v10, %v2713_v9  ;;  %v6018_v52 = vld [vmem:[#allocation3 + $0x5f0] sm:$0xff]   ;;  %v6025_v61 = vld [vmem:[#allocation3 + $0x668] sm:$0xff]  }
 0x718   : > { %v6026_v62 = vld [vmem:[#allocation3 + $0x670] sm:$0xff]  }
 0x719   : > { %5336 = vmatpush3.bf16.msra.mxu1 %v5982_v54  ;;  %v6019_v54 = vld [vmem:[#allocation3 + $0x5f8] sm:$0xff]  }
 0x71a   : > { %5337 = vmatprep.subr.bf16.mxu1 %v6167_v0 }
 0x71d   : > { %5338 = vmatpush3.bf16.msra.mxu1 %v5983_v56 }
 0x71e   : > { %5339 = vmatprep.subr.bf16.mxu1 %v6167_v0 }
 0x721   : > { %5340 = vmatpush3.bf16.msra.mxu1 %v5984_v57 }
 0x722   : > { %5341 = vmatprep.subr.bf16.mxu1 %v6167_v0 }
 0x725   : > { %5342 = vmatpush3.bf16.msra.mxu1 %v5985_v58 }
 0x726   : > { %5343 = vmatprep.subr.bf16.mxu1 %v6167_v0 }
 0x729   : > { %5344 = vmatpush3.bf16.msra.mxu1 %v5986_v59  ;;  %v6023_v59 = vld [vmem:[#allocation3 + $0x658] sm:$0xff]  }
 0x72a   : > { %5345 = vmatprep.subr.bf16.mxu1 %v6167_v0 }
 0x72d   : > { %5346 = vmatpush3.bf16.msra.mxu1 %v5987_v60  ;;  %v6024_v60 = vld [vmem:[#allocation3 + $0x660] sm:$0xff]  }
 0x72e   : > { %5351 = vmatprep.subr.bf16.mxu1 %v6167_v0 }
 0x730   : > { %5348 = vmatmul.mubr.bf16.vlgmr.msra.gmra.mrb[12].mxu1 %v2497_v1  ;;  %v6044_v1 = vld [vmem:[#allocation3 + $0x700] sm:$0xff]  }
 0x731   : > { %5352 = vmatpush3.bf16.msra.mxu1 %v5988_v63  ;;  %5367 = vmatprep.mubr.msk.bf16.mxu1 %vm6168_vm0, %v6167_v0  ;;  %v6027_v63 = vld [vmem:[#allocation3 + $0x678] sm:$0xff]  }
 0x732   : > { %5353 = vmatprep.subr.bf16.mxu1 %v6167_v0 }
 0x735   : > { %5354 = vmatpush3.bf16.msra.mxu1 %v5989_v2  ;;  %v6045_v2 = vld [vmem:[#allocation3 + $0x708] sm:$0xff]  }
 0x736   : > { %5355 = vmatprep.subr.bf16.mxu1 %v6167_v0 }
 0x739   : > { %5356 = vmatpush3.bf16.msra.mxu1 %v5990_v3  ;;  %v6046_v3 = vld [vmem:[#allocation3 + $0x710] sm:$0xff]  }
 0x73a   : > { %5357 = vmatprep.subr.bf16.mxu1 %v6167_v0 }
 0x73d   : > { %5358 = vmatpush3.bf16.msra.mxu1 %v5991_v4  ;;  %v4536_v4 = vld [vmem:[%s6859_s2 + $0xe] ss:$0 sm:$0xff] }
 0x73e   : > { %5359 = vmatprep.subr.bf16.mxu1 %v6167_v0 }
 0x741   : > { %5360 = vmatpush3.bf16.msra.mxu1 %v5992_v5 }
 0x742   : > { %5361 = vmatprep.subr.bf16.mxu1 %v6167_v0 }
 0x745   : > { %5362 = vmatpush3.bf16.msra.mxu1 %v5993_v6  ;;  %v4538_v6 = vld [vmem:[%s6859_s2 + $0xf] ss:$0 sm:$0xff] }
 0x746   : > { %5363 = vmatprep.subr.bf16.mxu1 %v6167_v0 }
 0x749   : > { %5364 = vmatpush3.bf16.msra.mxu1 %v5994_v7 }
 0x74a   : > { %5365 = vmatprep.subr.bf16.mxu1 %v6167_v0 }
 0x74d   : > { %5366 = vmatpush3.bf16.msra.mxu1 %v5995_v8 }
 0x74e   : > { %5431 = vmatprep.subr.bf16.mxu1 %v6167_v0 }
 0x750   : > { %5368 = vmatmul.mubr.bf16.vlgmr.msra.gmra.mrb[12].mxu1 %v2715_v11 }
 0x751   : > { %5447 = vmatprep.mubr.msk.bf16.mxu1 %vm6168_vm0, %v6167_v0  ;;  %5432 = vmatpush3.bf16.msra.mxu1 %v6020_v17 }
 0x752   : > { %5433 = vmatprep.subr.bf16.mxu1 %v6167_v0 }
 0x755   : > { %5434 = vmatpush3.bf16.msra.mxu1 %v6021_v18  ;;  %v6028_v18 = vld [vmem:[#allocation3 + $0x600] sm:$0xff]  }
 0x756   : > { %5435 = vmatprep.subr.bf16.mxu1 %v6167_v0 }
 0x759   : > { %5436 = vmatpush3.bf16.msra.mxu1 %v6022_v19 }
 0x75a   : > { %5437 = vmatprep.subr.bf16.mxu1 %v6167_v0 }
 0x75d   : > { %5438 = vmatpush3.bf16.msra.mxu1 %v6023_v59 }
 0x75e   : > { %5439 = vmatprep.subr.bf16.mxu1 %v6167_v0 }
 0x761   : > { %5440 = vmatpush3.bf16.msra.mxu1 %v6024_v60  ;;  %v3911_v60 = vld [vmem:[%s6862_s5 + $0x40] sm:$0xff] }
 0x762   : > { %5441 = vmatprep.subr.bf16.mxu1 %v6167_v0 }
 0x765   : > { %5442 = vmatpush3.bf16.msra.mxu1 %v6025_v61  ;;  %v3912_v61 = vld [vmem:[%s6862_s5 + $0x48] sm:$0xff] }
 0x766   : > { %5443 = vmatprep.subr.bf16.mxu1 %v6167_v0 }
 0x769   : > { %5444 = vmatpush3.bf16.msra.mxu1 %v6026_v62  ;;  %v5637_v62 = vpack.c.bf16 %v3912_v61, %v3911_v60  ;;  %v3916_v60 = vld [vmem:[%s6862_s5 + $0x68] sm:$0xff] }
 0x76a   : > { %5445 = vmatprep.subr.bf16.mxu1 %v6167_v0 }
 0x76d   : > { %5446 = vmatpush3.bf16.msra.mxu1 %v6027_v63  ;;  %v4564_v63 = vld [vmem:[%s6859_s2 + $0x10] ss:$0 sm:$0xff] }
 0x76e   : > { %5451 = vmatprep.subr.bf16.mxu1 %v6167_v0 }
 0x823   : > { %v2815_v21 = vpop.f32.mrb[12].mxu1 }
 0x824   : > { %v2830_v23 = vmul.f32 %v4508_v20, %v2815_v21  ;;  %v5369_v24 = vpop.f32.mrb[13].mxu1  ;;  %v6030_v21 = vld [vmem:[#allocation3 + $0x610] sm:$0xff]  }
 0x825   : > { %v2818_v25 = vpop.f32.mrb[14].mxu1  ;;  %v6033_v24 = vld [vmem:[#allocation3 + $0x628] sm:$0xff]  }
 0x826   : > { %v2837_v26 = vadd.f32 %v4510_v22, %v2830_v23  ;;  %v2831_v27 = vmul.f32 %v4508_v20, %v2818_v25  ;;  %v5370_v28 = vpop.f32.mrb[15].mxu1  ;;  %v6029_v20 = vld [vmem:[#allocation3 + $0x608] sm:$0xff]   ;;  %v6032_v23 = vld [vmem:[#allocation3 + $0x620] sm:$0xff]   ;;  %v6034_v25 = vld [vmem:[#allocation3 + $0x630] sm:$0xff]  }
 0x828   : > { %vm2839_vm13 = vcmp.ge.f32.partialorder %v2837_v26, 0.0  ;;  %v2841_v29 = vmul.f32 0.01, %v2837_v26  ;;  %v2838_v30 = vadd.f32 %v4510_v22, %v2831_v27  ;;  %v6031_v22 = vld [vmem:[#allocation3 + $0x618] sm:$0xff]  }
 0x82a   : > { %v2843_v31 = vsel %vm2839_vm13, %v2837_v26, %v2841_v29  ;;  %vm2840_vm14 = vcmp.ge.f32.partialorder %v2838_v30, 0.0  ;;  %v2842_v32 = vmul.f32 0.01, %v2838_v30  ;;  %v6035_v26 = vld [vmem:[#allocation3 + $0x638] sm:$0xff]   ;;  %v6036_v29 = vld [vmem:[#allocation3 + $0x680] sm:$0xff]   ;;  %vm4212_vm13 = vcmask 523264  }
 0x82b   : > { %2845 = vst [vmem:[#allocation2 + $0x1] sm:$0xff] %v2843_v31 }
 0x82c   : > { %v2844_v33 = vsel %vm2840_vm14, %v2838_v30, %v2842_v32  ;;  %v6038_v32 = vld [vmem:[#allocation3 + $0x690] sm:$0xff]  }
 0x82d   : > { %2846 = vst [vmem:[#allocation2 + $0x9] sm:$0xff] %v2844_v33  ;;  %v2869_v35 = vpack.c.bf16 %v2844_v33, %v2843_v31  ;;  %v6037_v31 = vld [vmem:[#allocation3 + $0x688] sm:$0xff]   ;;  %v6039_v33 = vld [vmem:[#allocation3 + $0x698] sm:$0xff]  }
 0x82f   : > { %5388 = vmatmul.mubr.bf16.vlgmr.msra.gmra.mrb[16].mxu0 %v2869_v35  ;;  %v6041_v35 = vld [vmem:[#allocation3 + $0x6a8] sm:$0xff]  }
 0x830   : > { %5392 = vmatpush3.bf16.msra.mxu0 %v6004_v34  ;;  %5407 = vmatprep.mubr.msk.bf16.mxu0 %vm6168_vm0, %v6167_v0  ;;  %v6040_v34 = vld [vmem:[#allocation3 + $0x6a0] sm:$0xff]  }
 0x831   : > { %5393 = vmatprep.subr.bf16.mxu0 %v6167_v0 }
 0x832   : > { %v2847_v44 = vld [vmem:[#allocation2] sm:$0xff] }
 0x834   : > { %5394 = vmatpush3.bf16.msra.mxu0 %v6005_v36  ;;  %v2848_v43 = vld [vmem:[#allocation2 + $0x8] sm:$0xff] }
 0x835   : > { %5395 = vmatprep.subr.bf16.mxu0 %v6167_v0  ;;  %v2849_v46 = vpack.c.bf16 %v2848_v43, %v2847_v44  ;;  %v3065_v56 = vld [vmem:[#allocation2 + $0x2] sm:$0xff]  ;;  %v3066_v57 = vld [vmem:[#allocation2 + $0xa] sm:$0xff] }
 0x836   : > { %v3067_v58 = vpack.c.bf16 %v3066_v57, %v3065_v56  ;;  %v6042_v36 = vld [vmem:[#allocation3 + $0x6b0] sm:$0xff]   ;;  %v6049_v43 = vld [vmem:[#allocation3 + $0x728] sm:$0xff]   ;;  %v3909_v57 = vld [vmem:[%s6862_s5 + $0x30] sm:$0xff] }
 0x837   : > { %v6050_v44 = vld [vmem:[#allocation3 + $0x730] sm:$0xff]  }
 0x838   : > { %5396 = vmatpush3.bf16.msra.mxu0 %v6006_v37  ;;  %v6043_v37 = vld [vmem:[#allocation3 + $0x6b8] sm:$0xff]  }
 0x839   : > { %5397 = vmatprep.subr.bf16.mxu0 %v6167_v0 }
 0x83c   : > { %5398 = vmatpush3.bf16.msra.mxu0 %v6007_v38 }
 0x83d   : > { %5399 = vmatprep.subr.bf16.mxu0 %v6167_v0 }
 0x840   : > { %5400 = vmatpush3.bf16.msra.mxu0 %v6008_v39 }
 0x841   : > { %5401 = vmatprep.subr.bf16.mxu0 %v6167_v0 }
 0x844   : > { %5402 = vmatpush3.bf16.msra.mxu0 %v6009_v40 }
 0x845   : > { %5403 = vmatprep.subr.bf16.mxu0 %v6167_v0 }
 0x848   : > { %5404 = vmatpush3.bf16.msra.mxu0 %v6010_v41  ;;  %v6047_v41 = vld [vmem:[#allocation3 + $0x718] sm:$0xff]  }
 0x849   : > { %5405 = vmatprep.subr.bf16.mxu0 %v6167_v0 }
 0x84c   : > { %5406 = vmatpush3.bf16.msra.mxu0 %v6011_v42  ;;  %v6048_v42 = vld [vmem:[#allocation3 + $0x720] sm:$0xff]  }
 0x84d   : > { %5411 = vmatprep.subr.bf16.mxu0 %v6167_v0 }
 0x84f   : > { %5408 = vmatmul.mubr.bf16.vlgmr.msra.gmra.mrb[16].mxu0 %v2849_v46  ;;  %v3903_v46 = vld [vmem:[%s6862_s5] sm:$0xff] }
 0x850   : > { %5412 = vmatpush3.bf16.msra.mxu0 %v6012_v45  ;;  %5427 = vmatprep.mubr.msk.bf16.mxu0 %vm6168_vm0, %v6167_v0  ;;  %v6051_v45 = vld [vmem:[#allocation3 + $0x738] sm:$0xff]  }
 0x851   : > { %5413 = vmatprep.subr.bf16.mxu0 %v6167_v0 }
 0x854   : > { %5414 = vmatpush3.bf16.msra.mxu0 %v6013_v47  ;;  %v3904_v47 = vld [vmem:[%s6862_s5 + $0x8] sm:$0xff] }
 0x855   : > { %5415 = vmatprep.subr.bf16.mxu0 %v6167_v0 }
 0x858   : > { %5416 = vmatpush3.bf16.msra.mxu0 %v6014_v48  ;;  %v5621_v48 = vpack.c.bf16 %v3904_v47, %v3903_v46  ;;  %v4602_v46 = vld [vmem:[%s6862_s5 + $0xb8] sm:$0xff] }
 0x859   : > { %5417 = vmatprep.subr.bf16.mxu0 %v6167_v0 }
 0x85c   : > { %5418 = vmatpush3.bf16.msra.mxu0 %v6015_v49  ;;  %v3905_v49 = vld [vmem:[%s6862_s5 + $0x10] sm:$0xff] }
 0x85d   : > { %5419 = vmatprep.subr.bf16.mxu0 %v6167_v0 }
 0x860   : > { %5420 = vmatpush3.bf16.msra.mxu0 %v6016_v50  ;;  %v3906_v50 = vld [vmem:[%s6862_s5 + $0x18] sm:$0xff] }
 0x861   : > { %5421 = vmatprep.subr.bf16.mxu0 %v6167_v0 }
 0x864   : > { %5422 = vmatpush3.bf16.msra.mxu0 %v6017_v51  ;;  %v5625_v51 = vpack.c.bf16 %v3906_v50, %v3905_v49  ;;  %v4604_v49 = vld [vmem:[%s6862_s5 + $0xc8] sm:$0xff] }
 0x865   : > { %5423 = vmatprep.subr.bf16.mxu0 %v6167_v0 }
 0x868   : > { %5424 = vmatpush3.bf16.msra.mxu0 %v6018_v52  ;;  %v3907_v52 = vld [vmem:[%s6862_s5 + $0x20] sm:$0xff] }
 0x869   : > { %5425 = vmatprep.subr.bf16.mxu0 %v6167_v0 }
 0x86c   : > { %5426 = vmatpush3.bf16.msra.mxu0 %v6019_v54  ;;  %v3908_v54 = vld [vmem:[%s6862_s5 + $0x28] sm:$0xff] }
 0x86d   : > { %5491 = vmatprep.subr.bf16.mxu0 %v6167_v0  ;;  %v5629_v56 = vpack.c.bf16 %v3908_v54, %v3907_v52  ;;  %v3914_v52 = vld [vmem:[%s6862_s5 + $0x58] sm:$0xff]  ;;  %v4605_v54 = vld [vmem:[%s6862_s5 + $0xd0] sm:$0xff] }
 0x86f   : > { %5428 = vmatmul.mubr.bf16.vlgmr.msra.gmra.mrb[16].mxu0 %v3067_v58  ;;  %v3910_v58 = vld [vmem:[%s6862_s5 + $0x38] sm:$0xff] }
 0x870   : > { %5507 = vmatprep.mubr.msk.bf16.mxu0 %vm6168_vm0, %v6167_v0  ;;  %5492 = vmatpush3.bf16.msra.mxu0 %v6044_v1  ;;  %v5633_v59 = vpack.c.bf16 %v3910_v58, %v3909_v57  ;;  %v4606_v57 = vld [vmem:[%s6862_s5 + $0xd8] sm:$0xff] }
 0x871   : > { %5493 = vmatprep.subr.bf16.mxu0 %v6167_v0  ;;  %v5673_v58 = vpack.c.bf16 %v4606_v57, %v4605_v54 }
 0x874   : > { %5494 = vmatpush3.bf16.msra.mxu0 %v6045_v2  ;;  %v4566_v2 = vld [vmem:[%s6859_s2 + $0x11] ss:$0 sm:$0xff] }
 0x875   : > { %5495 = vmatprep.subr.bf16.mxu0 %v6167_v0 }
 0x878   : > { %5496 = vmatpush3.bf16.msra.mxu0 %v6046_v3 }
 0x879   : > { %5497 = vmatprep.subr.bf16.mxu0 %v6167_v0 }
 0x87c   : > { %5498 = vmatpush3.bf16.msra.mxu0 %v6047_v41 }
 0x87d   : > { %5499 = vmatprep.subr.bf16.mxu0 %v6167_v0 }
 0x880   : > { %5500 = vmatpush3.bf16.msra.mxu0 %v6048_v42 }
 0x881   : > { %5501 = vmatprep.subr.bf16.mxu0 %v6167_v0 }
 0x884   : > { %5502 = vmatpush3.bf16.msra.mxu0 %v6049_v43  ;;  %v4599_v43 = vld [vmem:[%s6862_s5 + $0xa0] sm:$0xff] }
 0x885   : > { %5503 = vmatprep.subr.bf16.mxu0 %v6167_v0 }
 0x888   : > { %5504 = vmatpush3.bf16.msra.mxu0 %v6050_v44 }
 0x889   : > { %5505 = vmatprep.subr.bf16.mxu0 %v6167_v0 }
 0x88c   : > { %5506 = vmatpush3.bf16.msra.mxu0 %v6051_v45  ;;  %v4601_v45 = vld [vmem:[%s6862_s5 + $0xb0] sm:$0xff] }
 0x88d   : > { %5511 = vmatprep.subr.bf16.mxu0 %v6167_v0  ;;  %v5665_v47 = vpack.c.bf16 %v4602_v46, %v4601_v45 }
 0x942   : > { %v3167_v5 = vpop.f32.mrb[16].mxu0 }
 0x943   : > { %v3182_v7 = vmul.f32 %v4536_v4, %v3167_v5  ;;  %v5429_v8 = vpop.f32.mrb[17].mxu0 }
 0x944   : > { %v3170_v9 = vpop.f32.mrb[18].mxu0 }
 0x945   : > { %v3189_v10 = vadd.f32 %v4538_v6, %v3182_v7  ;;  %v3183_v11 = vmul.f32 %v4536_v4, %v3170_v9  ;;  %v5430_v12 = vpop.f32.mrb[19].mxu0 }
 0x947   : > { %vm3191_vm15 = vcmp.ge.f32.partialorder %v3189_v10, 0.0  ;;  %v3193_v13 = vmul.f32 0.01, %v3189_v10  ;;  %v3190_v14 = vadd.f32 %v4538_v6, %v3183_v11 }
 0x949   : > { %v3195_v15 = vsel %vm3191_vm15, %v3189_v10, %v3193_v13  ;;  %vm3192_vm1 = vcmp.ge.f32.partialorder %v3190_v14, 0.0  ;;  %v3194_v16 = vmul.f32 0.01, %v3190_v14 }
 0x94a   : > { %3197 = vst [vmem:[#allocation2 + $0x1] sm:$0xff] %v3195_v15 }
 0x94b   : > { %v3196_v17 = vsel %vm3192_vm1, %v3190_v14, %v3194_v16  ;;  %v6052_v14 = vld [vmem:[#allocation3 + $0x6c0] sm:$0xff]   ;;  %v6053_v16 = vld [vmem:[#allocation3 + $0x6c8] sm:$0xff]  }
 0x94c   : > { %3198 = vst [vmem:[#allocation2 + $0x9] sm:$0xff] %v3196_v17  ;;  %v3221_v19 = vpack.c.bf16 %v3196_v17, %v3195_v15  ;;  %v6054_v17 = vld [vmem:[#allocation3 + $0x6d0] sm:$0xff]  }
 0x94e   : > { %5448 = vmatmul.mubr.bf16.vlgmr.msra.gmra.mrb[16].mxu1 %v3221_v19  ;;  %v6056_v19 = vld [vmem:[#allocation3 + $0x6e0] sm:$0xff]  }
 0x94f   : > { %5452 = vmatpush3.bf16.msra.mxu1 %v6028_v18  ;;  %5467 = vmatprep.mubr.msk.bf16.mxu1 %vm6168_vm0, %v6167_v0  ;;  %v6055_v18 = vld [vmem:[#allocation3 + $0x6d8] sm:$0xff]  }
 0x950   : > { %5453 = vmatprep.subr.bf16.mxu1 %v6167_v0 }
 0x951   : > { %v3199_v28 = vld [vmem:[#allocation2] sm:$0xff] }
 0x953   : > { %5454 = vmatpush3.bf16.msra.mxu1 %v6029_v20  ;;  %v3200_v27 = vld [vmem:[#allocation2 + $0x8] sm:$0xff]  ;;  %v6057_v20 = vld [vmem:[#allocation3 + $0x6e8] sm:$0xff]  }
 0x954   : > { %5455 = vmatprep.subr.bf16.mxu1 %v6167_v0  ;;  %v3201_v30 = vpack.c.bf16 %v3200_v27, %v3199_v28  ;;  %v3417_v38 = vld [vmem:[#allocation2 + $0x2] sm:$0xff]  ;;  %v3418_v39 = vld [vmem:[#allocation2 + $0xa] sm:$0xff] }
 0x955   : > { %v3419_v40 = vpack.c.bf16 %v3418_v39, %v3417_v38  ;;  %v6061_v27 = vld [vmem:[#allocation3 + $0x748] sm:$0xff]   ;;  %v6062_v28 = vld [vmem:[#allocation3 + $0x750] sm:$0xff]  }
 0x957   : > { %5456 = vmatpush3.bf16.msra.mxu1 %v6030_v21  ;;  %v6058_v21 = vld [vmem:[#allocation3 + $0x6f0] sm:$0xff]  }
 0x958   : > { %5457 = vmatprep.subr.bf16.mxu1 %v6167_v0 }
 0x95b   : > { %5458 = vmatpush3.bf16.msra.mxu1 %v6031_v22  ;;  %v6059_v22 = vld [vmem:[#allocation3 + $0x6f8] sm:$0xff]  }
 0x95c   : > { %5459 = vmatprep.subr.bf16.mxu1 %v6167_v0 }
 0x95f   : > { %5460 = vmatpush3.bf16.msra.mxu1 %v6032_v23 }
 0x960   : > { %5461 = vmatprep.subr.bf16.mxu1 %v6167_v0 }
 0x963   : > { %5462 = vmatpush3.bf16.msra.mxu1 %v6033_v24 }
 0x964   : > { %5463 = vmatprep.subr.bf16.mxu1 %v6167_v0 }
 0x967   : > { %5464 = vmatpush3.bf16.msra.mxu1 %v6034_v25  ;;  %v6060_v25 = vld [vmem:[#allocation3 + $0x740] sm:$0xff]  }
 0x968   : > { %5465 = vmatprep.subr.bf16.mxu1 %v6167_v0 }
 0x96b   : > { %5466 = vmatpush3.bf16.msra.mxu1 %v6035_v26 }
 0x96c   : > { %5471 = vmatprep.subr.bf16.mxu1 %v6167_v0 }
 0x96e   : > { %5468 = vmatmul.mubr.bf16.vlgmr.msra.gmra.mrb[16].mxu1 %v3201_v30  ;;  %v6064_v30 = vld [vmem:[#allocation3 + $0x760] sm:$0xff]  }
 0x96f   : > { %5472 = vmatpush3.bf16.msra.mxu1 %v6036_v29  ;;  %5487 = vmatprep.mubr.msk.bf16.mxu1 %vm6168_vm0, %v6167_v0  ;;  %v6063_v29 = vld [vmem:[#allocation3 + $0x758] sm:$0xff]  }
 0x970   : > { %5473 = vmatprep.subr.bf16.mxu1 %v6167_v0 }
 0x973   : > { %5474 = vmatpush3.bf16.msra.mxu1 %v6037_v31  ;;  %v6065_v31 = vld [vmem:[#allocation3 + $0x768] sm:$0xff]  }
 0x974   : > { %5475 = vmatprep.subr.bf16.mxu1 %v6167_v0 }
 0x977   : > { %5476 = vmatpush3.bf16.msra.mxu1 %v6038_v32  ;;  %v6066_v32 = vld [vmem:[#allocation3 + $0x770] sm:$0xff]  }
 0x978   : > { %5477 = vmatprep.subr.bf16.mxu1 %v6167_v0 }
 0x97b   : > { %5478 = vmatpush3.bf16.msra.mxu1 %v6039_v33  ;;  %v4595_v33 = vld [vmem:[%s6862_s5 + $0x80] sm:$0xff] }
 0x97c   : > { %5479 = vmatprep.subr.bf16.mxu1 %v6167_v0 }
 0x97f   : > { %5480 = vmatpush3.bf16.msra.mxu1 %v6040_v34  ;;  %v4596_v34 = vld [vmem:[%s6862_s5 + $0x88] sm:$0xff] }
 0x980   : > { %5481 = vmatprep.subr.bf16.mxu1 %v6167_v0 }
 0x983   : > { %5482 = vmatpush3.bf16.msra.mxu1 %v6041_v35  ;;  %v6067_v35 = vld [vmem:[#allocation3 + $0x778] sm:$0xff]  }
 0x984   : > { %5483 = vmatprep.subr.bf16.mxu1 %v6167_v0 }
 0x987   : > { %5484 = vmatpush3.bf16.msra.mxu1 %v6042_v36  ;;  %v5653_v36 = vpack.c.bf16 %v4596_v34, %v4595_v33 }
 0x988   : > { %5485 = vmatprep.subr.bf16.mxu1 %v6167_v0 }
 0x98b   : > { %5486 = vmatpush3.bf16.msra.mxu1 %v6043_v37  ;;  %v4597_v37 = vld [vmem:[%s6862_s5 + $0x90] sm:$0xff] }
 0x98c   : > { %5622 = vmatprep.subr.bf16.mxu1 %v5621_v48 }
 0x98e   : > { %5488 = vmatmul.mubr.bf16.vlgmr.msra.gmra.mrb[16].mxu1 %v3419_v40  ;;  %v4598_v40 = vld [vmem:[%s6862_s5 + $0x98] sm:$0xff] }
 0x98f   : > { %5624 = vmatpush3.bf16.msra.mxu1 %v5621_v48  ;;  %v5657_v42 = vpack.c.bf16 %v4598_v40, %v4597_v37  ;;  %v4603_v48 = vld [vmem:[%s6862_s5 + $0xc0] sm:$0xff] }
 0x990   : > { %5626 = vmatprep.subr.bf16.mxu1 %v5625_v51  ;;  %v5669_v50 = vpack.c.bf16 %v4604_v49, %v4603_v48 }
 0x993   : > { %5628 = vmatpush3.bf16.msra.mxu1 %v5625_v51  ;;  %v3913_v51 = vld [vmem:[%s6862_s5 + $0x50] sm:$0xff] }
 0x994   : > { %5630 = vmatprep.subr.bf16.mxu1 %v5629_v56 }
 0x997   : > { %5632 = vmatpush3.bf16.msra.mxu1 %v5629_v56  ;;  %v5641_v56 = vpack.c.bf16 %v3914_v52, %v3913_v51 }
 0x998   : > { %5634 = vmatprep.subr.bf16.mxu1 %v5633_v59 }
 0x99b   : > { %5636 = vmatpush3.bf16.msra.mxu1 %v5633_v59  ;;  %v3915_v59 = vld [vmem:[%s6862_s5 + $0x60] sm:$0xff] }
 0x99c   : > { %5638 = vmatprep.subr.bf16.mxu1 %v5637_v62  ;;  %v5645_v61 = vpack.c.bf16 %v3916_v60, %v3915_v59 }
 0x99f   : > { %5640 = vmatpush3.bf16.msra.mxu1 %v5637_v62  ;;  %v4607_v62 = vld [vmem:[%s6862_s5 + $0xe0] sm:$0xff] }
 0x9a0   : > { %5642 = vmatprep.subr.bf16.mxu1 %v5641_v56 }
 0x9a3   : > { %5644 = vmatpush3.bf16.msra.mxu1 %v5641_v56 }
 0x9a4   : > { %5646 = vmatprep.subr.bf16.mxu1 %v5645_v61 }
 0x9a7   : > { %5648 = vmatpush3.bf16.msra.mxu1 %v5645_v61 }
 0xa61   : > { %v3519_v1 = vpop.f32.mrb[16].mxu1 }
 0xa62   : > { %v3534_v3 = vmul.f32 %v4564_v63, %v3519_v1  ;;  %v5489_v4 = vpop.f32.mrb[17].mxu1 }
 0xa63   : > { %v3522_v5 = vpop.f32.mrb[18].mxu1  ;;  %v4609_v4 = vld [vmem:[%s6862_s5 + $0xf0] sm:$0xff] }
 0xa64   : > { %v3541_v6 = vadd.f32 %v4566_v2, %v3534_v3  ;;  %v3535_v7 = vmul.f32 %v4564_v63, %v3522_v5  ;;  %v5490_v8 = vpop.f32.mrb[19].mxu1  ;;  %v4608_v63 = vld [vmem:[%s6862_s5 + $0xe8] sm:$0xff]  ;;  %v3918_v3 = vld [vmem:[%s6862_s5 + $0x78] sm:$0xff] }
 0xa65   : > { %v5677_v1 = vpack.c.bf16 %v4608_v63, %v4607_v62  ;;  %v4592_v8 = vld [vmem:[%s6859_s2 + $0x12] ss:$0 sm:$0xff] }
 0xa66   : > { %vm3543_vm2 = vcmp.ge.f32.partialorder %v3541_v6, 0.0  ;;  %v3545_v9 = vmul.f32 0.01, %v3541_v6  ;;  %v3542_v10 = vadd.f32 %v4566_v2, %v3535_v7  ;;  %v3917_v2 = vld [vmem:[%s6862_s5 + $0x70] sm:$0xff] }
 0xa67   : > { %v5649_v5 = vpack.c.bf16 %v3918_v3, %v3917_v2 }
 0xa68   : > { %v3547_v11 = vsel %vm3543_vm2, %v3541_v6, %v3545_v9  ;;  %vm3544_vm3 = vcmp.ge.f32.partialorder %v3542_v10, 0.0  ;;  %v3546_v12 = vmul.f32 0.01, %v3542_v10  ;;  %v4610_v6 = vld [vmem:[%s6862_s5 + $0xf8] sm:$0xff]  ;;  %v4308_v9 = vld [vmem:[%s6861_s4] ss:$0 sm:$0xff] }
 0xa69   : > { %3549 = vst [vmem:[#allocation2 + $0x1] sm:$0xff] %v3547_v11  ;;  %v5681_v7 = vpack.c.bf16 %v4610_v6, %v4609_v4  ;;  %5650 = vmatprep.subr.bf16.mxu1 %v5649_v5 }
 0xa6a   : > { %v3548_v13 = vsel %vm3544_vm3, %v3542_v10, %v3546_v12  ;;  %5652 = vmatpush3.bf16.msra.mxu1 %v5649_v5 }
 0xa6b   : > { %3550 = vst [vmem:[#allocation2 + $0x9] sm:$0xff] %v3548_v13  ;;  %v3573_v15 = vpack.c.bf16 %v3548_v13, %v3547_v11  ;;  %v4594_v11 = vld [vmem:[%s6859_s2 + $0x13] ss:$0 sm:$0xff] }
 0xa6d   : > { %5508 = vmatmul.mubr.bf16.vlgmr.msra.gmra.mrb[20].mxu0 %v3573_v15  ;;  %v377_v15 = vadd.f32 %v4308_v9, %v6377_v53 }
 0xa6e   : > { %5512 = vmatpush3.bf16.msra.mxu0 %v6052_v14  ;;  %5527 = vmatprep.mubr.msk.bf16.mxu0 %vm6168_vm0, %v6167_v0 }
 0xa6f   : > { %5513 = vmatprep.subr.bf16.mxu0 %v6167_v0 }
 0xa70   : > { %v3551_v24 = vld [vmem:[#allocation2] sm:$0xff] }
 0xa72   : > { %5514 = vmatpush3.bf16.msra.mxu0 %v6053_v16  ;;  %v3552_v23 = vld [vmem:[#allocation2 + $0x8] sm:$0xff] }
 0xa73   : > { %5515 = vmatprep.subr.bf16.mxu0 %v6167_v0  ;;  %v3553_v26 = vpack.c.bf16 %v3552_v23, %v3551_v24  ;;  %v3769_v38 = vld [vmem:[#allocation2 + $0x2] sm:$0xff]  ;;  %v3770_v39 = vld [vmem:[#allocation2 + $0xa] sm:$0xff] }
 0xa74   : > { %v3771_v41 = vpack.c.bf16 %v3770_v39, %v3769_v38 }
 0xa76   : > { %5516 = vmatpush3.bf16.msra.mxu0 %v6054_v17 }
 0xa77   : > { %5517 = vmatprep.subr.bf16.mxu0 %v6167_v0 }
 0xa7a   : > { %5518 = vmatpush3.bf16.msra.mxu0 %v6055_v18 }
 0xa7b   : > { %5519 = vmatprep.subr.bf16.mxu0 %v6167_v0 }
 0xa7e   : > { %5520 = vmatpush3.bf16.msra.mxu0 %v6056_v19  ;;  %v380_v19 = vadd.f32 %v4308_v9, %v6379_v55 }
 0xa7f   : > { %5521 = vmatprep.subr.bf16.mxu0 %v6167_v0 }
 0xa82   : > { %5522 = vmatpush3.bf16.msra.mxu0 %v6057_v20 }
 0xa83   : > { %5523 = vmatprep.subr.bf16.mxu0 %v6167_v0 }
 0xa86   : > { %5524 = vmatpush3.bf16.msra.mxu0 %v6058_v21 }
 0xa87   : > { %5525 = vmatprep.subr.bf16.mxu0 %v6167_v0 }
 0xa8a   : > { %5526 = vmatpush3.bf16.msra.mxu0 %v6059_v22 }
 0xa8b   : > { %5531 = vmatprep.subr.bf16.mxu0 %v6167_v0 }
 0xa8d   : > { %5528 = vmatmul.mubr.bf16.vlgmr.msra.gmra.mrb[20].mxu0 %v3553_v26 }
 0xa8e   : > { %5532 = vmatpush3.bf16.msra.mxu0 %v6060_v25  ;;  %5547 = vmatprep.mubr.msk.bf16.mxu0 %vm6168_vm0, %v6167_v0 }
 0xa8f   : > { %5533 = vmatprep.subr.bf16.mxu0 %v6167_v0 }
 0xa92   : > { %5534 = vmatpush3.bf16.msra.mxu0 %v6061_v27  ;;  %v6169_v27 = vmov 1983009808  }
 0xa93   : > { %5535 = vmatprep.subr.bf16.mxu0 %v6167_v0  ;;  %v4092_v53 = vunpack.c.l.s4 %v6169_v27 }
 0xa96   : > { %5536 = vmatpush3.bf16.msra.mxu0 %v6062_v28  ;;  %v4094_v28 = vlaneseq }
 0xa97   : > { %5537 = vmatprep.subr.bf16.mxu0 %v6167_v0 }
 0xa9a   : > { %5538 = vmatpush3.bf16.msra.mxu0 %v6063_v29  ;;  %v4093_v29 = vunpack.c.0.s8 %v4092_v53 }
 0xa9b   : > { %5539 = vmatprep.subr.bf16.mxu0 %v6167_v0 }
 0xa9e   : > { %5540 = vmatpush3.bf16.msra.mxu0 %v6064_v30  ;;  %v4095_v30 = vshrl.u32 %v4094_v28, 7 }
 0xa9f   : > { %5541 = vmatprep.subr.bf16.mxu0 %v6167_v0 }
 0xaa2   : > { %5542 = vmatpush3.bf16.msra.mxu0 %v6065_v31  ;;  %v4096_v31 = vsub.s32 %v4093_v29, %v4095_v30 }
 0xaa3   : > { %5543 = vmatprep.subr.bf16.mxu0 %v6167_v0 }
 0xaa6   : > { %5544 = vmatpush3.bf16.msra.mxu0 %v6066_v32 }
 0xaa7   : > { %5545 = vmatprep.subr.bf16.mxu0 %v6167_v0  ;;  %v4600_v0 = vld [vmem:[%s6862_s5 + $0xa8] sm:$0xff] }
 0xaa8   : > { %v5661_v44 = vpack.c.bf16 %v4600_v0, %v4599_v43 }
 0xaaa   : > { %5546 = vmatpush3.bf16.msra.mxu0 %v6067_v35 }
 0xaab   : > { %5654 = vmatprep.subr.bf16.mxu0 %v5653_v36 }
 0xaad   : > { %5548 = vmatmul.mubr.bf16.vlgmr.msra.gmra.mrb[20].mxu0 %v3771_v41 }
 0xaae   : > { %5656 = vmatpush3.bf16.msra.mxu0 %v5653_v36 }
 0xaaf   : > { %5658 = vmatprep.subr.bf16.mxu0 %v5657_v42 }
 0xab2   : > { %5660 = vmatpush3.bf16.msra.mxu0 %v5657_v42 }
 0xab3   : > { %5662 = vmatprep.subr.bf16.mxu0 %v5661_v44 }
 0xab6   : > { %5664 = vmatpush3.bf16.msra.mxu0 %v5661_v44 }
 0xab7   : > { %5666 = vmatprep.subr.bf16.mxu0 %v5665_v47 }
 0xaba   : > { %5668 = vmatpush3.bf16.msra.mxu0 %v5665_v47 }
 0xabb   : > { %5670 = vmatprep.subr.bf16.mxu0 %v5669_v50 }
 0xabe   : > { %5672 = vmatpush3.bf16.msra.mxu0 %v5669_v50 }
 0xabf   : > { %5674 = vmatprep.subr.bf16.mxu0 %v5673_v58 }
 0xac2   : > { %5676 = vmatpush3.bf16.msra.mxu0 %v5673_v58 }
 0xac3   : > { %5678 = vmatprep.subr.bf16.mxu0 %v5677_v1 }
 0xac6   : > { %5680 = vmatpush3.bf16.msra.mxu0 %v5677_v1 }
 0xac7   : > { %5682 = vmatprep.subr.bf16.mxu0 %v5681_v7 }
 0xaca   : > { %5684 = vmatpush3.bf16.msra.mxu0 %v5681_v7 }
 0xb80   : > { %v3871_v10 = vpop.f32.mrb[20].mxu0 }
 0xb81   : > { %v3886_v12 = vmul.f32 %v4592_v8, %v3871_v10  ;;  %v5549_v13 = vpop.f32.mrb[21].mxu0 }
 0xb82   : > { %v3874_v14 = vpop.f32.mrb[22].mxu0 }
 0xb83   : > { %v3893_v16 = vadd.f32 %v4594_v11, %v3886_v12  ;;  %v3887_v17 = vmul.f32 %v4592_v8, %v3874_v14  ;;  %v5550_v18 = vpop.f32.mrb[23].mxu0 }
 0xb85   : > { %v3895_v20 = vadd.f32 %v3893_v16, %v377_v15  ;;  %v3894_v21 = vadd.f32 %v4594_v11, %v3887_v17 }
 0xb87   : > { %v3896_v22 = vadd.f32 %v3894_v21, %v380_v19  ;;  %vm3897_vm0 = vcmp.ge.f32.partialorder %v3895_v20, 0.0  ;;  %v3899_v23 = vmul.f32 0.01, %v3895_v20 }
 0xb89   : > { %v3901_v24 = vsel %vm3897_vm0, %v3895_v20, %v3899_v23  ;;  %vm3898_vm4 = vcmp.ge.f32.partialorder %v3896_v22, 0.0  ;;  %v3900_v25 = vmul.f32 0.01, %v3896_v22 }
 0xb8a   : > { %5583 = vmatprep.mubr.f32.mxu1 %v3901_v24  ;;  %5618 = vmatprep.mubr.f32.mxu0 %v3901_v24 }
 0xb8b   : > { %v3902_v26 = vsel %vm3898_vm4, %v3896_v22, %v3900_v25 }
 0xb8c   : > { %5584 = vmatmul.mubr.f32.vlgmr.msra.gmra.mrb[20].mxu1 %v3902_v26  ;;  %5619 = vmatmul.mubr.f32.vlgmr.msra.gmra.mrb[24].mxu0 %v3902_v26 }
 0xc5f   : > { %v5585_v55 = vpop.f32.mrb[20].mxu1  ;;  %v5620_v32 = vpop.f32.mrb[24].mxu0 }
 0xc60   : > { %v4087_v33 = vmax.f32 %v5585_v55, %v5620_v32  ;;  %v3985_v34 = vpop.f32.mrb[21].mxu1  ;;  %v4077_v35 = vpop.f32.mrb[25].mxu0 }
 0xc61   : > { %v4086_v36 = vmax.f32 %v3985_v34, %v4077_v35 }
 0xc62   : > { %v4107_v37 = vcombine.high %v4087_v33, %v4087_v33  ;;  %v4114_v38 = vrot.slane %v4087_v33, %v4096_v31 }
 0xc63   : > { %v4090_v39 = vcombine.high %v4086_v36, %v4086_v36  ;;  %v4097_v40 = vrot.slane %v4086_v36, %v4096_v31 }
 0xc64   : > { %v4121_v41 = vrot.slane %v4107_v37, %v4096_v31  ;;  %v4122_v42 = vcombine.high %v4114_v38, %v4114_v38  ;;  %v4161_v43 = vsel %vm4132_vm5, %v4114_v38, -inf }
 0xc65   : > { %v4162_v0 = vrot.slane %v4161_v43, 4  ;;  %v4104_v44 = vrot.slane %v4090_v39, %v4096_v31  ;;  %v4105_v45 = vcombine.high %v4097_v40, %v4097_v40  ;;  %v4133_v46 = vsel %vm4132_vm5, %v4097_v40, -inf }
 0xc66   : > { %v4123_v47 = vcombine.high %v4121_v41, %v4121_v41  ;;  %v4168_v48 = vsel %vm4132_vm5, %v4122_v42, -inf  ;;  %v4175_v49 = vsel %vm4132_vm5, %v4121_v41, -inf  ;;  %v4134_v50 = vrot.slane %v4133_v46, 4 }
 0xc67   : > { %v4163_v51 = vmax.f32 %v4161_v43, %v4162_v0  ;;  %v4169_v52 = vrot.slane %v4168_v48, 4  ;;  %v4176_v54 = vrot.slane %v4175_v49, 4  ;;  %v4106_v56 = vcombine.high %v4104_v44, %v4104_v44 }
 0xc68   : > { %v4182_v57 = vsel %vm4132_vm5, %v4123_v47, -inf  ;;  %v4135_v58 = vmax.f32 %v4133_v46, %v4134_v50  ;;  %v4140_v59 = vsel %vm4132_vm5, %v4105_v45, -inf  ;;  %v4147_v60 = vsel %vm4132_vm5, %v4104_v44, -inf }
 0xc69   : > { %v4170_v61 = vmax.f32 %v4168_v48, %v4169_v52  ;;  %v4177_v62 = vmax.f32 %v4175_v49, %v4176_v54  ;;  %v4183_v63 = vrot.slane %v4182_v57, 4  ;;  %v4141_v2 = vrot.slane %v4140_v59, 4 }
 0xc6a   : > { %v4136_v1 = vrot.slane %v4135_v58, 2  ;;  %v4148_v3 = vrot.slane %v4147_v60, 4  ;;  %v4154_v4 = vsel %vm4132_vm5, %v4106_v56, -inf  ;;  %v4164_v5 = vrot.slane %v4163_v51, 2 }
 0xc6b   : > { %v4171_v6 = vrot.slane %v4170_v61, 2  ;;  %v4184_v7 = vmax.f32 %v4182_v57, %v4183_v63  ;;  %v4142_v9 = vmax.f32 %v4140_v59, %v4141_v2  ;;  %v4155_v11 = vrot.slane %v4154_v4, 4 }
 0xc6c   : > { %v4137_v8 = vmax.f32 %v4135_v58, %v4136_v1  ;;  %v4149_v10 = vmax.f32 %v4147_v60, %v4148_v3  ;;  %v4178_v12 = vrot.slane %v4177_v62, 2  ;;  %v4165_v17 = vmax.f32 %v4163_v51, %v4164_v5 }
 0xc6d   : > { %v4185_v13 = vrot.slane %v4184_v7, 2  ;;  %v4143_v14 = vrot.slane %v4142_v9, 2  ;;  %v4156_v16 = vmax.f32 %v4154_v4, %v4155_v11  ;;  %v4172_v18 = vmax.f32 %v4170_v61, %v4171_v6 }
 0xc6e   : > { %v4150_v15 = vrot.slane %v4149_v10, 2  ;;  %v4138_v19 = vrot.slane %v4137_v8, 1  ;;  %v4179_v23 = vmax.f32 %v4177_v62, %v4178_v12  ;;  %v4166_v53 = vrot.slane %v4165_v17, 1 }
 0xc6f   : > { %v4144_v20 = vmax.f32 %v4142_v9, %v4143_v14  ;;  %v4157_v22 = vrot.slane %v4156_v16, 2  ;;  %v4186_v24 = vmax.f32 %v4184_v7, %v4185_v13  ;;  %v4173_v28 = vrot.slane %v4172_v18, 1 }
 0xc70   : > { %v4151_v21 = vmax.f32 %v4149_v10, %v4150_v15  ;;  %v4139_v29 = vmax.f32 %v4137_v8, %v4138_v19  ;;  %v4180_v32 = vrot.slane %v4179_v23, 1  ;;  %v4167_v36 = vmax.f32 %v4165_v17, %v4166_v53 }
 0xc71   : > { %v4145_v25 = vrot.slane %v4144_v20, 1  ;;  %v4158_v27 = vmax.f32 %v4156_v16, %v4157_v22  ;;  %v4187_v33 = vrot.slane %v4186_v24, 1  ;;  %v4174_v38 = vmax.f32 %v4172_v18, %v4173_v28 }
 0xc72   : > { %v4152_v26 = vrot.slane %v4151_v21, 1  ;;  %v4181_v40 = vmax.f32 %v4179_v23, %v4180_v32 }
 0xc73   : > { %v4146_v30 = vmax.f32 %v4144_v20, %v4145_v25  ;;  %v4159_v55 = vrot.slane %v4158_v27, 1  ;;  %v4188_v42 = vmax.f32 %v4186_v24, %v4187_v33 }
 0xc74   : > { %v4153_v31 = vmax.f32 %v4151_v21, %v4152_v26 }
 0xc75   : > { %v4160_v34 = vmax.f32 %v4158_v27, %v4159_v55  ;;  %v4198_v35 = vsel %vm4197_vm6, %v4146_v30, %v4139_v29 }
 0xc76   : > { %v4200_v37 = vsel %vm4199_vm7, %v4153_v31, %v4198_v35 }
 0xc77   : > { %v4202_v39 = vsel %vm4201_vm8, %v4160_v34, %v4200_v37 }
 0xc78   : > { %v4204_v41 = vsel %vm4203_vm9, %v4167_v36, %v4202_v39 }
 0xc79   : > { %v4206_v43 = vsel %vm4205_vm10, %v4174_v38, %v4204_v41 }
 0xc7a   : > { %v4208_v0 = vsel %vm4207_vm11, %v4181_v40, %v4206_v43 }
 0xc7b   : > { %v4210_v44 = vsel %vm4209_vm12, %v4188_v42, %v4208_v0 }
 0xc7c   : > { %4213 = vst.msk [vmem:[%s259_s20] sm:$0xff] %vm4212_vm13, %v4210_v44 }
 0xc7d   : > { %6109 = shalt.err (!%p6106_p7)
}
 0xc7e   : > { %s6110_s14 = scalar_lea.hbm %s6813_s10, 128  ;;  %s6114_s17 = scalar_lea.hbm %s6863_s6, 256 }
 0xc7f   : > { %p6111_p8 = scmp.ne.s32.totalorder %s6813_s10, %s6110_s14  ;;  %p6115_p1 = scmp.lt.u32.totalorder %s6813_s10, %s6863_s6 }
 0xc80   : > { %p6116_p0 = scmp.lt.u32.totalorder %s6114_s17, %s6110_s14  ;;  %p6118_p6 = scmp.lt.u32.totalorder %s6110_s14, %s6813_s10 }
 0xc81   : > { %p6112_p11 = pnand %p6111_p8, %p6874_p9 }
 0xc82   : > { %p6117_p5 = por %p6116_p0, %p6115_p1 }
 0xc83   : > { %p6113_p13 = pneg %p6112_p11 }
 0xc84   : > { %p6119_p10 = por %p6118_p6, %p6117_p5 }
 0xc86   : > { %p6120_p12 = pnand %p6119_p10, %p6113_p13 }
 0xc88   : > { %6123 = shalt.err (!%p6120_p12)
}
 0xc89   : > { %5769 = dma.vmem_to_hbm [thread:$0]  (%p6874_p9), %s6815_s26, 128, %s6813_s10, %s4215_s25  }
 0xc8a PF: > { %p5781_p2 = scmp.ge.s32.totalorder %s6162_s24, 2  ;;  %s4240_s20 = sand.u32 1, %s6150_s21  }
 0xc8b   : > { %p6875_p3 = scmp.ne.s32.totalorder %s6868_s8, 0  ;;  %s4241_s28 = scalar_lea.sflag [#allocation5], %s4240_s20 }
 0xc8d   : > { %p5776_p4 = pnand %p5781_p2, %p6875_p3 }
 0xc8f   : > { %6145 = dma.done.wait (!%p5776_p4), %s4241_s28, 128  }
 0xc90   : > { %6147 = vsyncadd (!%p5776_p4), %s4241_s28, 4294967168  ;;  %p17_p7 = scmp.ge.s32.totalorder %s6231_s27, 4   ;;  %s6876_s21 = smov %s6154_s22 }
 0xc91   : > { %s6877_s22 = smov %s6158_s23  ;;  %s6878_s23 = smov %s6242_s30 }
 0xc92   : > { %s6879_s24 = smov %s6231_s27  ;;  %19 = sbr.rel (!%p17_p7) target bundleno = 4 (0x4), region = 123 }
 0xc99   :  { %4246 = vsyncpa [#allocation4], 1 }
 0xc9a   :  { %4248 = vsyncpa [#allocation4 + $0x1], 1 }
 0xc9b   :  { %4249 = vsyncpa [#allocation5], 1 }
 0xc9c   :  { %4251 = vsyncpa [#allocation5 + $0x1], 1 }

</bundles_post_ra>
